<compile_context>
chip_gen: v6e
topology: v6e:2x2x1
jax: 0.10.0
libtpu: 0.0.40
codegen_flags: <defaults>
</compile_context>

<pallas_src>
import functools

import jax
import jax.numpy as jnp
import numpy as np
from jax import lax
from jax.experimental import pallas as pl
from jax.experimental.pallas import tpu as pltpu

TAU = 1.25
DECAY = 1.0 - 1.0 / TAU          # 0.2
V_TH = 0.5
EPS = 1e-5
POOL_K, POOL_S = 5, 3
LANE = 128


def _lif_scan(y, T, rows_per_step):
    """LIF (tau=1.25, decay_input=False, v_reset=0, hard reset) over T steps.
    Rows of y are grouped [t*rows_per_step : (t+1)*rows_per_step]."""
    v = jnp.zeros((rows_per_step, y.shape[-1]), jnp.float32)
    spikes = []
    for t in range(T):
        yt = y[t * rows_per_step:(t + 1) * rows_per_step]
        v = v * DECAY + yt                      # decay_input=False, v_reset=0
        s = (v >= V_TH).astype(jnp.float32)     # heaviside(v - v_threshold)
        spikes.append(s)
        v = v * (1.0 - s)                       # hard reset to 0
    return jnp.concatenate(spikes, axis=0)


def _bn_rows(y, g_ref, b_ref):
    """Training-mode BatchNorm over rows (axis 0), biased variance, affine."""
    mean = jnp.mean(y, axis=0, keepdims=True)
    var = jnp.mean((y - mean) ** 2, axis=0, keepdims=True)
    scale = g_ref[...] * lax.rsqrt(var + EPS)
    shift = b_ref[...] - mean * scale
    return y * scale + shift


def _aux_head_kernel(x_ref, pool_ref, w1_ref, g1_ref, b1_ref,
                     w2_ref, g2_ref, b2_ref, w3_ref, g3_ref, b3_ref,
                     out_ref, *dbg_s2, T, N):
    # x_ref   : (T*N, C*8*8) bf16 (NCHW-flattened)   pool_ref: (C*64, 4*C)  bf16 0/1
    # w1_ref  : (4*C, 512)  bf16 (block-diag 1x1)    w2_ref  : (512, 768)   bf16 (HWIO)
    # w3_ref  : (768, NCP)  bf16 (lane-padded)       g*/b*   : (1, ch) f32 BN affine
    # out_ref : (T*N, NCP) f32 ; optional dbg_s2[0]: (T*N, 768) f32 conv2 spikes
    TN = T * N

    # ---- SpikingAvgPool2d(5, stride 3): one MXU matmul against a constant 0/1
    #      selection matrix (also folds NCHW -> pos-major lane layout), then LIF --
    pooled = jnp.dot(x_ref[...], pool_ref[...],
                     preferred_element_type=jnp.float32) * (1.0 / (POOL_K * POOL_K))
    s_pool = _lif_scan(pooled, T, N)                       # (TN, 4*C), lanes pos*C+c

    # ---- SpikingConv2d(C -> 128, k=1): block-diagonal matmul + BN2d + LIF -------
    y1 = jnp.dot(s_pool.astype(jnp.bfloat16), w1_ref[...],
                 preferred_element_type=jnp.float32)       # (TN, 512), lanes pos*128+c
    C1 = g1_ref.shape[-1]                                  # 128
    cnt1 = 4 * TN                                          # BN2d counts rows x spatial

    def fold4(a):                                          # (1, 4*C1) -> (1, C1)
        return a[:, 0:C1] + a[:, C1:2 * C1] + a[:, 2 * C1:3 * C1] + a[:, 3 * C1:4 * C1]

    mean1 = fold4(jnp.sum(y1, axis=0, keepdims=True)) * (1.0 / cnt1)
    mean1_4 = jnp.concatenate([mean1] * 4, axis=-1)
    var1 = fold4(jnp.sum((y1 - mean1_4) ** 2, axis=0, keepdims=True)) * (1.0 / cnt1)
    scale1 = g1_ref[...] * lax.rsqrt(var1 + EPS)
    shift1 = b1_ref[...] - mean1 * scale1
    y1 = (y1 * jnp.concatenate([scale1] * 4, axis=-1)
          + jnp.concatenate([shift1] * 4, axis=-1))
    s1 = _lif_scan(y1, T, N)                               # (TN, 512) == im2col patches

    # ---- SpikingConv2d(128 -> 768, k=2): lanes already (kh,kw,ci) -> one matmul -
    y2 = jnp.dot(s1.astype(jnp.bfloat16), w2_ref[...],
                 preferred_element_type=jnp.float32)       # (TN, 768)
    y2 = _bn_rows(y2, g2_ref, b2_ref)
    s2 = _lif_scan(y2, T, N)
    if dbg_s2:                                             # debug tap only if requested
        dbg_s2[0][...] = s2

    # ---- SpikingLinear(768 -> num_classes), spiking=False (lane-padded output) --
    z = jnp.dot(s2.astype(jnp.bfloat16), w3_ref[...],
                preferred_element_type=jnp.float32)        # (TN, NCP)
    out_ref[...] = _bn_rows(z, g3_ref, b3_ref)


def _pool_matrix(C, H, W):
    """0/1 matrix: NCHW-flattened pixel (c*H*W + h*W + w) -> column (pos*C + c),
    pos = oh*2 + ow, summing each 5x5 / stride-3 window."""
    P = np.zeros((C * H * W, 4 * C), np.float32)
    chans = np.arange(C)
    for oh in range(2):
        for ow in range(2):
            pos = oh * 2 + ow
            for dh in range(POOL_K):
                for dw in range(POOL_K):
                    h = POOL_S * oh + dh
                    w = POOL_S * ow + dw
                    P[chans * (H * W) + h * W + w, pos * C + chans] = 1.0
    return P


def aux_head_forward(x, conv1_w, conv1_b, conv2_w, conv2_b, fc_w, fc_b,
                     bn1_g, bn1_b, bn2_g, bn2_b, bn3_g, bn3_b,
                     debug_spikes=False):
    """x: (T, N, C, 8, 8); weights in PyTorch layouts (OIHW / [out,in]).

    Returns logits (T, N, num_classes); with debug_spikes=True also returns the
    conv2 spike map (T*N, 768).  Conv/Linear biases are accepted but unused:
    training-mode BatchNorm subtracts the batch mean, which cancels an additive
    per-channel bias exactly (NOT valid for eval-mode / running-stat BN).
    """
    del conv1_b, conv2_b, fc_b
    T, N, C, H, W = x.shape
    assert (H, W) == (8, 8), "AuxiliaryHeadCIFAR assumes 8x8 input"
    C1 = conv1_w.shape[0]            # 128
    C2 = conv2_w.shape[0]            # 768
    NC = fc_w.shape[0]               # num_classes
    NCP = max(LANE, ((NC + LANE - 1) // LANE) * LANE)      # lane-dense classifier width
    TN = T * N

    # Native NCHW flattening (no transpose pass); layout fold happens in the
    # pooling matmul.  bf16 input halves the kernel's input DMA.
    x_flat = x.reshape(TN, C * H * W).astype(jnp.bfloat16)
    pmat = jnp.asarray(_pool_matrix(C, H, W), jnp.bfloat16)                 # (C*64, 4C)

    w1 = jnp.transpose(conv1_w.reshape(C1, C), (1, 0))                      # (C, 128)
    w1_blk = jnp.kron(jnp.eye(4, dtype=w1.dtype), w1).astype(jnp.bfloat16)  # (4C, 512)
    w2 = jnp.transpose(conv2_w, (2, 3, 1, 0)).reshape(4 * C1, C2).astype(jnp.bfloat16)
    w3 = jnp.zeros((C2, NCP), jnp.float32).at[:, :NC].set(
        jnp.transpose(fc_w, (1, 0))).astype(jnp.bfloat16)                   # (768, NCP)

    g1 = bn1_g.reshape(1, C1).astype(jnp.float32)
    b1 = bn1_b.reshape(1, C1).astype(jnp.float32)
    g2 = bn2_g.reshape(1, C2).astype(jnp.float32)
    b2 = bn2_b.reshape(1, C2).astype(jnp.float32)
    g3 = jnp.ones((1, NCP), jnp.float32).at[0, :NC].set(bn3_g.astype(jnp.float32))
    b3 = jnp.zeros((1, NCP), jnp.float32).at[0, :NC].set(bn3_b.astype(jnp.float32))

    out_shape = jax.ShapeDtypeStruct((TN, NCP), jnp.float32)
    if debug_spikes:
        out_shape = (out_shape, jax.ShapeDtypeStruct((TN, C2), jnp.float32))

    # Un-gridded call: single invocation, every operand single-buffered in VMEM,
    # no intermediate HBM round trips, BN statistics computed in-kernel.
    res = pl.pallas_call(
        functools.partial(_aux_head_kernel, T=T, N=N),
        out_shape=out_shape,
        compiler_params=pltpu.CompilerParams(vmem_limit_bytes=32 * 1024 * 1024),
    )(x_flat, pmat, w1_blk, g1, b1, w2, g2, b2, w3, g3, b3)

    if debug_spikes:
        logits_pad, s2 = res
        return logits_pad[:, :NC].reshape(T, N, NC), s2
    return res[:, :NC].reshape(T, N, NC)


if __name__ == "__main__":
    T, N, C, NUM_CLASSES = 2, 2, 64, 10
    H = W = 8
    key = jax.random.PRNGKey(0)
    ks = jax.random.split(key, 13)

    x = jax.random.normal(ks[0], (T, N, C, H, W), dtype=jnp.float32)

    def uinit(k, shape, fan_in):
        b = 1.0 / np.sqrt(fan_in)
        return jax.random.uniform(k, shape, jnp.float32, -b, b)

    conv1_w = uinit(ks[1], (128, C, 1, 1), C)
    conv1_b = uinit(ks[2], (128,), C)
    conv2_w = uinit(ks[3], (768, 128, 2, 2), 128 * 4)
    conv2_b = uinit(ks[4], (768,), 128 * 4)
    fc_w = uinit(ks[5], (NUM_CLASSES, 768), 768)
    fc_b = uinit(ks[6], (NUM_CLASSES,), 768)
    # BN affine params (fresh-module default is ones/zeros; use non-trivial values
    # so the affine path is exercised by the check)
    bn1_g = 1.0 + 0.1 * jax.random.normal(ks[7], (128,), jnp.float32)
    bn1_b = 0.05 * jax.random.normal(ks[8], (128,), jnp.float32)
    bn2_g = 1.0 + 0.1 * jax.random.normal(ks[9], (768,), jnp.float32)
    bn2_b = 0.05 * jax.random.normal(ks[10], (768,), jnp.float32)
    bn3_g = 1.0 + 0.1 * jax.random.normal(ks[11], (NUM_CLASSES,), jnp.float32)
    bn3_b = 0.05 * jax.random.normal(ks[12], (NUM_CLASSES,), jnp.float32)

    args = (x, conv1_w, conv1_b, conv2_w, conv2_b, fc_w, fc_b,
            bn1_g, bn1_b, bn2_g, bn2_b, bn3_g, bn3_b)

    # Production path: no debug writeback.
    out = jax.block_until_ready(aux_head_forward(*args))
    # Debug path (validation only): also returns conv2 spikes.
    out_dbg, s2_k = jax.block_until_ready(aux_head_forward(*args, debug_spikes=True))

    # ---------------- pure-JAX reference (same bf16-rounded inputs/weights) ------
    xq = x.astype(jnp.bfloat16).astype(jnp.float32)
    conv1_wq = conv1_w.astype(jnp.bfloat16).astype(jnp.float32)
    conv2_wq = conv2_w.astype(jnp.bfloat16).astype(jnp.float32)
    fc_wq = fc_w.astype(jnp.bfloat16).astype(jnp.float32)

    def lif_seq(y):                      # y: (T, ...) -> spikes (T, ...)
        v = jnp.zeros_like(y[0]); outs = []
        for t in range(T):
            v = v * DECAY + y[t]
            s = (v >= V_TH).astype(jnp.float32)
            outs.append(s)
            v = v * (1.0 - s)
        return jnp.stack(outs)

    def bn_train(y, g, b, axes):
        m = jnp.mean(y, axis=axes, keepdims=True)
        v = jnp.mean((y - m) ** 2, axis=axes, keepdims=True)
        shp = [1] * y.ndim; shp[1] = -1
        return (y - m) / jnp.sqrt(v + EPS) * g.reshape(shp) + b.reshape(shp)

    xf = xq.reshape(T * N, C, H, W)
    pooled = lax.reduce_window(xf, 0.0, lax.add, (1, 1, 5, 5), (1, 1, 3, 3),
                               'VALID') * (1.0 / 25.0)
    s_pool = lif_seq(pooled.reshape(T, N, C, 2, 2))
    y1 = lax.conv_general_dilated(s_pool.reshape(T * N, C, 2, 2), conv1_wq, (1, 1), 'VALID',
                                  dimension_numbers=("NCHW", "OIHW", "NCHW"))
    y1 = bn_train(y1 + conv1_b[None, :, None, None], bn1_g, bn1_b, (0, 2, 3))
    s1 = lif_seq(y1.reshape(T, N, 128, 2, 2))
    y2 = lax.conv_general_dilated(s1.reshape(T * N, 128, 2, 2), conv2_wq, (1, 1), 'VALID',
                                  dimension_numbers=("NCHW", "OIHW", "NCHW"))
    y2 = bn_train(y2 + conv2_b[None, :, None, None], bn2_g, bn2_b, (0, 2, 3))
    s2_ref = lif_seq(y2.reshape(T, N, 768, 1, 1)).reshape(T * N, 768)
    z_ref = s2_ref @ fc_wq.T + fc_b[None, :]
    ref = bn_train(z_ref, bn3_g, bn3_b, (0,)).reshape(T, N, NUM_CLASSES)

    # ---------------- checks ------------------------------------------------------
    assert out.shape == (T, N, NUM_CLASSES) and out.dtype == jnp.float32

    # (0) production and debug paths compute the same logits
    assert bool(jnp.allclose(out, out_dbg, atol=1e-5)), "debug/production mismatch"

    # (1) conv2 spikes agree (tiny tolerance for floats landing exactly on threshold)
    mismatch = float(jnp.mean((s2_k != s2_ref).astype(jnp.float32)))
    assert mismatch < 0.02, f"conv2 spike mismatch fraction {mismatch}"

    # (2) classifier (linear + BN1d) validated against the kernel's own spikes
    ref_from_k = bn_train(s2_k @ fc_wq.T + fc_b[None, :], bn3_g, bn3_b,
                          (0,)).reshape(T, N, NUM_CLASSES)
    assert bool(jnp.allclose(out_dbg, ref_from_k, atol=1e-3)), "classifier path mismatch"

    # (3) end-to-end check when no threshold flips occurred
    if mismatch == 0.0:
        assert bool(jnp.allclose(out, ref, atol=1e-3)), "end-to-end logits mismatch"

    print("KERNEL_OK")
</pallas_src>

<mosaic_0001>
module attributes {stable_mosaic.version = 11 : i64} {
  func.func @_aux_head_kernel(%arg0: memref<4x4096xbf16, #tpu.memory_space<vmem>>, %arg1: memref<4096x256xbf16, #tpu.memory_space<vmem>>, %arg2: memref<256x512xbf16, #tpu.memory_space<vmem>>, %arg3: memref<1x128xf32, #tpu.memory_space<vmem>>, %arg4: memref<1x128xf32, #tpu.memory_space<vmem>>, %arg5: memref<512x768xbf16, #tpu.memory_space<vmem>>, %arg6: memref<1x768xf32, #tpu.memory_space<vmem>>, %arg7: memref<1x768xf32, #tpu.memory_space<vmem>>, %arg8: memref<768x128xbf16, #tpu.memory_space<vmem>>, %arg9: memref<1x128xf32, #tpu.memory_space<vmem>>, %arg10: memref<1x128xf32, #tpu.memory_space<vmem>>, %arg11: memref<4x128xf32, #tpu.memory_space<vmem>>) attributes {dimension_semantics = [], scalar_prefetch = 0 : i64, scratch_operands = 0 : i64, tpu.core_type = #tpu.core_type<tc>} {
    %c0 = arith.constant 0 : index
    %c0_0 = arith.constant 0 : index
    %0 = vector.load %arg0[%c0, %c0_0] : memref<4x4096xbf16, #tpu.memory_space<vmem>>, vector<4x4096xbf16>
    %c0_1 = arith.constant 0 : index
    %c0_2 = arith.constant 0 : index
    %1 = vector.load %arg1[%c0_1, %c0_2] : memref<4096x256xbf16, #tpu.memory_space<vmem>>, vector<4096x256xbf16>
    %cst = arith.constant dense<0.000000e+00> : vector<4x256xf32>
    %2 = tpu.matmul %0, %1, %cst {dimension_numbers = #tpu.dot_dimension_numbers<[1], [0], [0], [1], [0, 0, 1, 1], [], []>} : vector<4x4096xbf16>, vector<4096x256xbf16>, vector<4x256xf32> -> vector<4x256xf32>
    %cst_3 = arith.constant 4.000000e-02 : f32
    %3 = vector.broadcast %cst_3 : f32 to vector<4x256xf32>
    %4 = arith.mulf %2, %3 : vector<4x256xf32>
    %cst_4 = arith.constant 0.000000e+00 : f32
    %5 = vector.broadcast %cst_4 : f32 to vector<2x256xf32>
    %6 = vector.extract_strided_slice %4 {offsets = [0, 0], sizes = [2, 256], strides = [1, 1]} : vector<4x256xf32> to vector<2x256xf32>
    %cst_5 = arith.constant 2.000000e-01 : f32
    %7 = vector.broadcast %cst_5 : f32 to vector<2x256xf32>
    %8 = arith.mulf %5, %7 : vector<2x256xf32>
    %9 = arith.addf %8, %6 : vector<2x256xf32>
    %cst_6 = arith.constant 5.000000e-01 : f32
    %10 = vector.broadcast %cst_6 : f32 to vector<2x256xf32>
    %11 = arith.cmpf oge, %9, %10 : vector<2x256xf32>
    %12 = arith.extui %11 : vector<2x256xi1> to vector<2x256xi32>
    %13 = arith.sitofp %12 : vector<2x256xi32> to vector<2x256xf32>
    %cst_7 = arith.constant 1.000000e+00 : f32
    %14 = vector.broadcast %cst_7 : f32 to vector<2x256xf32>
    %15 = arith.subf %14, %13 : vector<2x256xf32>
    %16 = arith.mulf %9, %15 : vector<2x256xf32>
    %17 = vector.extract_strided_slice %4 {offsets = [2, 0], sizes = [2, 256], strides = [1, 1]} : vector<4x256xf32> to vector<2x256xf32>
    %cst_8 = arith.constant 2.000000e-01 : f32
    %18 = vector.broadcast %cst_8 : f32 to vector<2x256xf32>
    %19 = arith.mulf %16, %18 : vector<2x256xf32>
    %20 = arith.addf %19, %17 : vector<2x256xf32>
    %cst_9 = arith.constant 5.000000e-01 : f32
    %21 = vector.broadcast %cst_9 : f32 to vector<2x256xf32>
    %22 = arith.cmpf oge, %20, %21 : vector<2x256xf32>
    %23 = arith.extui %22 : vector<2x256xi1> to vector<2x256xi32>
    %24 = arith.sitofp %23 : vector<2x256xi32> to vector<2x256xf32>
    %25 = tpu.concatenate %13, %24 in 0 : vector<2x256xf32>, vector<2x256xf32> -> vector<4x256xf32>
    %26 = arith.truncf %25 : vector<4x256xf32> to vector<4x256xbf16>
    %c0_10 = arith.constant 0 : index
    %c0_11 = arith.constant 0 : index
    %27 = vector.load %arg2[%c0_10, %c0_11] : memref<256x512xbf16, #tpu.memory_space<vmem>>, vector<256x512xbf16>
    %cst_12 = arith.constant dense<0.000000e+00> : vector<4x512xf32>
    %28 = tpu.matmul %26, %27, %cst_12 {dimension_numbers = #tpu.dot_dimension_numbers<[1], [0], [0], [1], [0, 0, 1, 1], [], []>} : vector<4x256xbf16>, vector<256x512xbf16>, vector<4x512xf32> -> vector<4x512xf32>
    %cst_13 = arith.constant dense<0.000000e+00> : vector<512xf32>
    %29 = vector.multi_reduction <add>, %28, %cst_13 [0] : vector<4x512xf32> to vector<512xf32>
    %30 = vector.shape_cast %29 : vector<512xf32> to vector<1x512xf32>
    %31 = vector.extract_strided_slice %30 {offsets = [0, 0], sizes = [1, 128], strides = [1, 1]} : vector<1x512xf32> to vector<1x128xf32>
    %32 = vector.extract_strided_slice %30 {offsets = [0, 128], sizes = [1, 128], strides = [1, 1]} : vector<1x512xf32> to vector<1x128xf32>
    %33 = arith.addf %31, %32 : vector<1x128xf32>
    %34 = vector.extract_strided_slice %30 {offsets = [0, 256], sizes = [1, 128], strides = [1, 1]} : vector<1x512xf32> to vector<1x128xf32>
    %35 = arith.addf %33, %34 : vector<1x128xf32>
    %36 = vector.extract_strided_slice %30 {offsets = [0, 384], sizes = [1, 128], strides = [1, 1]} : vector<1x512xf32> to vector<1x128xf32>
    %37 = arith.addf %35, %36 : vector<1x128xf32>
    %cst_14 = arith.constant 6.250000e-02 : f32
    %38 = vector.broadcast %cst_14 : f32 to vector<1x128xf32>
    %39 = arith.mulf %37, %38 : vector<1x128xf32>
    %40 = tpu.concatenate %39, %39, %39, %39 in 1 : vector<1x128xf32>, vector<1x128xf32>, vector<1x128xf32>, vector<1x128xf32> -> vector<1x512xf32>
    %41 = vector.broadcast %40 : vector<1x512xf32> to vector<4x512xf32>
    %42 = arith.subf %28, %41 : vector<4x512xf32>
    %43 = arith.mulf %42, %42 : vector<4x512xf32>
    %cst_15 = arith.constant dense<0.000000e+00> : vector<512xf32>
    %44 = vector.multi_reduction <add>, %43, %cst_15 [0] : vector<4x512xf32> to vector<512xf32>
    %45 = vector.shape_cast %44 : vector<512xf32> to vector<1x512xf32>
    %46 = vector.extract_strided_slice %45 {offsets = [0, 0], sizes = [1, 128], strides = [1, 1]} : vector<1x512xf32> to vector<1x128xf32>
    %47 = vector.extract_strided_slice %45 {offsets = [0, 128], sizes = [1, 128], strides = [1, 1]} : vector<1x512xf32> to vector<1x128xf32>
    %48 = arith.addf %46, %47 : vector<1x128xf32>
    %49 = vector.extract_strided_slice %45 {offsets = [0, 256], sizes = [1, 128], strides = [1, 1]} : vector<1x512xf32> to vector<1x128xf32>
    %50 = arith.addf %48, %49 : vector<1x128xf32>
    %51 = vector.extract_strided_slice %45 {offsets = [0, 384], sizes = [1, 128], strides = [1, 1]} : vector<1x512xf32> to vector<1x128xf32>
    %52 = arith.addf %50, %51 : vector<1x128xf32>
    %cst_16 = arith.constant 6.250000e-02 : f32
    %53 = vector.broadcast %cst_16 : f32 to vector<1x128xf32>
    %54 = arith.mulf %52, %53 : vector<1x128xf32>
    %c0_17 = arith.constant 0 : index
    %c0_18 = arith.constant 0 : index
    %55 = vector.load %arg3[%c0_17, %c0_18] : memref<1x128xf32, #tpu.memory_space<vmem>>, vector<1x128xf32>
    %cst_19 = arith.constant 9.99999974E-6 : f32
    %56 = vector.broadcast %cst_19 : f32 to vector<1x128xf32>
    %57 = arith.addf %54, %56 : vector<1x128xf32>
    %58 = math.rsqrt %57 : vector<1x128xf32>
    %59 = arith.mulf %55, %58 : vector<1x128xf32>
    %c0_20 = arith.constant 0 : index
    %c0_21 = arith.constant 0 : index
    %60 = vector.load %arg4[%c0_20, %c0_21] : memref<1x128xf32, #tpu.memory_space<vmem>>, vector<1x128xf32>
    %61 = arith.mulf %39, %59 : vector<1x128xf32>
    %62 = arith.subf %60, %61 : vector<1x128xf32>
    %63 = tpu.concatenate %59, %59, %59, %59 in 1 : vector<1x128xf32>, vector<1x128xf32>, vector<1x128xf32>, vector<1x128xf32> -> vector<1x512xf32>
    %64 = vector.broadcast %63 : vector<1x512xf32> to vector<4x512xf32>
    %65 = arith.mulf %28, %64 : vector<4x512xf32>
    %66 = tpu.concatenate %62, %62, %62, %62 in 1 : vector<1x128xf32>, vector<1x128xf32>, vector<1x128xf32>, vector<1x128xf32> -> vector<1x512xf32>
    %67 = vector.broadcast %66 : vector<1x512xf32> to vector<4x512xf32>
    %68 = arith.addf %65, %67 : vector<4x512xf32>
    %cst_22 = arith.constant 0.000000e+00 : f32
    %69 = vector.broadcast %cst_22 : f32 to vector<2x512xf32>
    %70 = vector.extract_strided_slice %68 {offsets = [0, 0], sizes = [2, 512], strides = [1, 1]} : vector<4x512xf32> to vector<2x512xf32>
    %cst_23 = arith.constant 2.000000e-01 : f32
    %71 = vector.broadcast %cst_23 : f32 to vector<2x512xf32>
    %72 = arith.mulf %69, %71 : vector<2x512xf32>
    %73 = arith.addf %72, %70 : vector<2x512xf32>
    %cst_24 = arith.constant 5.000000e-01 : f32
    %74 = vector.broadcast %cst_24 : f32 to vector<2x512xf32>
    %75 = arith.cmpf oge, %73, %74 : vector<2x512xf32>
    %76 = arith.extui %75 : vector<2x512xi1> to vector<2x512xi32>
    %77 = arith.sitofp %76 : vector<2x512xi32> to vector<2x512xf32>
    %cst_25 = arith.constant 1.000000e+00 : f32
    %78 = vector.broadcast %cst_25 : f32 to vector<2x512xf32>
    %79 = arith.subf %78, %77 : vector<2x512xf32>
    %80 = arith.mulf %73, %79 : vector<2x512xf32>
    %81 = vector.extract_strided_slice %68 {offsets = [2, 0], sizes = [2, 512], strides = [1, 1]} : vector<4x512xf32> to vector<2x512xf32>
    %cst_26 = arith.constant 2.000000e-01 : f32
    %82 = vector.broadcast %cst_26 : f32 to vector<2x512xf32>
    %83 = arith.mulf %80, %82 : vector<2x512xf32>
    %84 = arith.addf %83, %81 : vector<2x512xf32>
    %cst_27 = arith.constant 5.000000e-01 : f32
    %85 = vector.broadcast %cst_27 : f32 to vector<2x512xf32>
    %86 = arith.cmpf oge, %84, %85 : vector<2x512xf32>
    %87 = arith.extui %86 : vector<2x512xi1> to vector<2x512xi32>
    %88 = arith.sitofp %87 : vector<2x512xi32> to vector<2x512xf32>
    %89 = tpu.concatenate %77, %88 in 0 : vector<2x512xf32>, vector<2x512xf32> -> vector<4x512xf32>
    %90 = arith.truncf %89 : vector<4x512xf32> to vector<4x512xbf16>
    %c0_28 = arith.constant 0 : index
    %c0_29 = arith.constant 0 : index
    %91 = vector.load %arg5[%c0_28, %c0_29] : memref<512x768xbf16, #tpu.memory_space<vmem>>, vector<512x768xbf16>
    %cst_30 = arith.constant dense<0.000000e+00> : vector<4x768xf32>
    %92 = tpu.matmul %90, %91, %cst_30 {dimension_numbers = #tpu.dot_dimension_numbers<[1], [0], [0], [1], [0, 0, 1, 1], [], []>} : vector<4x512xbf16>, vector<512x768xbf16>, vector<4x768xf32> -> vector<4x768xf32>
    %cst_31 = arith.constant dense<0.000000e+00> : vector<768xf32>
    %93 = vector.multi_reduction <add>, %92, %cst_31 [0] : vector<4x768xf32> to vector<768xf32>
    %94 = vector.shape_cast %93 : vector<768xf32> to vector<1x768xf32>
    %cst_32 = arith.constant 4.000000e+00 : f32
    %95 = vector.broadcast %cst_32 : f32 to vector<1x768xf32>
    %96 = arith.divf %94, %95 : vector<1x768xf32>
    %97 = vector.broadcast %96 : vector<1x768xf32> to vector<4x768xf32>
    %98 = arith.subf %92, %97 : vector<4x768xf32>
    %99 = arith.mulf %98, %98 : vector<4x768xf32>
    %cst_33 = arith.constant dense<0.000000e+00> : vector<768xf32>
    %100 = vector.multi_reduction <add>, %99, %cst_33 [0] : vector<4x768xf32> to vector<768xf32>
    %101 = vector.shape_cast %100 : vector<768xf32> to vector<1x768xf32>
    %cst_34 = arith.constant 4.000000e+00 : f32
    %102 = vector.broadcast %cst_34 : f32 to vector<1x768xf32>
    %103 = arith.divf %101, %102 : vector<1x768xf32>
    %c0_35 = arith.constant 0 : index
    %c0_36 = arith.constant 0 : index
    %104 = vector.load %arg6[%c0_35, %c0_36] : memref<1x768xf32, #tpu.memory_space<vmem>>, vector<1x768xf32>
    %cst_37 = arith.constant 9.99999974E-6 : f32
    %105 = vector.broadcast %cst_37 : f32 to vector<1x768xf32>
    %106 = arith.addf %103, %105 : vector<1x768xf32>
    %107 = math.rsqrt %106 : vector<1x768xf32>
    %108 = arith.mulf %104, %107 : vector<1x768xf32>
    %c0_38 = arith.constant 0 : index
    %c0_39 = arith.constant 0 : index
    %109 = vector.load %arg7[%c0_38, %c0_39] : memref<1x768xf32, #tpu.memory_space<vmem>>, vector<1x768xf32>
    %110 = arith.mulf %96, %108 : vector<1x768xf32>
    %111 = arith.subf %109, %110 : vector<1x768xf32>
    %112 = vector.broadcast %108 : vector<1x768xf32> to vector<4x768xf32>
    %113 = arith.mulf %92, %112 : vector<4x768xf32>
    %114 = vector.broadcast %111 : vector<1x768xf32> to vector<4x768xf32>
    %115 = arith.addf %113, %114 : vector<4x768xf32>
    %cst_40 = arith.constant 0.000000e+00 : f32
    %116 = vector.broadcast %cst_40 : f32 to vector<2x768xf32>
    %117 = vector.extract_strided_slice %115 {offsets = [0, 0], sizes = [2, 768], strides = [1, 1]} : vector<4x768xf32> to vector<2x768xf32>
    %cst_41 = arith.constant 2.000000e-01 : f32
    %118 = vector.broadcast %cst_41 : f32 to vector<2x768xf32>
    %119 = arith.mulf %116, %118 : vector<2x768xf32>
    %120 = arith.addf %119, %117 : vector<2x768xf32>
    %cst_42 = arith.constant 5.000000e-01 : f32
    %121 = vector.broadcast %cst_42 : f32 to vector<2x768xf32>
    %122 = arith.cmpf oge, %120, %121 : vector<2x768xf32>
    %123 = arith.extui %122 : vector<2x768xi1> to vector<2x768xi32>
    %124 = arith.sitofp %123 : vector<2x768xi32> to vector<2x768xf32>
    %cst_43 = arith.constant 1.000000e+00 : f32
    %125 = vector.broadcast %cst_43 : f32 to vector<2x768xf32>
    %126 = arith.subf %125, %124 : vector<2x768xf32>
    %127 = arith.mulf %120, %126 : vector<2x768xf32>
    %128 = vector.extract_strided_slice %115 {offsets = [2, 0], sizes = [2, 768], strides = [1, 1]} : vector<4x768xf32> to vector<2x768xf32>
    %cst_44 = arith.constant 2.000000e-01 : f32
    %129 = vector.broadcast %cst_44 : f32 to vector<2x768xf32>
    %130 = arith.mulf %127, %129 : vector<2x768xf32>
    %131 = arith.addf %130, %128 : vector<2x768xf32>
    %cst_45 = arith.constant 5.000000e-01 : f32
    %132 = vector.broadcast %cst_45 : f32 to vector<2x768xf32>
    %133 = arith.cmpf oge, %131, %132 : vector<2x768xf32>
    %134 = arith.extui %133 : vector<2x768xi1> to vector<2x768xi32>
    %135 = arith.sitofp %134 : vector<2x768xi32> to vector<2x768xf32>
    %136 = tpu.concatenate %124, %135 in 0 : vector<2x768xf32>, vector<2x768xf32> -> vector<4x768xf32>
    %137 = arith.truncf %136 : vector<4x768xf32> to vector<4x768xbf16>
    %c0_46 = arith.constant 0 : index
    %c0_47 = arith.constant 0 : index
    %138 = vector.load %arg8[%c0_46, %c0_47] : memref<768x128xbf16, #tpu.memory_space<vmem>>, vector<768x128xbf16>
    %cst_48 = arith.constant dense<0.000000e+00> : vector<4x128xf32>
    %139 = tpu.matmul %137, %138, %cst_48 {dimension_numbers = #tpu.dot_dimension_numbers<[1], [0], [0], [1], [0, 0, 1, 1], [], []>} : vector<4x768xbf16>, vector<768x128xbf16>, vector<4x128xf32> -> vector<4x128xf32>
    %cst_49 = arith.constant dense<0.000000e+00> : vector<128xf32>
    %140 = vector.multi_reduction <add>, %139, %cst_49 [0] : vector<4x128xf32> to vector<128xf32>
    %141 = vector.shape_cast %140 : vector<128xf32> to vector<1x128xf32>
    %cst_50 = arith.constant 4.000000e+00 : f32
    %142 = vector.broadcast %cst_50 : f32 to vector<1x128xf32>
    %143 = arith.divf %141, %142 : vector<1x128xf32>
    %144 = vector.broadcast %143 : vector<1x128xf32> to vector<4x128xf32>
    %145 = arith.subf %139, %144 : vector<4x128xf32>
    %146 = arith.mulf %145, %145 : vector<4x128xf32>
    %cst_51 = arith.constant dense<0.000000e+00> : vector<128xf32>
    %147 = vector.multi_reduction <add>, %146, %cst_51 [0] : vector<4x128xf32> to vector<128xf32>
    %148 = vector.shape_cast %147 : vector<128xf32> to vector<1x128xf32>
    %cst_52 = arith.constant 4.000000e+00 : f32
    %149 = vector.broadcast %cst_52 : f32 to vector<1x128xf32>
    %150 = arith.divf %148, %149 : vector<1x128xf32>
    %c0_53 = arith.constant 0 : index
    %c0_54 = arith.constant 0 : index
    %151 = vector.load %arg9[%c0_53, %c0_54] : memref<1x128xf32, #tpu.memory_space<vmem>>, vector<1x128xf32>
    %cst_55 = arith.constant 9.99999974E-6 : f32
    %152 = vector.broadcast %cst_55 : f32 to vector<1x128xf32>
    %153 = arith.addf %150, %152 : vector<1x128xf32>
    %154 = math.rsqrt %153 : vector<1x128xf32>
    %155 = arith.mulf %151, %154 : vector<1x128xf32>
    %c0_56 = arith.constant 0 : index
    %c0_57 = arith.constant 0 : index
    %156 = vector.load %arg10[%c0_56, %c0_57] : memref<1x128xf32, #tpu.memory_space<vmem>>, vector<1x128xf32>
    %157 = arith.mulf %143, %155 : vector<1x128xf32>
    %158 = arith.subf %156, %157 : vector<1x128xf32>
    %159 = vector.broadcast %155 : vector<1x128xf32> to vector<4x128xf32>
    %160 = arith.mulf %139, %159 : vector<4x128xf32>
    %161 = vector.broadcast %158 : vector<1x128xf32> to vector<4x128xf32>
    %162 = arith.addf %160, %161 : vector<4x128xf32>
    %c0_58 = arith.constant 0 : index
    %c0_59 = arith.constant 0 : index
    %163 = vector.load %arg11[%c0_58, %c0_59] : memref<4x128xf32, #tpu.memory_space<vmem>>, vector<4x128xf32>
    tpu.vector_store %arg11[%c0_58, %c0_59], %162 {strides = array<i32>} : memref<4x128xf32, #tpu.memory_space<vmem>>, vector<4x128xf32>,
    return
  }
}

</mosaic_0001>

<bundles_post_ra>
// kernel: tpu_custom_call.1
= control target key start
LH: loop header
LB: loop body
LE: loop exit
PB: predicated region body
PF: predicated region fallthrough
CT: control target
= control target key end

     0   :  { %16 = vsyncpa [#allocation3], 0  ;;  %s9960_s0 = inlined_call_operand.hbm [shape: bf16[4,4096], index: 0, kind: input, shape index: {}]   ;;  %s9961_s1 = inlined_call_operand.hbm [shape: bf16[4096,256], index: 1, kind: input, shape index: {}]   ;;  %s9962_s2 = inlined_call_operand.hbm [shape: bf16[256,512], index: 2, kind: input, shape index: {}]   ;;  %s9963_s3 = inlined_call_operand.hbm [shape: f32[1,128], index: 3, kind: input, shape index: {}]   ;;  %s9964_s4 = inlined_call_operand.hbm [shape: f32[1,128], index: 4, kind: input, shape index: {}]   ;;  %s9965_s5 = inlined_call_operand.hbm [shape: bf16[512,768], index: 5, kind: input, shape index: {}]   ;;  %s9966_s6 = inlined_call_operand.hbm [shape: f32[1,768], index: 6, kind: input, shape index: {}]   ;;  %s9967_s7 = inlined_call_operand.hbm [shape: f32[1,768], index: 7, kind: input, shape index: {}]   ;;  %s9968_s8 = inlined_call_operand.hbm [shape: bf16[768,128], index: 8, kind: input, shape index: {}]   ;;  %s9969_s9 = inlined_call_operand.hbm [shape: f32[1,128], index: 9, kind: input, shape index: {}]   ;;  %s9970_s10 = inlined_call_operand.hbm [shape: f32[1,128], index: 10, kind: input, shape index: {}]   ;;  %s9971_s11 = inlined_call_operand.hbm [shape: f32[4,128], index: 11, kind: output, shape index: {}]  }
   0x1   :  { %17 = vsyncpa [#allocation6], 0 }
   0x2   :  { %18 = vsyncpa [#allocation9], 0 }
   0x3   :  { %19 = vsyncpa [#allocation12], 0 }
   0x4   :  { %20 = vsyncpa [#allocation15], 0 }
   0x5   :  { %21 = vsyncpa [#allocation18], 0 }
   0x6   :  { %22 = vsyncpa [#allocation4], 0  ;;  %s9552_s17 = smov [#allocation5]  }
   0x7   :  { %s38_s18 = sshll.u32 %s9552_s17, 4  ;;  %s39_s18 = int_to_ptr.vmem [resolvable:$true] %s38_s18 }
   0x8   :  { %s9306_s19 = scalar_lea.vmem %s39_s18, 65536  ;;  %p9311_p1 = scmp.lt.s32.totalorder %s39_s18, %s39_s18 }
   0x9   :  { %p9307_p0 = scmp.ne.s32.totalorder %s39_s18, %s9306_s19  ;;  %p9312_p2 = scmp.lt.s32.totalorder %s9306_s19, %s9306_s19 }
   0xb   :  { %p9313_p3 = por %p9312_p2, %p9311_p1 }
   0xd   :  { %p9314_p4 = pnand %p9313_p3, %p9307_p0 }
   0xf   :  { %9317 = shalt.err (!%p9314_p4)
}
  0x10   :  { %s9553_s20 = smov 128   ;;  %s9554_s21 = smov 8  }
  0x11   :  { %44 = dma.hbm_to_vmem [thread:$0]  %s9961_s1, 65536, %s39_s18, [#allocation6], %s9553_s20, %s9553_s20, %s9554_s21  }
  0x12   :  { %s9555_s24 = smov [#allocation8]   ;;  %s9556_s26 = smov [#allocation11]  }
  0x13   :  { %s63_s25 = sshll.u32 %s9555_s24, 4  ;;  %s82_s27 = sshll.u32 %s9556_s26, 4  ;;  %s64_s25 = int_to_ptr.vmem [resolvable:$true] %s63_s25  ;;  %s83_s27 = int_to_ptr.vmem [resolvable:$true] %s82_s27 }
  0x14   :  { %s9326_s28 = scalar_lea.vmem %s64_s25, 16  ;;  %s9330_s29 = scalar_lea.vmem %s64_s25, 32 }
  0x15   :  { %p9327_p5 = scmp.ne.s32.totalorder %s64_s25, %s9326_s28  ;;  %p9331_p6 = scmp.lt.s32.totalorder %s64_s25, %s64_s25 }
  0x16   :  { %p9332_p7 = scmp.lt.s32.totalorder %s9330_s29, %s9326_s28 }
  0x18   :  { %p9333_p8 = por %p9332_p7, %p9331_p6 }
  0x1a   :  { %p9334_p9 = pnand %p9333_p8, %p9327_p5 }
  0x1c   :  { %9337 = shalt.err (!%p9334_p9)
}
  0x1d   :  { %66 = dma.hbm_to_vmem [thread:$0]  %s9963_s3, 16, %s64_s25, [#allocation9]  }
  0x1e   :  { %s9346_s13 = scalar_lea.vmem %s83_s27, 24576  ;;  %p9351_p11 = scmp.lt.s32.totalorder %s83_s27, %s83_s27 }
  0x1f   :  { %p9347_p10 = scmp.ne.s32.totalorder %s83_s27, %s9346_s13  ;;  %p9352_p12 = scmp.lt.s32.totalorder %s9346_s13, %s9346_s13 }
  0x21   :  { %p9353_p13 = por %p9352_p12, %p9351_p11 }
  0x23   :  { %p9354_p0 = pnand %p9353_p13, %p9347_p10 }
  0x25   :  { %9357 = shalt.err (!%p9354_p0)
}
  0x26   :  { %s9557_s1 = smov 384   ;;  %s9558_s14 = smov 24  }
  0x27   :  { %88 = dma.hbm_to_vmem [thread:$0]  %s9965_s5, 24576, %s83_s27, [#allocation12], %s9557_s1, %s9557_s1, %s9558_s14  }
  0x28   :  { %s9559_s17 = smov [#allocation14]   ;;  %s9560_s19 = smov [#allocation17]  }
  0x29   :  { %s105_s18 = sshll.u32 %s9559_s17, 4  ;;  %s127_s20 = sshll.u32 %s9560_s19, 4  ;;  %s106_s18 = int_to_ptr.vmem [resolvable:$true] %s105_s18  ;;  %s128_s20 = int_to_ptr.vmem [resolvable:$true] %s127_s20 }
  0x2a   :  { %s9366_s3 = scalar_lea.vmem %s106_s18, 96  ;;  %p9371_p2 = scmp.lt.s32.totalorder %s106_s18, %s106_s18 }
  0x2b   :  { %p9367_p1 = scmp.ne.s32.totalorder %s106_s18, %s9366_s3  ;;  %p9372_p3 = scmp.lt.s32.totalorder %s9366_s3, %s9366_s3 }
  0x2d   :  { %p9373_p4 = por %p9372_p3, %p9371_p2 }
  0x2f   :  { %p9374_p5 = pnand %p9373_p4, %p9367_p1 }
  0x31   :  { %9377 = shalt.err (!%p9374_p5)
}
  0x32   :  { %108 = dma.hbm_to_vmem [thread:$0]  %s9967_s7, 96, %s106_s18, [#allocation15]  }
  0x33   :  { %s9386_s23 = scalar_lea.vmem %s128_s20, 16  ;;  %s9390_s5 = scalar_lea.vmem %s128_s20, 32 }
  0x34   :  { %p9387_p6 = scmp.ne.s32.totalorder %s128_s20, %s9386_s23  ;;  %p9391_p7 = scmp.lt.s32.totalorder %s128_s20, %s128_s20 }
  0x35   :  { %p9392_p8 = scmp.lt.s32.totalorder %s9390_s5, %s9386_s23 }
  0x37   :  { %p9393_p9 = por %p9392_p8, %p9391_p7 }
  0x39   :  { %p9394_p10 = pnand %p9393_p9, %p9387_p6 }
  0x3b   :  { %9397 = shalt.err (!%p9394_p10)
}
  0x3c   :  { %130 = dma.hbm_to_vmem [thread:$0]  %s9969_s9, 16, %s128_s20, [#allocation18]  }
  0x3d   :  { %s9561_s26 = smov [#allocation2]   ;;  %s9562_s28 = smov [#allocation7]  }
  0x3e   :  { %s29_s27 = sshll.u32 %s9561_s26, 4  ;;  %s50_s29 = sshll.u32 %s9562_s28, 4  ;;  %s30_s27 = int_to_ptr.vmem [resolvable:$true] %s29_s27  ;;  %s51_s29 = int_to_ptr.vmem [resolvable:$true] %s50_s29 }
  0x3f   :  { %s9406_s30 = scalar_lea.vmem %s30_s27, 1024  ;;  %p9411_p12 = scmp.lt.s32.totalorder %s30_s27, %s30_s27 }
  0x40   :  { %p9407_p11 = scmp.ne.s32.totalorder %s30_s27, %s9406_s30  ;;  %p9412_p13 = scmp.lt.s32.totalorder %s9406_s30, %s9406_s30 }
  0x42   :  { %p9413_p0 = por %p9412_p13, %p9411_p12 }
  0x44   :  { %p9414_p1 = pnand %p9413_p0, %p9407_p11 }
  0x46   :  { %9417 = shalt.err (!%p9414_p1)
}
  0x47   :  { %32 = dma.hbm_to_vmem [thread:$0]  %s9960_s0, 1024, %s30_s27, [#allocation3]  }
  0x48   :  { %s9426_s13 = scalar_lea.vmem %s51_s29, 8192  ;;  %p9431_p3 = scmp.lt.s32.totalorder %s51_s29, %s51_s29 }
  0x49   :  { %p9427_p2 = scmp.ne.s32.totalorder %s51_s29, %s9426_s13  ;;  %p9432_p4 = scmp.lt.s32.totalorder %s9426_s13, %s9426_s13 }
  0x4b   :  { %p9433_p5 = por %p9432_p4, %p9431_p3 }
  0x4d   :  { %p9434_p6 = pnand %p9433_p5, %p9427_p2 }
  0x4f   :  { %9437 = shalt.err (!%p9434_p6)
}
  0x50   :  { %s9563_s9 = smov 256   ;;  %s9564_s1 = smov 16  }
  0x51   :  { %56 = dma.hbm_to_vmem [thread:$0]  %s9962_s2, 8192, %s51_s29, [#allocation6], %s9563_s9, %s9563_s9, %s9564_s1  }
  0x52   :  { %s9565_s16 = smov [#allocation10]   ;;  %s9566_s18 = smov [#allocation13]  }
  0x53   :  { %s73_s17 = sshll.u32 %s9565_s16, 4  ;;  %s95_s19 = sshll.u32 %s9566_s18, 4  ;;  %s74_s17 = int_to_ptr.vmem [resolvable:$true] %s73_s17  ;;  %s96_s19 = int_to_ptr.vmem [resolvable:$true] %s95_s19 }
  0x54   :  { %s9446_s0 = scalar_lea.vmem %s74_s17, 16  ;;  %s9450_s20 = scalar_lea.vmem %s74_s17, 32 }
  0x55   :  { %p9447_p7 = scmp.ne.s32.totalorder %s74_s17, %s9446_s0  ;;  %p9451_p8 = scmp.lt.s32.totalorder %s74_s17, %s74_s17 }
  0x56   :  { %p9452_p9 = scmp.lt.s32.totalorder %s9450_s20, %s9446_s0 }
  0x58   :  { %p9453_p10 = por %p9452_p9, %p9451_p8 }
  0x5a   :  { %p9454_p11 = pnand %p9453_p10, %p9447_p7 }
  0x5c   :  { %9457 = shalt.err (!%p9454_p11)
}
  0x5d   :  { %76 = dma.hbm_to_vmem [thread:$0]  %s9964_s4, 16, %s74_s17, [#allocation9]  }
  0x5e   :  { %s9466_s22 = scalar_lea.vmem %s96_s19, 96  ;;  %p9471_p13 = scmp.lt.s32.totalorder %s96_s19, %s96_s19 }
  0x5f   :  { %p9467_p12 = scmp.ne.s32.totalorder %s96_s19, %s9466_s22  ;;  %p9472_p0 = scmp.lt.s32.totalorder %s9466_s22, %s9466_s22 }
  0x61   :  { %p9473_p1 = por %p9472_p0, %p9471_p13 }
  0x63   :  { %p9474_p2 = pnand %p9473_p1, %p9467_p12 }
  0x65   :  { %9477 = shalt.err (!%p9474_p2)
}
  0x66   :  { %98 = dma.hbm_to_vmem [thread:$0]  %s9966_s6, 96, %s96_s19, [#allocation12]  }
  0x67   :  { %s9567_s5 = smov [#allocation16]  }
  0x68   :  { %s114_s24 = sshll.u32 %s9567_s5, 4  ;;  %s115_s24 = int_to_ptr.vmem [resolvable:$true] %s114_s24 }
  0x69   :  { %s9486_s25 = scalar_lea.vmem %s115_s24, 6144  ;;  %p9491_p4 = scmp.lt.s32.totalorder %s115_s24, %s115_s24 }
  0x6a   :  { %p9487_p3 = scmp.ne.s32.totalorder %s115_s24, %s9486_s25  ;;  %p9492_p5 = scmp.lt.s32.totalorder %s9486_s25, %s9486_s25 }
  0x6c   :  { %p9493_p6 = por %p9492_p5, %p9491_p4 }
  0x6e   :  { %p9494_p7 = pnand %p9493_p6, %p9487_p3 }
  0x70   :  { %9497 = shalt.err (!%p9494_p7)
}
  0x71   :  { %s9568_s4 = smov 64   ;;  %s9569_s26 = smov 4  }
  0x72   :  { %120 = dma.hbm_to_vmem [thread:$0]  %s9968_s8, 6144, %s115_s24, [#allocation15], %s9568_s4, %s9568_s4, %s9569_s26  }
  0x73   :  { %s9570_s29 = smov [#allocation19]  }
  0x74   :  { %s137_s30 = sshll.u32 %s9570_s29, 4  ;;  %s138_s30 = int_to_ptr.vmem [resolvable:$true] %s137_s30 }
  0x75   :  { %s9506_s6 = scalar_lea.vmem %s138_s30, 16  ;;  %s9510_s7 = scalar_lea.vmem %s138_s30, 32 }
  0x76   :  { %p9507_p8 = scmp.ne.s32.totalorder %s138_s30, %s9506_s6  ;;  %p9511_p9 = scmp.lt.s32.totalorder %s138_s30, %s138_s30 }
  0x77   :  { %p9512_p10 = scmp.lt.s32.totalorder %s9510_s7, %s9506_s6 }
  0x79   :  { %p9513_p11 = por %p9512_p10, %p9511_p9 }
  0x7b   :  { %p9514_p12 = pnand %p9513_p11, %p9507_p8 }
  0x7d   :  { %9517 = shalt.err (!%p9514_p12)
}
  0x7e   :  { %140 = dma.hbm_to_vmem [thread:$0]  %s9970_s10, 16, %s138_s30, [#allocation18]  }
  0x7f   :  { %9538 = dma.done.wait [#allocation3], 1024  }
  0x80   :  { %9539 = vsyncadd [#allocation3], 4294966272 }
  0x81   :  { %9540 = dma.done.wait [#allocation6], 73728  }
  0x82   :  { %9541 = vsyncadd [#allocation6], 4294893568 }
  0x83   :  { %9542 = dma.done.wait [#allocation9], 32  }
  0x84   :  { %9543 = vsyncadd [#allocation9], 4294967264 }
  0x85   :  { %9544 = dma.done.wait [#allocation12], 24672  }
  0x86   :  { %9545 = vsyncadd [#allocation12], 4294942624 }
  0x87   :  { %9546 = dma.done.wait [#allocation15], 6240  }
  0x88   :  { %9547 = vsyncadd [#allocation15], 4294961056 }
  0x89   :  { %9548 = dma.done.wait [#allocation18], 32  }
  0x8a   :  { %9549 = vsyncadd [#allocation18], 4294967264  ;;  %v8074_v0 = vld [vmem:[#allocation5 + $0x74] ss:$8 sps:$4 sm:$0xff]   ;;  %v8078_v2 = vld [vmem:[#allocation5 + $0x70] ss:$8 sps:$4 sm:$0xff]   ;;  %v707_v38 = vlaneseq }
  0x8b   :  { %v8076_v1 = vld [vmem:[#allocation5 + $0x174] ss:$8 sps:$4 sm:$0xff]   ;;  %3431 = vmatprep.subr.bf16.mxu0 %v8074_v0  ;;  %v8079_v3 = vld [vmem:[#allocation5 + $0x170] ss:$8 sps:$4 sm:$0xff]   ;;  %v8080_v4 = vld [vmem:[#allocation5 + $0x64] ss:$8 sps:$4 sm:$0xff]  }
  0x8c   :  { %3472 = vmatprep.subr.bf16.mxu1 %v8076_v1  ;;  %3432 = vmatpush1.bf16.msra.mxu0 %v8078_v2  ;;  %v8082_v5 = vld [vmem:[#allocation5 + $0x164] ss:$8 sps:$4 sm:$0xff]   ;;  %v8084_v6 = vld [vmem:[#allocation5 + $0x60] ss:$8 sps:$4 sm:$0xff]   ;;  %v8086_v8 = vld [vmem:[#allocation5 + $0x54] ss:$8 sps:$4 sm:$0xff]  }
  0x8d   :  { %3473 = vmatpush1.bf16.msra.mxu1 %v8079_v3  ;;  %3433 = vmatprep.subr.bf16.mxu0 %v8080_v4  ;;  %v8085_v7 = vld [vmem:[#allocation5 + $0x160] ss:$8 sps:$4 sm:$0xff]   ;;  %v8088_v9 = vld [vmem:[#allocation5 + $0x154] ss:$8 sps:$4 sm:$0xff]   ;;  %v8090_v10 = vld [vmem:[#allocation5 + $0x50] ss:$8 sps:$4 sm:$0xff]  }
  0x8e   :  { %3474 = vmatprep.subr.bf16.mxu1 %v8082_v5  ;;  %v8091_v11 = vld [vmem:[#allocation5 + $0x150] ss:$8 sps:$4 sm:$0xff]   ;;  %v8092_v12 = vld [vmem:[#allocation5 + $0x44] ss:$8 sps:$4 sm:$0xff]   ;;  %v8096_v14 = vld [vmem:[#allocation5 + $0x40] ss:$8 sps:$4 sm:$0xff]  }
  0x8f   :  { %v8094_v13 = vld [vmem:[#allocation5 + $0x144] ss:$8 sps:$4 sm:$0xff]   ;;  %v8097_v15 = vld [vmem:[#allocation5 + $0x140] ss:$8 sps:$4 sm:$0xff]   ;;  %v8098_v16 = vld [vmem:[#allocation5 + $0x34] ss:$8 sps:$4 sm:$0xff]  }
  0x90   :  { %3434 = vmatpush1.bf16.msra.mxu0 %v8084_v6  ;;  %v8100_v17 = vld [vmem:[#allocation5 + $0x134] ss:$8 sps:$4 sm:$0xff]   ;;  %v8102_v18 = vld [vmem:[#allocation5 + $0x30] ss:$8 sps:$4 sm:$0xff]   ;;  %v8104_v20 = vld [vmem:[#allocation5 + $0x24] ss:$8 sps:$4 sm:$0xff]  }
  0x91   :  { %3475 = vmatpush1.bf16.msra.mxu1 %v8085_v7  ;;  %3435 = vmatprep.subr.bf16.mxu0 %v8086_v8  ;;  %v8103_v19 = vld [vmem:[#allocation5 + $0x130] ss:$8 sps:$4 sm:$0xff]   ;;  %v8106_v21 = vld [vmem:[#allocation5 + $0x124] ss:$8 sps:$4 sm:$0xff]   ;;  %v8108_v22 = vld [vmem:[#allocation5 + $0x20] ss:$8 sps:$4 sm:$0xff]  }
  0x92   :  { %3476 = vmatprep.subr.bf16.mxu1 %v8088_v9  ;;  %v8109_v23 = vld [vmem:[#allocation5 + $0x120] ss:$8 sps:$4 sm:$0xff]   ;;  %v8110_v24 = vld [vmem:[#allocation5 + $0x14] ss:$8 sps:$4 sm:$0xff]   ;;  %v8114_v26 = vld [vmem:[#allocation5 + $0x10] ss:$8 sps:$4 sm:$0xff]  }
  0x93   :  { %v8112_v25 = vld [vmem:[#allocation5 + $0x114] ss:$8 sps:$4 sm:$0xff]   ;;  %v8115_v27 = vld [vmem:[#allocation5 + $0x110] ss:$8 sps:$4 sm:$0xff]   ;;  %v8116_v28 = vld [vmem:[#allocation5 + $0x4] ss:$8 sps:$4 sm:$0xff]  }
  0x94   :  { %3436 = vmatpush1.bf16.msra.mxu0 %v8090_v10  ;;  %v8118_v29 = vld [vmem:[#allocation5 + $0x104] ss:$8 sps:$4 sm:$0xff]   ;;  %v8120_v30 = vld [vmem:[#allocation5] ss:$8 sps:$4 sm:$0xff]   ;;  %v8122_v32 = vld [vmem:[#allocation5 + $0xf4] ss:$8 sps:$4 sm:$0xff]  }
  0x95   :  { %3477 = vmatpush1.bf16.msra.mxu1 %v8091_v11  ;;  %3437 = vmatprep.subr.bf16.mxu0 %v8092_v12  ;;  %v8121_v31 = vld [vmem:[#allocation5 + $0x100] ss:$8 sps:$4 sm:$0xff]   ;;  %v8124_v33 = vld [vmem:[#allocation5 + $0x1f4] ss:$8 sps:$4 sm:$0xff]   ;;  %v8126_v34 = vld [vmem:[#allocation5 + $0xf0] ss:$8 sps:$4 sm:$0xff]  }
  0x96   :  { %3478 = vmatprep.subr.bf16.mxu1 %v8094_v13  ;;  %v8127_v35 = vld [vmem:[#allocation5 + $0x1f0] ss:$8 sps:$4 sm:$0xff]   ;;  %v9571_v36 = vmov 1983009808   ;;  %v8128_v39 = vld [vmem:[#allocation5 + $0xe4] ss:$8 sps:$4 sm:$0xff]  }
  0x97   :  { %v705_v37 = vunpack.c.l.s4 %v9571_v36  ;;  %v8130_v40 = vld [vmem:[#allocation5 + $0x1e4] ss:$8 sps:$4 sm:$0xff]   ;;  %v8132_v41 = vld [vmem:[#allocation5 + $0xe0] ss:$8 sps:$4 sm:$0xff]   ;;  %v9668_v43 = vshrl.u32 %v707_v38, 7  ;;  %vm4123_vm4 = vcmask 1041408  }
  0x98   :  { %3438 = vmatpush1.bf16.msra.mxu0 %v8096_v14  ;;  %v8133_v44 = vld [vmem:[#allocation5 + $0x1e0] ss:$8 sps:$4 sm:$0xff]   ;;  %v8134_v45 = vld [vmem:[#allocation5 + $0xd4] ss:$8 sps:$4 sm:$0xff]   ;;  %v8138_v47 = vld [vmem:[#allocation5 + $0xd0] ss:$8 sps:$4 sm:$0xff]  }
  0x99   :  { %3479 = vmatpush1.bf16.msra.mxu1 %v8097_v15  ;;  %3439 = vmatprep.subr.bf16.mxu0 %v8098_v16  ;;  %v706_v42 = vunpack.c.0.s8 %v705_v37  ;;  %v8136_v46 = vld [vmem:[#allocation5 + $0x1d4] ss:$8 sps:$4 sm:$0xff]   ;;  %v8139_v48 = vld [vmem:[#allocation5 + $0x1d0] ss:$8 sps:$4 sm:$0xff]   ;;  %v8140_v50 = vld [vmem:[#allocation5 + $0xc4] ss:$8 sps:$4 sm:$0xff]  }
  0x9a   :  { %3480 = vmatprep.subr.bf16.mxu1 %v8100_v17  ;;  %v8142_v51 = vld [vmem:[#allocation5 + $0x1c4] ss:$8 sps:$4 sm:$0xff]   ;;  %v8144_v53 = vld [vmem:[#allocation5 + $0xc0] ss:$8 sps:$4 sm:$0xff]   ;;  %v8146_v57 = vld [vmem:[#allocation5 + $0xb4] ss:$8 sps:$4 sm:$0xff]  }
  0x9b   :  { %v9671_v49 = vsub.s32 %v706_v42, %v9668_v43  ;;  %v175_v52 = vld [vmem:[#allocation2] sm:$0xff]  ;;  %v8148_v58 = vld [vmem:[#allocation5 + $0x1b4] ss:$8 sps:$4 sm:$0xff]   ;;  %v8150_v61 = vld [vmem:[#allocation5 + $0xb0] ss:$8 sps:$4 sm:$0xff]   ;;  %vm4594_vm5 = vcmask 1043456  }
  0x9c   :  { %3440 = vmatpush1.bf16.msra.mxu0 %v8102_v18  ;;  %v703_v55 = vcombine.high %v175_v52, %v175_v52  ;;  %v8145_v56 = vld [vmem:[#allocation5 + $0x1c0] ss:$8 sps:$4 sm:$0xff]   ;;  %v8151_v63 = vld [vmem:[#allocation5 + $0x1b0] ss:$8 sps:$4 sm:$0xff]   ;;  %v8152_v0 = vld [vmem:[#allocation5 + $0xa4] ss:$8 sps:$4 sm:$0xff]  }
  0x9d   :  { %3481 = vmatpush1.bf16.msra.mxu1 %v8103_v19  ;;  %3441 = vmatprep.subr.bf16.mxu0 %v8104_v20  ;;  %v710_v54 = vrot.slane %v175_v52, %v9671_v49  ;;  %v8154_v1 = vld [vmem:[#allocation5 + $0x1a4] ss:$8 sps:$4 sm:$0xff]   ;;  %v8156_v2 = vld [vmem:[#allocation5 + $0xa0] ss:$8 sps:$4 sm:$0xff]   ;;  %v8158_v4 = vld [vmem:[#allocation5 + $0x94] ss:$8 sps:$4 sm:$0xff]  }
  0x9e   :  { %3482 = vmatprep.subr.bf16.mxu1 %v8106_v21  ;;  %v717_v60 = vrot.slane %v703_v55, %v9671_v49  ;;  %v8157_v3 = vld [vmem:[#allocation5 + $0x1a0] ss:$8 sps:$4 sm:$0xff]   ;;  %v8160_v5 = vld [vmem:[#allocation5 + $0x194] ss:$8 sps:$4 sm:$0xff]   ;;  %v8162_v6 = vld [vmem:[#allocation5 + $0x90] ss:$8 sps:$4 sm:$0xff]  }
  0x9f   :  { %v718_v59 = vcombine.high %v710_v54, %v710_v54  ;;  %v8163_v7 = vld [vmem:[#allocation5 + $0x190] ss:$8 sps:$4 sm:$0xff]   ;;  %v8164_v8 = vld [vmem:[#allocation5 + $0x84] ss:$8 sps:$4 sm:$0xff]   ;;  %v8168_v10 = vld [vmem:[#allocation5 + $0x80] ss:$8 sps:$4 sm:$0xff]  }
  0xa0   :  { %3442 = vmatpush1.bf16.msra.mxu0 %v8108_v22  ;;  %v719_v62 = vcombine.high %v717_v60, %v717_v60  ;;  %v8166_v9 = vld [vmem:[#allocation5 + $0x184] ss:$8 sps:$4 sm:$0xff]   ;;  %v8169_v11 = vld [vmem:[#allocation5 + $0x180] ss:$8 sps:$4 sm:$0xff]   ;;  %v8173_v12 = vld [vmem:[#allocation5 + $0x274] ss:$8 sps:$4 sm:$0xff]  }
  0xa1   :  { %3483 = vmatpush1.bf16.msra.mxu1 %v8109_v23  ;;  %3443 = vmatprep.subr.bf16.mxu0 %v8110_v24  ;;  %v8176_v13 = vld [vmem:[#allocation5 + $0x374] ss:$8 sps:$4 sm:$0xff]   ;;  %v8171_v14 = vld [vmem:[#allocation5 + $0x270] ss:$8 sps:$4 sm:$0xff]   ;;  %v8179_v16 = vld [vmem:[#allocation5 + $0x264] ss:$8 sps:$4 sm:$0xff]  }
  0xa2   :  { %3484 = vmatprep.subr.bf16.mxu1 %v8112_v25  ;;  %3463 = vmatprep.mubr.bf16.mxu0 %v718_v59  ;;  %v8174_v15 = vld [vmem:[#allocation5 + $0x370] ss:$8 sps:$4 sm:$0xff]   ;;  %v8182_v17 = vld [vmem:[#allocation5 + $0x364] ss:$8 sps:$4 sm:$0xff]   ;;  %v8177_v18 = vld [vmem:[#allocation5 + $0x260] ss:$8 sps:$4 sm:$0xff]  }
  0xa3   :  { %3504 = vmatprep.mubr.bf16.mxu1 %v719_v62  ;;  %v8180_v19 = vld [vmem:[#allocation5 + $0x360] ss:$8 sps:$4 sm:$0xff]   ;;  %v8185_v20 = vld [vmem:[#allocation5 + $0x254] ss:$8 sps:$4 sm:$0xff]   ;;  %v8183_v22 = vld [vmem:[#allocation5 + $0x250] ss:$8 sps:$4 sm:$0xff]  }
  0xa4   :  { %3444 = vmatpush1.bf16.msra.mxu0 %v8114_v26  ;;  %v8188_v21 = vld [vmem:[#allocation5 + $0x354] ss:$8 sps:$4 sm:$0xff]   ;;  %v8186_v23 = vld [vmem:[#allocation5 + $0x350] ss:$8 sps:$4 sm:$0xff]   ;;  %v8191_v24 = vld [vmem:[#allocation5 + $0x244] ss:$8 sps:$4 sm:$0xff]  }
  0xa5   :  { %3485 = vmatpush1.bf16.msra.mxu1 %v8115_v27  ;;  %3445 = vmatprep.subr.bf16.mxu0 %v8116_v28  ;;  %v8194_v25 = vld [vmem:[#allocation5 + $0x344] ss:$8 sps:$4 sm:$0xff]   ;;  %v8189_v26 = vld [vmem:[#allocation5 + $0x240] ss:$8 sps:$4 sm:$0xff]   ;;  %v8197_v28 = vld [vmem:[#allocation5 + $0x234] ss:$8 sps:$4 sm:$0xff]  }
  0xa6   :  { %3486 = vmatprep.subr.bf16.mxu1 %v8118_v29  ;;  %v8192_v27 = vld [vmem:[#allocation5 + $0x340] ss:$8 sps:$4 sm:$0xff]   ;;  %v8200_v29 = vld [vmem:[#allocation5 + $0x334] ss:$8 sps:$4 sm:$0xff]   ;;  %v8210_v42 = vld [vmem:[#allocation5 + $0x310] ss:$8 sps:$4 sm:$0xff]  }
  0xa7   :  { %v8209_v36 = vld [vmem:[#allocation5 + $0x214] ss:$8 sps:$4 sm:$0xff]   ;;  %v176_v38 = vld [vmem:[#allocation2 + $0x8] sm:$0xff]  ;;  %v8222_v55 = vld [vmem:[#allocation5 + $0x3f0] ss:$8 sps:$4 sm:$0xff]   ;;  %s9574_s8 = smov [#allocation20]  }
  0xa8   :  { %3446 = vmatpush1.bf16.msra.mxu0 %v8120_v30  ;;  %v8195_v30 = vld [vmem:[#allocation5 + $0x230] ss:$8 sps:$4 sm:$0xff]   ;;  %v8212_v37 = vld [vmem:[#allocation5 + $0x314] ss:$8 sps:$4 sm:$0xff]   ;;  %v8228_v59 = vld [vmem:[#allocation5 + $0x3e0] ss:$8 sps:$4 sm:$0xff]  }
  0xa9   :  { %3487 = vmatpush1.bf16.msra.mxu1 %v8121_v31  ;;  %3447 = vmatprep.subr.bf16.mxu0 %v8122_v32  ;;  %v8198_v31 = vld [vmem:[#allocation5 + $0x330] ss:$8 sps:$4 sm:$0xff]   ;;  %v8203_v32 = vld [vmem:[#allocation5 + $0x224] ss:$8 sps:$4 sm:$0xff]   ;;  %v8221_v52 = vld [vmem:[#allocation5 + $0x2f4] ss:$8 sps:$4 sm:$0xff]  }
  0xaa   :  { %3488 = vmatprep.subr.bf16.mxu1 %v8124_v33  ;;  %v8206_v33 = vld [vmem:[#allocation5 + $0x324] ss:$8 sps:$4 sm:$0xff]   ;;  %v8231_v62 = vld [vmem:[#allocation5 + $0x2d0] ss:$8 sps:$4 sm:$0xff]   ;;  %s7131_s10 = sshll.u32 %s9574_s8, 4  ;;  %s7132_s10 = int_to_ptr.vmem [resolvable:$true] %s7131_s10 }
  0xab   :  { %s9518_s9 = scalar_lea.vmem %s7132_s10, 64  ;;  %p9523_p0 = scmp.lt.s32.totalorder %s7132_s10, %s7132_s10 }
  0xac   :  { %3448 = vmatpush2.bf16.msra.mxu0 %v8126_v34  ;;  %v8201_v34 = vld [vmem:[#allocation5 + $0x220] ss:$8 sps:$4 sm:$0xff]   ;;  %p9519_p13 = scmp.ne.s32.totalorder %s7132_s10, %s9518_s9  ;;  %p9524_p1 = scmp.lt.s32.totalorder %s9518_s9, %s9518_s9 }
  0xad   :  { %3489 = vmatpush2.bf16.msra.mxu1 %v8127_v35  ;;  %3449 = vmatprep.subr.bf16.mxu0 %v8128_v39  ;;  %v8204_v35 = vld [vmem:[#allocation5 + $0x320] ss:$8 sps:$4 sm:$0xff]   ;;  %v9676_v39 = vrot.slane %v176_v38, %v9671_v49 }
  0xae   :  { %3490 = vmatprep.subr.bf16.mxu1 %v8130_v40  ;;  %v720_v40 = vcombine.high %v176_v38, %v176_v38  ;;  %v8288_v38 = vld [vmem:[#allocation5 + $0x444] ss:$8 sps:$4 sm:$0xff]   ;;  %p9525_p2 = por %p9524_p1, %p9523_p0 }
  0xb0   :  { %3450 = vmatpush2.bf16.msra.mxu0 %v8132_v41  ;;  %v8207_v41 = vld [vmem:[#allocation5 + $0x210] ss:$8 sps:$4 sm:$0xff]   ;;  %p9526_p3 = pnand %p9525_p2, %p9519_p13 }
  0xb1   :  { %3491 = vmatpush2.bf16.msra.mxu1 %v8133_v44  ;;  %3451 = vmatprep.subr.bf16.mxu0 %v8134_v45  ;;  %v735_v44 = vcombine.high %v9676_v39, %v9676_v39  ;;  %v9681_v45 = vrot.slane %v720_v40, %v9671_v49  ;;  %v8286_v40 = vld [vmem:[#allocation5 + $0x440] ss:$8 sps:$4 sm:$0xff]  }
  0xb2   :  { %3492 = vmatprep.subr.bf16.mxu1 %v8136_v46  ;;  %v8215_v46 = vld [vmem:[#allocation5 + $0x204] ss:$8 sps:$4 sm:$0xff]  }
  0xb4   :  { %3452 = vmatpush2.bf16.msra.mxu0 %v8138_v47  ;;  %v8218_v47 = vld [vmem:[#allocation5 + $0x304] ss:$8 sps:$4 sm:$0xff]  }
  0xb5   :  { %3493 = vmatpush2.bf16.msra.mxu1 %v8139_v48  ;;  %3453 = vmatprep.subr.bf16.mxu0 %v8140_v50  ;;  %v736_v48 = vcombine.high %v9681_v45, %v9681_v45  ;;  %v8213_v50 = vld [vmem:[#allocation5 + $0x200] ss:$8 sps:$4 sm:$0xff]  }
  0xb6   :  { %3494 = vmatprep.subr.bf16.mxu1 %v8142_v51  ;;  %v8216_v51 = vld [vmem:[#allocation5 + $0x300] ss:$8 sps:$4 sm:$0xff]  }
  0xb8   :  { %3454 = vmatpush2.bf16.msra.mxu0 %v8144_v53  ;;  %v8224_v53 = vld [vmem:[#allocation5 + $0x3f4] ss:$8 sps:$4 sm:$0xff]  }
  0xb9   :  { %3495 = vmatpush2.bf16.msra.mxu1 %v8145_v56  ;;  %3455 = vmatprep.subr.bf16.mxu0 %v8146_v57  ;;  %v8227_v56 = vld [vmem:[#allocation5 + $0x2e4] ss:$8 sps:$4 sm:$0xff]  }
  0xba   :  { %3496 = vmatprep.subr.bf16.mxu1 %v8148_v58  ;;  %v8230_v57 = vld [vmem:[#allocation5 + $0x3e4] ss:$8 sps:$4 sm:$0xff]   ;;  %v8225_v58 = vld [vmem:[#allocation5 + $0x2e0] ss:$8 sps:$4 sm:$0xff]  }
  0xbc   :  { %3456 = vmatpush2.bf16.msra.mxu0 %v8150_v61  ;;  %v8236_v61 = vld [vmem:[#allocation5 + $0x3d4] ss:$8 sps:$4 sm:$0xff]  }
  0xbd   :  { %3497 = vmatpush2.bf16.msra.mxu1 %v8151_v63  ;;  %3457 = vmatprep.subr.bf16.mxu0 %v8152_v0  ;;  %v8234_v63 = vld [vmem:[#allocation5 + $0x3d0] ss:$8 sps:$4 sm:$0xff]   ;;  %v8239_v0 = vld [vmem:[#allocation5 + $0x2c4] ss:$8 sps:$4 sm:$0xff]  }
  0xbe   :  { %3498 = vmatprep.subr.bf16.mxu1 %v8154_v1  ;;  %v8242_v1 = vld [vmem:[#allocation5 + $0x3c4] ss:$8 sps:$4 sm:$0xff]  }
  0xc0   :  { %3458 = vmatpush2.bf16.msra.mxu0 %v8156_v2  ;;  %v8237_v2 = vld [vmem:[#allocation5 + $0x2c0] ss:$8 sps:$4 sm:$0xff]  }
  0xc1   :  { %3499 = vmatpush2.bf16.msra.mxu1 %v8157_v3  ;;  %3459 = vmatprep.subr.bf16.mxu0 %v8158_v4  ;;  %v8240_v3 = vld [vmem:[#allocation5 + $0x3c0] ss:$8 sps:$4 sm:$0xff]   ;;  %v8245_v4 = vld [vmem:[#allocation5 + $0x2b4] ss:$8 sps:$4 sm:$0xff]  }
  0xc2   :  { %3500 = vmatprep.subr.bf16.mxu1 %v8160_v5  ;;  %v8248_v5 = vld [vmem:[#allocation5 + $0x3b4] ss:$8 sps:$4 sm:$0xff]  }
  0xc4   :  { %3460 = vmatpush2.bf16.msra.mxu0 %v8162_v6  ;;  %v8243_v6 = vld [vmem:[#allocation5 + $0x2b0] ss:$8 sps:$4 sm:$0xff]  }
  0xc5   :  { %3501 = vmatpush2.bf16.msra.mxu1 %v8163_v7  ;;  %3461 = vmatprep.subr.bf16.mxu0 %v8164_v8  ;;  %v8246_v7 = vld [vmem:[#allocation5 + $0x3b0] ss:$8 sps:$4 sm:$0xff]   ;;  %v8251_v8 = vld [vmem:[#allocation5 + $0x2a4] ss:$8 sps:$4 sm:$0xff]  }
  0xc6   :  { %3502 = vmatprep.subr.bf16.mxu1 %v8166_v9  ;;  %v8254_v9 = vld [vmem:[#allocation5 + $0x3a4] ss:$8 sps:$4 sm:$0xff]  }
  0xc8   :  { %3462 = vmatpush2.bf16.msra.mxu0 %v8168_v10  ;;  %v8249_v10 = vld [vmem:[#allocation5 + $0x2a0] ss:$8 sps:$4 sm:$0xff]  }
  0xc9   :  { %3503 = vmatpush2.bf16.msra.mxu1 %v8169_v11  ;;  %3513 = vmatprep.subr.bf16.mxu0 %v8173_v12  ;;  %v8252_v11 = vld [vmem:[#allocation5 + $0x3a0] ss:$8 sps:$4 sm:$0xff]   ;;  %v8257_v12 = vld [vmem:[#allocation5 + $0x294] ss:$8 sps:$4 sm:$0xff]  }
  0xca   :  { %3554 = vmatprep.subr.bf16.mxu1 %v8176_v13  ;;  %v8260_v13 = vld [vmem:[#allocation5 + $0x394] ss:$8 sps:$4 sm:$0xff]  }
  0xcb   :  { %3464 = vmatmul.mubr.bf16.vlgmr.msra.gmra.mxu0 %v710_v54  ;;  %v8219_v54 = vld [vmem:[#allocation5 + $0x2f0] ss:$8 sps:$4 sm:$0xff]  }
  0xcc   :  { %3505 = vmatmul.mubr.bf16.vlgmr.msra.gmra.mxu1 %v717_v60  ;;  %3514 = vmatpush1.bf16.msra.mxu0 %v8171_v14  ;;  %v8233_v60 = vld [vmem:[#allocation5 + $0x2d4] ss:$8 sps:$4 sm:$0xff]   ;;  %v8255_v14 = vld [vmem:[#allocation5 + $0x290] ss:$8 sps:$4 sm:$0xff]  }
  0xcd   :  { %3555 = vmatpush1.bf16.msra.mxu1 %v8174_v15  ;;  %3515 = vmatprep.subr.bf16.mxu0 %v8179_v16  ;;  %v8258_v15 = vld [vmem:[#allocation5 + $0x390] ss:$8 sps:$4 sm:$0xff]   ;;  %v8263_v16 = vld [vmem:[#allocation5 + $0x284] ss:$8 sps:$4 sm:$0xff]  }
  0xce   :  { %3556 = vmatprep.subr.bf16.mxu1 %v8182_v17  ;;  %3545 = vmatprep.mubr.bf16.mxu0 %v735_v44  ;;  %v8266_v17 = vld [vmem:[#allocation5 + $0x384] ss:$8 sps:$4 sm:$0xff]   ;;  %v8297_v44 = vld [vmem:[#allocation5 + $0x534] ss:$8 sps:$4 sm:$0xff]  }
  0xcf   :  { %3586 = vmatprep.mubr.bf16.mxu1 %v736_v48  ;;  %v8303_v48 = vld [vmem:[#allocation5 + $0x524] ss:$8 sps:$4 sm:$0xff]  }
  0xd0   :  { %3516 = vmatpush1.bf16.msra.mxu0 %v8177_v18  ;;  %v8261_v18 = vld [vmem:[#allocation5 + $0x280] ss:$8 sps:$4 sm:$0xff]  }
  0xd1   :  { %3557 = vmatpush1.bf16.msra.mxu1 %v8180_v19  ;;  %3517 = vmatprep.subr.bf16.mxu0 %v8185_v20  ;;  %v8264_v19 = vld [vmem:[#allocation5 + $0x380] ss:$8 sps:$4 sm:$0xff]   ;;  %v8270_v20 = vld [vmem:[#allocation5 + $0x474] ss:$8 sps:$4 sm:$0xff]  }
  0xd2   :  { %3558 = vmatprep.subr.bf16.mxu1 %v8188_v21  ;;  %v8273_v21 = vld [vmem:[#allocation5 + $0x574] ss:$8 sps:$4 sm:$0xff]  }
  0xd4   :  { %3518 = vmatpush1.bf16.msra.mxu0 %v8183_v22  ;;  %v8268_v22 = vld [vmem:[#allocation5 + $0x470] ss:$8 sps:$4 sm:$0xff]  }
  0xd5   :  { %3559 = vmatpush1.bf16.msra.mxu1 %v8186_v23  ;;  %3519 = vmatprep.subr.bf16.mxu0 %v8191_v24  ;;  %v8271_v23 = vld [vmem:[#allocation5 + $0x570] ss:$8 sps:$4 sm:$0xff]   ;;  %v8276_v24 = vld [vmem:[#allocation5 + $0x464] ss:$8 sps:$4 sm:$0xff]  }
  0xd6   :  { %3560 = vmatprep.subr.bf16.mxu1 %v8194_v25  ;;  %v177_v25 = vld [vmem:[#allocation2 + $0x10] sm:$0xff] }
  0xd8   :  { %3520 = vmatpush1.bf16.msra.mxu0 %v8189_v26  ;;  %v8279_v26 = vld [vmem:[#allocation5 + $0x564] ss:$8 sps:$4 sm:$0xff]  }
  0xd9   :  { %3561 = vmatpush1.bf16.msra.mxu1 %v8192_v27  ;;  %3521 = vmatprep.subr.bf16.mxu0 %v8197_v28  ;;  %v9686_v27 = vrot.slane %v177_v25, %v9671_v49  ;;  %v737_v28 = vcombine.high %v177_v25, %v177_v25  ;;  %v8360_v25 = vld [vmem:[#allocation5 + $0x484] ss:$8 sps:$4 sm:$0xff]  }
  0xda   :  { %3562 = vmatprep.subr.bf16.mxu1 %v8200_v29  ;;  %v8274_v29 = vld [vmem:[#allocation5 + $0x460] ss:$8 sps:$4 sm:$0xff]  }
  0xdc   :  { %3522 = vmatpush1.bf16.msra.mxu0 %v8195_v30  ;;  %v752_v30 = vcombine.high %v9686_v27, %v9686_v27 }
  0xdd   :  { %3563 = vmatpush1.bf16.msra.mxu1 %v8198_v31  ;;  %3523 = vmatprep.subr.bf16.mxu0 %v8203_v32  ;;  %v9693_v31 = vrot.slane %v737_v28, %v9671_v49  ;;  %v8277_v32 = vld [vmem:[#allocation5 + $0x560] ss:$8 sps:$4 sm:$0xff]  }
  0xde   :  { %3564 = vmatprep.subr.bf16.mxu1 %v8206_v33  ;;  %v8282_v33 = vld [vmem:[#allocation5 + $0x454] ss:$8 sps:$4 sm:$0xff]  }
  0xe0   :  { %3524 = vmatpush1.bf16.msra.mxu0 %v8201_v34  ;;  %v8285_v34 = vld [vmem:[#allocation5 + $0x554] ss:$8 sps:$4 sm:$0xff]  }
  0xe1   :  { %3565 = vmatpush1.bf16.msra.mxu1 %v8204_v35  ;;  %3525 = vmatprep.subr.bf16.mxu0 %v8209_v36  ;;  %v753_v35 = vcombine.high %v9693_v31, %v9693_v31  ;;  %v8280_v36 = vld [vmem:[#allocation5 + $0x450] ss:$8 sps:$4 sm:$0xff]  }
  0xe2   :  { %3566 = vmatprep.subr.bf16.mxu1 %v8212_v37  ;;  %v8283_v37 = vld [vmem:[#allocation5 + $0x550] ss:$8 sps:$4 sm:$0xff]  }
  0xe4   :  { %3526 = vmatpush1.bf16.msra.mxu0 %v8207_v41  ;;  %v8289_v41 = vld [vmem:[#allocation5 + $0x540] ss:$8 sps:$4 sm:$0xff]  }
  0xe5   :  { %3567 = vmatpush1.bf16.msra.mxu1 %v8210_v42  ;;  %3527 = vmatprep.subr.bf16.mxu0 %v8215_v46  ;;  %v8294_v42 = vld [vmem:[#allocation5 + $0x434] ss:$8 sps:$4 sm:$0xff]   ;;  %v8295_v46 = vld [vmem:[#allocation5 + $0x530] ss:$8 sps:$4 sm:$0xff]  }
  0xe6   :  { %3568 = vmatprep.subr.bf16.mxu1 %v8218_v47  ;;  %v8300_v47 = vld [vmem:[#allocation5 + $0x424] ss:$8 sps:$4 sm:$0xff]  }
  0xe8   :  { %3528 = vmatpush1.bf16.msra.mxu0 %v8213_v50  ;;  %v8298_v50 = vld [vmem:[#allocation5 + $0x420] ss:$8 sps:$4 sm:$0xff]  }
  0xe9   :  { %3569 = vmatpush1.bf16.msra.mxu1 %v8216_v51  ;;  %3529 = vmatprep.subr.bf16.mxu0 %v8221_v52  ;;  %v8301_v51 = vld [vmem:[#allocation5 + $0x520] ss:$8 sps:$4 sm:$0xff]   ;;  %v8306_v52 = vld [vmem:[#allocation5 + $0x414] ss:$8 sps:$4 sm:$0xff]  }
  0xea   :  { %3570 = vmatprep.subr.bf16.mxu1 %v8224_v53  ;;  %v8309_v53 = vld [vmem:[#allocation5 + $0x514] ss:$8 sps:$4 sm:$0xff]  }
  0xec   :  { %3530 = vmatpush2.bf16.msra.mxu0 %v8219_v54  ;;  %v8304_v54 = vld [vmem:[#allocation5 + $0x410] ss:$8 sps:$4 sm:$0xff]  }
  0xed   :  { %3571 = vmatpush2.bf16.msra.mxu1 %v8222_v55  ;;  %3531 = vmatprep.subr.bf16.mxu0 %v8227_v56  ;;  %v8307_v55 = vld [vmem:[#allocation5 + $0x510] ss:$8 sps:$4 sm:$0xff]   ;;  %v8312_v56 = vld [vmem:[#allocation5 + $0x404] ss:$8 sps:$4 sm:$0xff]  }
  0xee   :  { %3572 = vmatprep.subr.bf16.mxu1 %v8230_v57  ;;  %v8315_v57 = vld [vmem:[#allocation5 + $0x504] ss:$8 sps:$4 sm:$0xff]  }
  0xf0   :  { %3532 = vmatpush2.bf16.msra.mxu0 %v8225_v58  ;;  %v8310_v58 = vld [vmem:[#allocation5 + $0x400] ss:$8 sps:$4 sm:$0xff]  }
  0xf1   :  { %3573 = vmatpush2.bf16.msra.mxu1 %v8228_v59  ;;  %3533 = vmatprep.subr.bf16.mxu0 %v8233_v60  ;;  %v8313_v59 = vld [vmem:[#allocation5 + $0x500] ss:$8 sps:$4 sm:$0xff]   ;;  %v8318_v60 = vld [vmem:[#allocation5 + $0x4f4] ss:$8 sps:$4 sm:$0xff]  }
  0xf2   :  { %3574 = vmatprep.subr.bf16.mxu1 %v8236_v61  ;;  %v8321_v61 = vld [vmem:[#allocation5 + $0x5f4] ss:$8 sps:$4 sm:$0xff]  }
  0xf4   :  { %3534 = vmatpush2.bf16.msra.mxu0 %v8231_v62  ;;  %v8316_v62 = vld [vmem:[#allocation5 + $0x4f0] ss:$8 sps:$4 sm:$0xff]  }
  0xf5   :  { %3575 = vmatpush2.bf16.msra.mxu1 %v8234_v63  ;;  %3535 = vmatprep.subr.bf16.mxu0 %v8239_v0  ;;  %v8319_v63 = vld [vmem:[#allocation5 + $0x5f0] ss:$8 sps:$4 sm:$0xff]   ;;  %v8324_v0 = vld [vmem:[#allocation5 + $0x4e4] ss:$8 sps:$4 sm:$0xff]  }
  0xf6   :  { %3576 = vmatprep.subr.bf16.mxu1 %v8242_v1  ;;  %v8327_v1 = vld [vmem:[#allocation5 + $0x5e4] ss:$8 sps:$4 sm:$0xff]  }
  0xf8   :  { %3536 = vmatpush2.bf16.msra.mxu0 %v8237_v2  ;;  %v8322_v2 = vld [vmem:[#allocation5 + $0x4e0] ss:$8 sps:$4 sm:$0xff]  }
  0xf9   :  { %3577 = vmatpush2.bf16.msra.mxu1 %v8240_v3  ;;  %3537 = vmatprep.subr.bf16.mxu0 %v8245_v4  ;;  %v8325_v3 = vld [vmem:[#allocation5 + $0x5e0] ss:$8 sps:$4 sm:$0xff]   ;;  %v8330_v4 = vld [vmem:[#allocation5 + $0x4d4] ss:$8 sps:$4 sm:$0xff]  }
  0xfa   :  { %3578 = vmatprep.subr.bf16.mxu1 %v8248_v5  ;;  %v8333_v5 = vld [vmem:[#allocation5 + $0x5d4] ss:$8 sps:$4 sm:$0xff]  }
  0xfc   :  { %3538 = vmatpush2.bf16.msra.mxu0 %v8243_v6  ;;  %v8328_v6 = vld [vmem:[#allocation5 + $0x4d0] ss:$8 sps:$4 sm:$0xff]  }
  0xfd   :  { %3579 = vmatpush2.bf16.msra.mxu1 %v8246_v7  ;;  %3539 = vmatprep.subr.bf16.mxu0 %v8251_v8  ;;  %v8331_v7 = vld [vmem:[#allocation5 + $0x5d0] ss:$8 sps:$4 sm:$0xff]   ;;  %v8336_v8 = vld [vmem:[#allocation5 + $0x4c4] ss:$8 sps:$4 sm:$0xff]  }
  0xfe   :  { %3580 = vmatprep.subr.bf16.mxu1 %v8254_v9  ;;  %v8339_v9 = vld [vmem:[#allocation5 + $0x5c4] ss:$8 sps:$4 sm:$0xff]  }
 0x100   :  { %3540 = vmatpush2.bf16.msra.mxu0 %v8249_v10  ;;  %v8334_v10 = vld [vmem:[#allocation5 + $0x4c0] ss:$8 sps:$4 sm:$0xff]  }
 0x101   :  { %3581 = vmatpush2.bf16.msra.mxu1 %v8252_v11  ;;  %3541 = vmatprep.subr.bf16.mxu0 %v8257_v12  ;;  %v8337_v11 = vld [vmem:[#allocation5 + $0x5c0] ss:$8 sps:$4 sm:$0xff]   ;;  %v8342_v12 = vld [vmem:[#allocation5 + $0x4b4] ss:$8 sps:$4 sm:$0xff]  }
 0x102   :  { %3582 = vmatprep.subr.bf16.mxu1 %v8260_v13  ;;  %v8345_v13 = vld [vmem:[#allocation5 + $0x5b4] ss:$8 sps:$4 sm:$0xff]  }
 0x104   :  { %3542 = vmatpush2.bf16.msra.mxu0 %v8255_v14  ;;  %v8340_v14 = vld [vmem:[#allocation5 + $0x4b0] ss:$8 sps:$4 sm:$0xff]  }
 0x105   :  { %3583 = vmatpush2.bf16.msra.mxu1 %v8258_v15  ;;  %3543 = vmatprep.subr.bf16.mxu0 %v8263_v16  ;;  %v8343_v15 = vld [vmem:[#allocation5 + $0x5b0] ss:$8 sps:$4 sm:$0xff]   ;;  %v8348_v16 = vld [vmem:[#allocation5 + $0x4a4] ss:$8 sps:$4 sm:$0xff]  }
 0x106   :  { %3584 = vmatprep.subr.bf16.mxu1 %v8266_v17  ;;  %v8351_v17 = vld [vmem:[#allocation5 + $0x5a4] ss:$8 sps:$4 sm:$0xff]  }
 0x108   :  { %3544 = vmatpush2.bf16.msra.mxu0 %v8261_v18  ;;  %v8346_v18 = vld [vmem:[#allocation5 + $0x4a0] ss:$8 sps:$4 sm:$0xff]  }
 0x109   :  { %3585 = vmatpush2.bf16.msra.mxu1 %v8264_v19  ;;  %3595 = vmatprep.subr.bf16.mxu0 %v8270_v20  ;;  %v8349_v19 = vld [vmem:[#allocation5 + $0x5a0] ss:$8 sps:$4 sm:$0xff]   ;;  %v8354_v20 = vld [vmem:[#allocation5 + $0x494] ss:$8 sps:$4 sm:$0xff]  }
 0x10a   :  { %3636 = vmatprep.subr.bf16.mxu1 %v8273_v21  ;;  %v8357_v21 = vld [vmem:[#allocation5 + $0x594] ss:$8 sps:$4 sm:$0xff]  }
 0x10b   :  { %3546 = vmatmul.mubr.bf16.vlgmr.msra.gmra.mxu0 %v9676_v39  ;;  %v8291_v39 = vld [vmem:[#allocation5 + $0x544] ss:$8 sps:$4 sm:$0xff]  }
 0x10c   :  { %3587 = vmatmul.mubr.bf16.vlgmr.msra.gmra.mxu1 %v9681_v45  ;;  %3596 = vmatpush1.bf16.msra.mxu0 %v8268_v22  ;;  %v8292_v45 = vld [vmem:[#allocation5 + $0x430] ss:$8 sps:$4 sm:$0xff]  }
 0x10d   :  { %3637 = vmatpush1.bf16.msra.mxu1 %v8271_v23  ;;  %3597 = vmatprep.subr.bf16.mxu0 %v8276_v24  ;;  %v8352_v22 = vld [vmem:[#allocation5 + $0x490] ss:$8 sps:$4 sm:$0xff]  }
 0x10e   :  { %3638 = vmatprep.subr.bf16.mxu1 %v8279_v26  ;;  %3627 = vmatprep.mubr.bf16.mxu0 %v752_v30  ;;  %v8355_v23 = vld [vmem:[#allocation5 + $0x590] ss:$8 sps:$4 sm:$0xff]   ;;  %v8363_v26 = vld [vmem:[#allocation5 + $0x584] ss:$8 sps:$4 sm:$0xff]   ;;  %v8361_v30 = vld [vmem:[#allocation5 + $0x580] ss:$8 sps:$4 sm:$0xff]  }
 0x10f   :  { %3668 = vmatprep.mubr.bf16.mxu1 %v753_v35  ;;  %v178_v24 = vld [vmem:[#allocation2 + $0x18] sm:$0xff] }
 0x110   :  { %3598 = vmatpush1.bf16.msra.mxu0 %v8274_v29  ;;  %v754_v28 = vcombine.high %v178_v24, %v178_v24  ;;  %v8358_v29 = vld [vmem:[#allocation5 + $0x480] ss:$8 sps:$4 sm:$0xff]  }
 0x111   :  { %3639 = vmatpush1.bf16.msra.mxu1 %v8277_v32  ;;  %3599 = vmatprep.subr.bf16.mxu0 %v8282_v33  ;;  %v8367_v32 = vld [vmem:[#allocation5 + $0x674] ss:$8 sps:$4 sm:$0xff]  }
 0x112   :  { %3640 = vmatprep.subr.bf16.mxu1 %v8285_v34  ;;  %v8370_v33 = vld [vmem:[#allocation5 + $0x774] ss:$8 sps:$4 sm:$0xff]   ;;  %v9698_v34 = vrot.slane %v178_v24, %v9671_v49  ;;  %v9701_v35 = vrot.slane %v754_v28, %v9671_v49  ;;  %v8445_v24 = vld [vmem:[#allocation5 + $0x6a4] ss:$8 sps:$4 sm:$0xff]   ;;  %v8446_v28 = vld [vmem:[#allocation5 + $0x7a0] ss:$8 sps:$4 sm:$0xff]  }
 0x114   :  { %3600 = vmatpush1.bf16.msra.mxu0 %v8280_v36  ;;  %v8365_v36 = vld [vmem:[#allocation5 + $0x670] ss:$8 sps:$4 sm:$0xff]  }
 0x115   :  { %3641 = vmatpush1.bf16.msra.mxu1 %v8283_v37  ;;  %3601 = vmatprep.subr.bf16.mxu0 %v8288_v38  ;;  %v8368_v37 = vld [vmem:[#allocation5 + $0x770] ss:$8 sps:$4 sm:$0xff]   ;;  %v8373_v38 = vld [vmem:[#allocation5 + $0x664] ss:$8 sps:$4 sm:$0xff]  }
 0x116   :  { %3642 = vmatprep.subr.bf16.mxu1 %v8291_v39  ;;  %v8376_v39 = vld [vmem:[#allocation5 + $0x764] ss:$8 sps:$4 sm:$0xff]  }
 0x118   :  { %3602 = vmatpush1.bf16.msra.mxu0 %v8286_v40  ;;  %v769_v40 = vcombine.high %v9698_v34, %v9698_v34 }
 0x119   :  { %3643 = vmatpush1.bf16.msra.mxu1 %v8289_v41  ;;  %3603 = vmatprep.subr.bf16.mxu0 %v8294_v42  ;;  %v770_v41 = vcombine.high %v9701_v35, %v9701_v35  ;;  %v8371_v42 = vld [vmem:[#allocation5 + $0x660] ss:$8 sps:$4 sm:$0xff]  }
 0x11a   :  { %3644 = vmatprep.subr.bf16.mxu1 %v8297_v44  ;;  %v8374_v44 = vld [vmem:[#allocation5 + $0x760] ss:$8 sps:$4 sm:$0xff]  }
 0x11c   :  { %3604 = vmatpush1.bf16.msra.mxu0 %v8292_v45  ;;  %v8379_v45 = vld [vmem:[#allocation5 + $0x654] ss:$8 sps:$4 sm:$0xff]  }
 0x11d   :  { %3645 = vmatpush1.bf16.msra.mxu1 %v8295_v46  ;;  %3605 = vmatprep.subr.bf16.mxu0 %v8300_v47  ;;  %v8382_v46 = vld [vmem:[#allocation5 + $0x754] ss:$8 sps:$4 sm:$0xff]   ;;  %v8377_v47 = vld [vmem:[#allocation5 + $0x650] ss:$8 sps:$4 sm:$0xff]  }
 0x11e   :  { %3646 = vmatprep.subr.bf16.mxu1 %v8303_v48  ;;  %v8380_v48 = vld [vmem:[#allocation5 + $0x750] ss:$8 sps:$4 sm:$0xff]  }
 0x120   :  { %3606 = vmatpush1.bf16.msra.mxu0 %v8298_v50  ;;  %v8385_v50 = vld [vmem:[#allocation5 + $0x644] ss:$8 sps:$4 sm:$0xff]  }
 0x121   :  { %3647 = vmatpush1.bf16.msra.mxu1 %v8301_v51  ;;  %3607 = vmatprep.subr.bf16.mxu0 %v8306_v52  ;;  %v8383_v51 = vld [vmem:[#allocation5 + $0x640] ss:$8 sps:$4 sm:$0xff]   ;;  %v8391_v52 = vld [vmem:[#allocation5 + $0x634] ss:$8 sps:$4 sm:$0xff]  }
 0x122   :  { %3648 = vmatprep.subr.bf16.mxu1 %v8309_v53  ;;  %v8394_v53 = vld [vmem:[#allocation5 + $0x734] ss:$8 sps:$4 sm:$0xff]  }
 0x124   :  { %3608 = vmatpush1.bf16.msra.mxu0 %v8304_v54  ;;  %v8389_v54 = vld [vmem:[#allocation5 + $0x630] ss:$8 sps:$4 sm:$0xff]  }
 0x125   :  { %3649 = vmatpush1.bf16.msra.mxu1 %v8307_v55  ;;  %3609 = vmatprep.subr.bf16.mxu0 %v8312_v56  ;;  %v8392_v55 = vld [vmem:[#allocation5 + $0x730] ss:$8 sps:$4 sm:$0xff]   ;;  %v8397_v56 = vld [vmem:[#allocation5 + $0x624] ss:$8 sps:$4 sm:$0xff]  }
 0x126   :  { %3650 = vmatprep.subr.bf16.mxu1 %v8315_v57  ;;  %v8400_v57 = vld [vmem:[#allocation5 + $0x724] ss:$8 sps:$4 sm:$0xff]  }
 0x128   :  { %3610 = vmatpush1.bf16.msra.mxu0 %v8310_v58  ;;  %v8395_v58 = vld [vmem:[#allocation5 + $0x620] ss:$8 sps:$4 sm:$0xff]  }
 0x129   :  { %3651 = vmatpush1.bf16.msra.mxu1 %v8313_v59  ;;  %3611 = vmatprep.subr.bf16.mxu0 %v8318_v60  ;;  %v8398_v59 = vld [vmem:[#allocation5 + $0x720] ss:$8 sps:$4 sm:$0xff]   ;;  %v8403_v60 = vld [vmem:[#allocation5 + $0x614] ss:$8 sps:$4 sm:$0xff]  }
 0x12a   :  { %3652 = vmatprep.subr.bf16.mxu1 %v8321_v61  ;;  %v8406_v61 = vld [vmem:[#allocation5 + $0x714] ss:$8 sps:$4 sm:$0xff]  }
 0x12c   :  { %3612 = vmatpush2.bf16.msra.mxu0 %v8316_v62  ;;  %v8401_v62 = vld [vmem:[#allocation5 + $0x610] ss:$8 sps:$4 sm:$0xff]  }
 0x12d   :  { %3653 = vmatpush2.bf16.msra.mxu1 %v8319_v63  ;;  %3613 = vmatprep.subr.bf16.mxu0 %v8324_v0  ;;  %v8404_v63 = vld [vmem:[#allocation5 + $0x710] ss:$8 sps:$4 sm:$0xff]   ;;  %v8409_v0 = vld [vmem:[#allocation5 + $0x604] ss:$8 sps:$4 sm:$0xff]  }
 0x12e   :  { %3654 = vmatprep.subr.bf16.mxu1 %v8327_v1  ;;  %v8412_v1 = vld [vmem:[#allocation5 + $0x704] ss:$8 sps:$4 sm:$0xff]  }
 0x130   :  { %3614 = vmatpush2.bf16.msra.mxu0 %v8322_v2  ;;  %v8407_v2 = vld [vmem:[#allocation5 + $0x600] ss:$8 sps:$4 sm:$0xff]  }
 0x131   :  { %3655 = vmatpush2.bf16.msra.mxu1 %v8325_v3  ;;  %3615 = vmatprep.subr.bf16.mxu0 %v8330_v4  ;;  %v8410_v3 = vld [vmem:[#allocation5 + $0x700] ss:$8 sps:$4 sm:$0xff]   ;;  %v8415_v4 = vld [vmem:[#allocation5 + $0x6f4] ss:$8 sps:$4 sm:$0xff]  }
 0x132   :  { %3656 = vmatprep.subr.bf16.mxu1 %v8333_v5  ;;  %v8418_v5 = vld [vmem:[#allocation5 + $0x7f4] ss:$8 sps:$4 sm:$0xff]  }
 0x134   :  { %3616 = vmatpush2.bf16.msra.mxu0 %v8328_v6  ;;  %v8413_v6 = vld [vmem:[#allocation5 + $0x6f0] ss:$8 sps:$4 sm:$0xff]  }
 0x135   :  { %3657 = vmatpush2.bf16.msra.mxu1 %v8331_v7  ;;  %3617 = vmatprep.subr.bf16.mxu0 %v8336_v8  ;;  %v8416_v7 = vld [vmem:[#allocation5 + $0x7f0] ss:$8 sps:$4 sm:$0xff]   ;;  %v8421_v8 = vld [vmem:[#allocation5 + $0x6e4] ss:$8 sps:$4 sm:$0xff]  }
 0x136   :  { %3658 = vmatprep.subr.bf16.mxu1 %v8339_v9  ;;  %v8424_v9 = vld [vmem:[#allocation5 + $0x7e4] ss:$8 sps:$4 sm:$0xff]  }
 0x138   :  { %3618 = vmatpush2.bf16.msra.mxu0 %v8334_v10  ;;  %v8419_v10 = vld [vmem:[#allocation5 + $0x6e0] ss:$8 sps:$4 sm:$0xff]  }
 0x139   :  { %3659 = vmatpush2.bf16.msra.mxu1 %v8337_v11  ;;  %3619 = vmatprep.subr.bf16.mxu0 %v8342_v12  ;;  %v8422_v11 = vld [vmem:[#allocation5 + $0x7e0] ss:$8 sps:$4 sm:$0xff]   ;;  %v8427_v12 = vld [vmem:[#allocation5 + $0x6d4] ss:$8 sps:$4 sm:$0xff]  }
 0x13a   :  { %3660 = vmatprep.subr.bf16.mxu1 %v8345_v13  ;;  %v8430_v13 = vld [vmem:[#allocation5 + $0x7d4] ss:$8 sps:$4 sm:$0xff]  }
 0x13c   :  { %3620 = vmatpush2.bf16.msra.mxu0 %v8340_v14  ;;  %v8425_v14 = vld [vmem:[#allocation5 + $0x6d0] ss:$8 sps:$4 sm:$0xff]  }
 0x13d   :  { %3661 = vmatpush2.bf16.msra.mxu1 %v8343_v15  ;;  %3621 = vmatprep.subr.bf16.mxu0 %v8348_v16  ;;  %v8428_v15 = vld [vmem:[#allocation5 + $0x7d0] ss:$8 sps:$4 sm:$0xff]   ;;  %v8433_v16 = vld [vmem:[#allocation5 + $0x6c4] ss:$8 sps:$4 sm:$0xff]  }
 0x13e   :  { %3662 = vmatprep.subr.bf16.mxu1 %v8351_v17  ;;  %v8436_v17 = vld [vmem:[#allocation5 + $0x7c4] ss:$8 sps:$4 sm:$0xff]  }
 0x140   :  { %3622 = vmatpush2.bf16.msra.mxu0 %v8346_v18  ;;  %v8431_v18 = vld [vmem:[#allocation5 + $0x6c0] ss:$8 sps:$4 sm:$0xff]  }
 0x141   :  { %3663 = vmatpush2.bf16.msra.mxu1 %v8349_v19  ;;  %3623 = vmatprep.subr.bf16.mxu0 %v8354_v20  ;;  %v8434_v19 = vld [vmem:[#allocation5 + $0x7c0] ss:$8 sps:$4 sm:$0xff]   ;;  %v8439_v20 = vld [vmem:[#allocation5 + $0x6b4] ss:$8 sps:$4 sm:$0xff]  }
 0x142   :  { %3664 = vmatprep.subr.bf16.mxu1 %v8357_v21  ;;  %v8442_v21 = vld [vmem:[#allocation5 + $0x7b4] ss:$8 sps:$4 sm:$0xff]  }
 0x144   :  { %3624 = vmatpush2.bf16.msra.mxu0 %v8352_v22  ;;  %v8437_v22 = vld [vmem:[#allocation5 + $0x6b0] ss:$8 sps:$4 sm:$0xff]  }
 0x145   :  { %3665 = vmatpush2.bf16.msra.mxu1 %v8355_v23  ;;  %3625 = vmatprep.subr.bf16.mxu0 %v8360_v25  ;;  %v8440_v23 = vld [vmem:[#allocation5 + $0x7b0] ss:$8 sps:$4 sm:$0xff]   ;;  %v8448_v25 = vld [vmem:[#allocation5 + $0x7a4] ss:$8 sps:$4 sm:$0xff]  }
 0x146   :  { %3666 = vmatprep.subr.bf16.mxu1 %v8363_v26  ;;  %v8443_v26 = vld [vmem:[#allocation5 + $0x6a0] ss:$8 sps:$4 sm:$0xff]  }
 0x148   :  { %3626 = vmatpush2.bf16.msra.mxu0 %v8358_v29  ;;  %v8451_v29 = vld [vmem:[#allocation5 + $0x694] ss:$8 sps:$4 sm:$0xff]  }
 0x149   :  { %3667 = vmatpush2.bf16.msra.mxu1 %v8361_v30  ;;  %3677 = vmatprep.subr.bf16.mxu0 %v8367_v32  ;;  %v8454_v30 = vld [vmem:[#allocation5 + $0x794] ss:$8 sps:$4 sm:$0xff]   ;;  %v8449_v32 = vld [vmem:[#allocation5 + $0x690] ss:$8 sps:$4 sm:$0xff]  }
 0x14a   :  { %3718 = vmatprep.subr.bf16.mxu1 %v8370_v33  ;;  %v179_v33 = vld [vmem:[#allocation2 + $0x20] sm:$0xff] }
 0x14b   :  { %3628 = vmatmul.mubr.bf16.vlgmr.msra.gmra.mxu0 %v9686_v27  ;;  %v8388_v27 = vld [vmem:[#allocation5 + $0x744] ss:$8 sps:$4 sm:$0xff]  }
 0x14c   :  { %3669 = vmatmul.mubr.bf16.vlgmr.msra.gmra.mxu1 %v9693_v31  ;;  %3678 = vmatpush1.bf16.msra.mxu0 %v8365_v36  ;;  %v8386_v31 = vld [vmem:[#allocation5 + $0x740] ss:$8 sps:$4 sm:$0xff]   ;;  %v8452_v36 = vld [vmem:[#allocation5 + $0x790] ss:$8 sps:$4 sm:$0xff]  }
 0x14d   :  { %3719 = vmatpush1.bf16.msra.mxu1 %v8368_v37  ;;  %3679 = vmatprep.subr.bf16.mxu0 %v8373_v38  ;;  %v8457_v37 = vld [vmem:[#allocation5 + $0x684] ss:$8 sps:$4 sm:$0xff]  }
 0x14e   :  { %3720 = vmatprep.subr.bf16.mxu1 %v8376_v39  ;;  %3709 = vmatprep.mubr.bf16.mxu0 %v769_v40  ;;  %v8460_v38 = vld [vmem:[#allocation5 + $0x784] ss:$8 sps:$4 sm:$0xff]   ;;  %v771_v39 = vcombine.high %v179_v33, %v179_v33  ;;  %v8455_v40 = vld [vmem:[#allocation5 + $0x680] ss:$8 sps:$4 sm:$0xff]  }
 0x14f   :  { %3750 = vmatprep.mubr.bf16.mxu1 %v770_v41  ;;  %v8458_v41 = vld [vmem:[#allocation5 + $0x780] ss:$8 sps:$4 sm:$0xff]  }
 0x150   :  { %3680 = vmatpush1.bf16.msra.mxu0 %v8371_v42  ;;  %v8464_v42 = vld [vmem:[#allocation5 + $0x874] ss:$8 sps:$4 sm:$0xff]  }
 0x151   :  { %3721 = vmatpush1.bf16.msra.mxu1 %v8374_v44  ;;  %3681 = vmatprep.subr.bf16.mxu0 %v8379_v45  ;;  %v8467_v44 = vld [vmem:[#allocation5 + $0x974] ss:$8 sps:$4 sm:$0xff]   ;;  %v9710_v45 = vrot.slane %v179_v33, %v9671_v49 }
 0x152   :  { %3722 = vmatprep.subr.bf16.mxu1 %v8382_v46  ;;  %v9713_v46 = vrot.slane %v771_v39, %v9671_v49  ;;  %v8527_v33 = vld [vmem:[#allocation5 + $0x9d4] ss:$8 sps:$4 sm:$0xff]   ;;  %v8533_v39 = vld [vmem:[#allocation5 + $0x9c4] ss:$8 sps:$4 sm:$0xff]  }
 0x154   :  { %3682 = vmatpush1.bf16.msra.mxu0 %v8377_v47  ;;  %v8462_v47 = vld [vmem:[#allocation5 + $0x870] ss:$8 sps:$4 sm:$0xff]  }
 0x155   :  { %3723 = vmatpush1.bf16.msra.mxu1 %v8380_v48  ;;  %3683 = vmatprep.subr.bf16.mxu0 %v8385_v50  ;;  %v8465_v48 = vld [vmem:[#allocation5 + $0x970] ss:$8 sps:$4 sm:$0xff]   ;;  %v8470_v50 = vld [vmem:[#allocation5 + $0x864] ss:$8 sps:$4 sm:$0xff]  }
 0x156   :  { %3724 = vmatprep.subr.bf16.mxu1 %v8388_v27  ;;  %v8473_v27 = vld [vmem:[#allocation5 + $0x964] ss:$8 sps:$4 sm:$0xff]  }
 0x158   :  { %3684 = vmatpush1.bf16.msra.mxu0 %v8383_v51  ;;  %v786_v51 = vcombine.high %v9710_v45, %v9710_v45 }
 0x159   :  { %3725 = vmatpush1.bf16.msra.mxu1 %v8386_v31  ;;  %3685 = vmatprep.subr.bf16.mxu0 %v8391_v52  ;;  %v787_v31 = vcombine.high %v9713_v46, %v9713_v46 }
 0x15a   :  { %3726 = vmatprep.subr.bf16.mxu1 %v8394_v53 }
 0x15c   :  { %3686 = vmatpush1.bf16.msra.mxu0 %v8389_v54  ;;  %v8468_v54 = vld [vmem:[#allocation5 + $0x860] ss:$8 sps:$4 sm:$0xff]  }
 0x15d   :  { %3727 = vmatpush1.bf16.msra.mxu1 %v8392_v55  ;;  %3687 = vmatprep.subr.bf16.mxu0 %v8397_v56  ;;  %v8471_v56 = vld [vmem:[#allocation5 + $0x960] ss:$8 sps:$4 sm:$0xff]  }
 0x15e   :  { %3728 = vmatprep.subr.bf16.mxu1 %v8400_v57  ;;  %v8476_v57 = vld [vmem:[#allocation5 + $0x854] ss:$8 sps:$4 sm:$0xff]  }
 0x160   :  { %3688 = vmatpush1.bf16.msra.mxu0 %v8395_v58 }
 0x161   :  { %3729 = vmatpush1.bf16.msra.mxu1 %v8398_v59  ;;  %3689 = vmatprep.subr.bf16.mxu0 %v8403_v60  ;;  %v8479_v60 = vld [vmem:[#allocation5 + $0x954] ss:$8 sps:$4 sm:$0xff]  }
 0x162   :  { %3730 = vmatprep.subr.bf16.mxu1 %v8406_v61 }
 0x164   :  { %3690 = vmatpush1.bf16.msra.mxu0 %v8401_v62  ;;  %v8474_v62 = vld [vmem:[#allocation5 + $0x850] ss:$8 sps:$4 sm:$0xff]  }
 0x165   :  { %3731 = vmatpush1.bf16.msra.mxu1 %v8404_v63  ;;  %3691 = vmatprep.subr.bf16.mxu0 %v8409_v0 }
 0x166   :  { %3732 = vmatprep.subr.bf16.mxu1 %v8412_v1 }
 0x168   :  { %3692 = vmatpush1.bf16.msra.mxu0 %v8407_v2  ;;  %v8482_v2 = vld [vmem:[#allocation5 + $0x844] ss:$8 sps:$4 sm:$0xff]  }
 0x169   :  { %3733 = vmatpush1.bf16.msra.mxu1 %v8410_v3  ;;  %3693 = vmatprep.subr.bf16.mxu0 %v8415_v4  ;;  %v8485_v3 = vld [vmem:[#allocation5 + $0x944] ss:$8 sps:$4 sm:$0xff]   ;;  %v8480_v4 = vld [vmem:[#allocation5 + $0x840] ss:$8 sps:$4 sm:$0xff]  }
 0x16a   :  { %3734 = vmatprep.subr.bf16.mxu1 %v8418_v5  ;;  %v8483_v5 = vld [vmem:[#allocation5 + $0x940] ss:$8 sps:$4 sm:$0xff]  }
 0x16c   :  { %3694 = vmatpush2.bf16.msra.mxu0 %v8413_v6  ;;  %v8488_v6 = vld [vmem:[#allocation5 + $0x834] ss:$8 sps:$4 sm:$0xff]  }
 0x16d   :  { %3735 = vmatpush2.bf16.msra.mxu1 %v8416_v7  ;;  %3695 = vmatprep.subr.bf16.mxu0 %v8421_v8  ;;  %v8491_v7 = vld [vmem:[#allocation5 + $0x934] ss:$8 sps:$4 sm:$0xff]   ;;  %v8486_v8 = vld [vmem:[#allocation5 + $0x830] ss:$8 sps:$4 sm:$0xff]  }
 0x16e   :  { %3736 = vmatprep.subr.bf16.mxu1 %v8424_v9  ;;  %v8489_v9 = vld [vmem:[#allocation5 + $0x930] ss:$8 sps:$4 sm:$0xff]  }
 0x170   :  { %3696 = vmatpush2.bf16.msra.mxu0 %v8419_v10  ;;  %v8494_v10 = vld [vmem:[#allocation5 + $0x824] ss:$8 sps:$4 sm:$0xff]  }
 0x171   :  { %3737 = vmatpush2.bf16.msra.mxu1 %v8422_v11  ;;  %3697 = vmatprep.subr.bf16.mxu0 %v8427_v12  ;;  %v8497_v11 = vld [vmem:[#allocation5 + $0x924] ss:$8 sps:$4 sm:$0xff]   ;;  %v8492_v12 = vld [vmem:[#allocation5 + $0x820] ss:$8 sps:$4 sm:$0xff]  }
 0x172   :  { %3738 = vmatprep.subr.bf16.mxu1 %v8430_v13  ;;  %v8495_v13 = vld [vmem:[#allocation5 + $0x920] ss:$8 sps:$4 sm:$0xff]  }
 0x174   :  { %3698 = vmatpush2.bf16.msra.mxu0 %v8425_v14  ;;  %v8500_v14 = vld [vmem:[#allocation5 + $0x814] ss:$8 sps:$4 sm:$0xff]  }
 0x175   :  { %3739 = vmatpush2.bf16.msra.mxu1 %v8428_v15  ;;  %3699 = vmatprep.subr.bf16.mxu0 %v8433_v16  ;;  %v8503_v15 = vld [vmem:[#allocation5 + $0x914] ss:$8 sps:$4 sm:$0xff]   ;;  %v8498_v16 = vld [vmem:[#allocation5 + $0x810] ss:$8 sps:$4 sm:$0xff]  }
 0x176   :  { %3740 = vmatprep.subr.bf16.mxu1 %v8436_v17  ;;  %v8501_v17 = vld [vmem:[#allocation5 + $0x910] ss:$8 sps:$4 sm:$0xff]  }
 0x178   :  { %3700 = vmatpush2.bf16.msra.mxu0 %v8431_v18  ;;  %v8506_v18 = vld [vmem:[#allocation5 + $0x804] ss:$8 sps:$4 sm:$0xff]  }
 0x179   :  { %3741 = vmatpush2.bf16.msra.mxu1 %v8434_v19  ;;  %3701 = vmatprep.subr.bf16.mxu0 %v8439_v20  ;;  %v8509_v19 = vld [vmem:[#allocation5 + $0x904] ss:$8 sps:$4 sm:$0xff]   ;;  %v8504_v20 = vld [vmem:[#allocation5 + $0x800] ss:$8 sps:$4 sm:$0xff]  }
 0x17a   :  { %3742 = vmatprep.subr.bf16.mxu1 %v8442_v21  ;;  %v8507_v21 = vld [vmem:[#allocation5 + $0x900] ss:$8 sps:$4 sm:$0xff]  }
 0x17c   :  { %3702 = vmatpush2.bf16.msra.mxu0 %v8437_v22  ;;  %v8512_v22 = vld [vmem:[#allocation5 + $0x8f4] ss:$8 sps:$4 sm:$0xff]  }
 0x17d   :  { %3743 = vmatpush2.bf16.msra.mxu1 %v8440_v23  ;;  %3703 = vmatprep.subr.bf16.mxu0 %v8445_v24  ;;  %v8515_v23 = vld [vmem:[#allocation5 + $0x9f4] ss:$8 sps:$4 sm:$0xff]   ;;  %v8510_v24 = vld [vmem:[#allocation5 + $0x8f0] ss:$8 sps:$4 sm:$0xff]  }
 0x17e   :  { %3744 = vmatprep.subr.bf16.mxu1 %v8448_v25  ;;  %v8513_v25 = vld [vmem:[#allocation5 + $0x9f0] ss:$8 sps:$4 sm:$0xff]  }
 0x180   :  { %3704 = vmatpush2.bf16.msra.mxu0 %v8443_v26  ;;  %v8518_v26 = vld [vmem:[#allocation5 + $0x8e4] ss:$8 sps:$4 sm:$0xff]  }
 0x181   :  { %3745 = vmatpush2.bf16.msra.mxu1 %v8446_v28  ;;  %3705 = vmatprep.subr.bf16.mxu0 %v8451_v29  ;;  %v8521_v28 = vld [vmem:[#allocation5 + $0x9e4] ss:$8 sps:$4 sm:$0xff]   ;;  %v8516_v29 = vld [vmem:[#allocation5 + $0x8e0] ss:$8 sps:$4 sm:$0xff]  }
 0x182   :  { %3746 = vmatprep.subr.bf16.mxu1 %v8454_v30  ;;  %v8519_v30 = vld [vmem:[#allocation5 + $0x9e0] ss:$8 sps:$4 sm:$0xff]  }
 0x184   :  { %3706 = vmatpush2.bf16.msra.mxu0 %v8449_v32  ;;  %v8524_v32 = vld [vmem:[#allocation5 + $0x8d4] ss:$8 sps:$4 sm:$0xff]  }
 0x185   :  { %3747 = vmatpush2.bf16.msra.mxu1 %v8452_v36  ;;  %3707 = vmatprep.subr.bf16.mxu0 %v8457_v37  ;;  %v8522_v36 = vld [vmem:[#allocation5 + $0x8d0] ss:$8 sps:$4 sm:$0xff]  }
 0x186   :  { %3748 = vmatprep.subr.bf16.mxu1 %v8460_v38  ;;  %v8525_v37 = vld [vmem:[#allocation5 + $0x9d0] ss:$8 sps:$4 sm:$0xff]   ;;  %v8530_v38 = vld [vmem:[#allocation5 + $0x8c4] ss:$8 sps:$4 sm:$0xff]  }
 0x188   :  { %3708 = vmatpush2.bf16.msra.mxu0 %v8455_v40  ;;  %v8528_v40 = vld [vmem:[#allocation5 + $0x8c0] ss:$8 sps:$4 sm:$0xff]  }
 0x189   :  { %3749 = vmatpush2.bf16.msra.mxu1 %v8458_v41  ;;  %3759 = vmatprep.subr.bf16.mxu0 %v8464_v42  ;;  %v8531_v41 = vld [vmem:[#allocation5 + $0x9c0] ss:$8 sps:$4 sm:$0xff]   ;;  %v8536_v42 = vld [vmem:[#allocation5 + $0x8b4] ss:$8 sps:$4 sm:$0xff]  }
 0x18a   :  { %3800 = vmatprep.subr.bf16.mxu1 %v8467_v44  ;;  %v8539_v44 = vld [vmem:[#allocation5 + $0x9b4] ss:$8 sps:$4 sm:$0xff]  }
 0x18b   :  { %v3465_v52 = vpop.f32.mrf.mxu0  ;;  %3710 = vmatmul.mubr.bf16.vlgmr.msra.gmra.mxu0 %v9698_v34 }
 0x18c   :  { %v3506_v53 = vpop.f32.mrf.mxu1  ;;  %3751 = vmatmul.mubr.bf16.vlgmr.msra.gmra.mxu1 %v9701_v35  ;;  %3760 = vmatpush1.bf16.msra.mxu0 %v8462_v47  ;;  %v8477_v35 = vld [vmem:[#allocation5 + $0x950] ss:$8 sps:$4 sm:$0xff]  }
 0x18d   :  { %v9721_v55 = vadd.f32 %v3506_v53, %v3465_v52  ;;  %3801 = vmatpush1.bf16.msra.mxu1 %v8465_v48  ;;  %v3467_v58 = vpop.f32.mrf.mxu0  ;;  %3761 = vmatprep.subr.bf16.mxu0 %v8470_v50  ;;  %v8534_v47 = vld [vmem:[#allocation5 + $0x8b0] ss:$8 sps:$4 sm:$0xff]   ;;  %v8542_v50 = vld [vmem:[#allocation5 + $0x8a4] ss:$8 sps:$4 sm:$0xff]   ;;  %v8548_v52 = vld [vmem:[#allocation5 + $0x894] ss:$8 sps:$4 sm:$0xff]  }
 0x18e   :  { %v3508_v59 = vpop.f32.mrf.mxu1  ;;  %3802 = vmatprep.subr.bf16.mxu1 %v8473_v27  ;;  %3791 = vmatprep.mubr.bf16.mxu0 %v786_v51  ;;  %v8537_v48 = vld [vmem:[#allocation5 + $0x9b0] ss:$8 sps:$4 sm:$0xff]   ;;  %v8545_v27 = vld [vmem:[#allocation5 + $0x9a4] ss:$8 sps:$4 sm:$0xff]   ;;  %v8540_v51 = vld [vmem:[#allocation5 + $0x8a0] ss:$8 sps:$4 sm:$0xff]  }
 0x18f   :  { %v9723_v61 = vadd.f32 %v3508_v59, %v3467_v58  ;;  %3832 = vmatprep.mubr.bf16.mxu1 %v787_v31  ;;  %v3469_v34 = vpop.f32.mrf.mxu0  ;;  %v8543_v31 = vld [vmem:[#allocation5 + $0x9a0] ss:$8 sps:$4 sm:$0xff]   ;;  %v8551_v53 = vld [vmem:[#allocation5 + $0x994] ss:$8 sps:$4 sm:$0xff]   ;;  %v8554_v58 = vld [vmem:[#allocation5 + $0x884] ss:$8 sps:$4 sm:$0xff]  }
 0x190   :  { %v3510_v63 = vpop.f32.mrf.mxu1  ;;  %3762 = vmatpush1.bf16.msra.mxu0 %v8468_v54  ;;  %v180_v54 = vld [vmem:[#allocation2 + $0x28] sm:$0xff] }
 0x191   :  { %3803 = vmatpush1.bf16.msra.mxu1 %v8471_v56  ;;  %v3470_v0 = vpop.f32.mrf.mxu0  ;;  %3763 = vmatprep.subr.bf16.mxu0 %v8476_v57  ;;  %v8546_v56 = vld [vmem:[#allocation5 + $0x890] ss:$8 sps:$4 sm:$0xff]   ;;  %v8557_v59 = vld [vmem:[#allocation5 + $0x984] ss:$8 sps:$4 sm:$0xff]   ;;  %v8555_v34 = vld [vmem:[#allocation5 + $0x980] ss:$8 sps:$4 sm:$0xff]  }
 0x192   :  { %v3511_v1 = vpop.f32.mrf.mxu1  ;;  %3804 = vmatprep.subr.bf16.mxu1 %v8479_v60  ;;  %v8549_v57 = vld [vmem:[#allocation5 + $0x990] ss:$8 sps:$4 sm:$0xff]   ;;  %v788_v60 = vcombine.high %v180_v54, %v180_v54  ;;  %v8561_v63 = vld [vmem:[#allocation5 + $0xa74] ss:$8 sps:$4 sm:$0xff]  }
 0x193   :  { %v8559_v0 = vld [vmem:[#allocation5 + $0xa70] ss:$8 sps:$4 sm:$0xff]  }
 0x194   :  { %3764 = vmatpush1.bf16.msra.mxu0 %v8474_v62  ;;  %v8552_v62 = vld [vmem:[#allocation5 + $0x880] ss:$8 sps:$4 sm:$0xff]   ;;  %v8562_v1 = vld [vmem:[#allocation5 + $0xb70] ss:$8 sps:$4 sm:$0xff]  }
 0x195   :  { %3805 = vmatpush1.bf16.msra.mxu1 %v8477_v35  ;;  %3765 = vmatprep.subr.bf16.mxu0 %v8482_v2  ;;  %v8564_v35 = vld [vmem:[#allocation5 + $0xb74] ss:$8 sps:$4 sm:$0xff]   ;;  %v9726_v2 = vrot.slane %v180_v54, %v9671_v49  ;;  %v8613_v54 = vld [vmem:[#allocation5 + $0xae0] ss:$8 sps:$4 sm:$0xff]  }
 0x196   :  { %3806 = vmatprep.subr.bf16.mxu1 %v8485_v3  ;;  %v9729_v3 = vrot.slane %v788_v60, %v9671_v49  ;;  %v8622_v60 = vld [vmem:[#allocation5 + $0xbd0] ss:$8 sps:$4 sm:$0xff]  }
 0x198   :  { %3766 = vmatpush1.bf16.msra.mxu0 %v8480_v4  ;;  %v8567_v4 = vld [vmem:[#allocation5 + $0xa64] ss:$8 sps:$4 sm:$0xff]  }
 0x199   :  { %3807 = vmatpush1.bf16.msra.mxu1 %v8483_v5  ;;  %3767 = vmatprep.subr.bf16.mxu0 %v8488_v6  ;;  %v8570_v5 = vld [vmem:[#allocation5 + $0xb64] ss:$8 sps:$4 sm:$0xff]   ;;  %v8565_v6 = vld [vmem:[#allocation5 + $0xa60] ss:$8 sps:$4 sm:$0xff]  }
 0x19a   :  { %3808 = vmatprep.subr.bf16.mxu1 %v8491_v7  ;;  %v8568_v7 = vld [vmem:[#allocation5 + $0xb60] ss:$8 sps:$4 sm:$0xff]  }
 0x19c   :  { %3768 = vmatpush1.bf16.msra.mxu0 %v8486_v8  ;;  %v803_v8 = vcombine.high %v9726_v2, %v9726_v2 }
 0x19d   :  { %3809 = vmatpush1.bf16.msra.mxu1 %v8489_v9  ;;  %3769 = vmatprep.subr.bf16.mxu0 %v8494_v10  ;;  %v804_v9 = vcombine.high %v9729_v3, %v9729_v3 }
 0x19e   :  { %3810 = vmatprep.subr.bf16.mxu1 %v8497_v11 }
 0x1a0   :  { %3770 = vmatpush1.bf16.msra.mxu0 %v8492_v12 }
 0x1a1   :  { %3811 = vmatpush1.bf16.msra.mxu1 %v8495_v13  ;;  %3771 = vmatprep.subr.bf16.mxu0 %v8500_v14 }
 0x1a2   :  { %3812 = vmatprep.subr.bf16.mxu1 %v8503_v15  ;;  %v8573_v15 = vld [vmem:[#allocation5 + $0xa54] ss:$8 sps:$4 sm:$0xff]  }
 0x1a4   :  { %3772 = vmatpush1.bf16.msra.mxu0 %v8498_v16  ;;  %v8576_v16 = vld [vmem:[#allocation5 + $0xb54] ss:$8 sps:$4 sm:$0xff]  }
 0x1a5   :  { %3813 = vmatpush1.bf16.msra.mxu1 %v8501_v17  ;;  %3773 = vmatprep.subr.bf16.mxu0 %v8506_v18 }
 0x1a6   :  { %3814 = vmatprep.subr.bf16.mxu1 %v8509_v19  ;;  %v8571_v19 = vld [vmem:[#allocation5 + $0xa50] ss:$8 sps:$4 sm:$0xff]  }
 0x1a8   :  { %3774 = vmatpush1.bf16.msra.mxu0 %v8504_v20  ;;  %v8574_v20 = vld [vmem:[#allocation5 + $0xb50] ss:$8 sps:$4 sm:$0xff]  }
 0x1a9   :  { %3815 = vmatpush1.bf16.msra.mxu1 %v8507_v21  ;;  %3775 = vmatprep.subr.bf16.mxu0 %v8512_v22 }
 0x1aa   :  { %3816 = vmatprep.subr.bf16.mxu1 %v8515_v23  ;;  %v8579_v23 = vld [vmem:[#allocation5 + $0xa44] ss:$8 sps:$4 sm:$0xff]  }
 0x1ac   :  { %3776 = vmatpush2.bf16.msra.mxu0 %v8510_v24  ;;  %v8582_v24 = vld [vmem:[#allocation5 + $0xb44] ss:$8 sps:$4 sm:$0xff]  }
 0x1ad   :  { %3817 = vmatpush2.bf16.msra.mxu1 %v8513_v25  ;;  %3777 = vmatprep.subr.bf16.mxu0 %v8518_v26  ;;  %v8577_v25 = vld [vmem:[#allocation5 + $0xa40] ss:$8 sps:$4 sm:$0xff]   ;;  %v8585_v26 = vld [vmem:[#allocation5 + $0xa34] ss:$8 sps:$4 sm:$0xff]  }
 0x1ae   :  { %3818 = vmatprep.subr.bf16.mxu1 %v8521_v28  ;;  %v8588_v28 = vld [vmem:[#allocation5 + $0xb34] ss:$8 sps:$4 sm:$0xff]  }
 0x1b0   :  { %3778 = vmatpush2.bf16.msra.mxu0 %v8516_v29  ;;  %v8583_v29 = vld [vmem:[#allocation5 + $0xa30] ss:$8 sps:$4 sm:$0xff]  }
 0x1b1   :  { %3819 = vmatpush2.bf16.msra.mxu1 %v8519_v30  ;;  %3779 = vmatprep.subr.bf16.mxu0 %v8524_v32  ;;  %v8586_v30 = vld [vmem:[#allocation5 + $0xb30] ss:$8 sps:$4 sm:$0xff]   ;;  %v8591_v32 = vld [vmem:[#allocation5 + $0xa24] ss:$8 sps:$4 sm:$0xff]  }
 0x1b2   :  { %3820 = vmatprep.subr.bf16.mxu1 %v8527_v33  ;;  %v8594_v33 = vld [vmem:[#allocation5 + $0xb24] ss:$8 sps:$4 sm:$0xff]  }
 0x1b4   :  { %3780 = vmatpush2.bf16.msra.mxu0 %v8522_v36  ;;  %v8589_v36 = vld [vmem:[#allocation5 + $0xa20] ss:$8 sps:$4 sm:$0xff]  }
 0x1b5   :  { %3821 = vmatpush2.bf16.msra.mxu1 %v8525_v37  ;;  %3781 = vmatprep.subr.bf16.mxu0 %v8530_v38  ;;  %v8592_v37 = vld [vmem:[#allocation5 + $0xb20] ss:$8 sps:$4 sm:$0xff]   ;;  %v8597_v38 = vld [vmem:[#allocation5 + $0xa14] ss:$8 sps:$4 sm:$0xff]  }
 0x1b6   :  { %3822 = vmatprep.subr.bf16.mxu1 %v8533_v39  ;;  %v8600_v39 = vld [vmem:[#allocation5 + $0xb14] ss:$8 sps:$4 sm:$0xff]  }
 0x1b8   :  { %3782 = vmatpush2.bf16.msra.mxu0 %v8528_v40  ;;  %v8595_v40 = vld [vmem:[#allocation5 + $0xa10] ss:$8 sps:$4 sm:$0xff]  }
 0x1b9   :  { %3823 = vmatpush2.bf16.msra.mxu1 %v8531_v41  ;;  %3783 = vmatprep.subr.bf16.mxu0 %v8536_v42  ;;  %v8598_v41 = vld [vmem:[#allocation5 + $0xb10] ss:$8 sps:$4 sm:$0xff]   ;;  %v8603_v42 = vld [vmem:[#allocation5 + $0xa04] ss:$8 sps:$4 sm:$0xff]  }
 0x1ba   :  { %3824 = vmatprep.subr.bf16.mxu1 %v8539_v44  ;;  %v8606_v44 = vld [vmem:[#allocation5 + $0xb04] ss:$8 sps:$4 sm:$0xff]  }
 0x1bc   :  { %3784 = vmatpush2.bf16.msra.mxu0 %v8534_v47  ;;  %v8601_v47 = vld [vmem:[#allocation5 + $0xa00] ss:$8 sps:$4 sm:$0xff]  }
 0x1bd   :  { %3825 = vmatpush2.bf16.msra.mxu1 %v8537_v48  ;;  %3785 = vmatprep.subr.bf16.mxu0 %v8542_v50  ;;  %v8604_v48 = vld [vmem:[#allocation5 + $0xb00] ss:$8 sps:$4 sm:$0xff]   ;;  %v8609_v50 = vld [vmem:[#allocation5 + $0xaf4] ss:$8 sps:$4 sm:$0xff]  }
 0x1be   :  { %3826 = vmatprep.subr.bf16.mxu1 %v8545_v27  ;;  %v8612_v27 = vld [vmem:[#allocation5 + $0xbf4] ss:$8 sps:$4 sm:$0xff]  }
 0x1c0   :  { %3786 = vmatpush2.bf16.msra.mxu0 %v8540_v51  ;;  %v8607_v51 = vld [vmem:[#allocation5 + $0xaf0] ss:$8 sps:$4 sm:$0xff]  }
 0x1c1   :  { %3827 = vmatpush2.bf16.msra.mxu1 %v8543_v31  ;;  %3787 = vmatprep.subr.bf16.mxu0 %v8548_v52  ;;  %v8610_v31 = vld [vmem:[#allocation5 + $0xbf0] ss:$8 sps:$4 sm:$0xff]   ;;  %v8615_v52 = vld [vmem:[#allocation5 + $0xae4] ss:$8 sps:$4 sm:$0xff]  }
 0x1c2   :  { %3828 = vmatprep.subr.bf16.mxu1 %v8551_v53  ;;  %v8618_v53 = vld [vmem:[#allocation5 + $0xbe4] ss:$8 sps:$4 sm:$0xff]  }
 0x1c4   :  { %3788 = vmatpush2.bf16.msra.mxu0 %v8546_v56  ;;  %v8616_v56 = vld [vmem:[#allocation5 + $0xbe0] ss:$8 sps:$4 sm:$0xff]  }
 0x1c5   :  { %3829 = vmatpush2.bf16.msra.mxu1 %v8549_v57  ;;  %3789 = vmatprep.subr.bf16.mxu0 %v8554_v58  ;;  %v8621_v57 = vld [vmem:[#allocation5 + $0xad4] ss:$8 sps:$4 sm:$0xff]  }
 0x1c6   :  { %3830 = vmatprep.subr.bf16.mxu1 %v8557_v59  ;;  %v8624_v58 = vld [vmem:[#allocation5 + $0xbd4] ss:$8 sps:$4 sm:$0xff]   ;;  %v8619_v59 = vld [vmem:[#allocation5 + $0xad0] ss:$8 sps:$4 sm:$0xff]  }
 0x1c8   :  { %3790 = vmatpush2.bf16.msra.mxu0 %v8552_v62  ;;  %v8627_v62 = vld [vmem:[#allocation5 + $0xac4] ss:$8 sps:$4 sm:$0xff]  }
 0x1c9   :  { %3831 = vmatpush2.bf16.msra.mxu1 %v8555_v34  ;;  %3841 = vmatprep.subr.bf16.mxu0 %v8561_v63  ;;  %v8630_v34 = vld [vmem:[#allocation5 + $0xbc4] ss:$8 sps:$4 sm:$0xff]   ;;  %v8625_v63 = vld [vmem:[#allocation5 + $0xac0] ss:$8 sps:$4 sm:$0xff]  }
 0x1ca   :  { %3882 = vmatprep.subr.bf16.mxu1 %v8564_v35  ;;  %v8628_v35 = vld [vmem:[#allocation5 + $0xbc0] ss:$8 sps:$4 sm:$0xff]  }
 0x1cb   :  { %v3547_v10 = vpop.f32.mrf.mxu0  ;;  %3792 = vmatmul.mubr.bf16.vlgmr.msra.gmra.mxu0 %v9710_v45 }
 0x1cc   :  { %v3588_v11 = vpop.f32.mrf.mxu1  ;;  %3833 = vmatmul.mubr.bf16.vlgmr.msra.gmra.mxu1 %v9713_v46  ;;  %v3548_v12 = vadd.f32 %v3547_v10, %v9721_v55  ;;  %3842 = vmatpush1.bf16.msra.mxu0 %v8559_v0  ;;  %v8633_v0 = vld [vmem:[#allocation5 + $0xab4] ss:$8 sps:$4 sm:$0xff]  }
 0x1cd   :  { %3883 = vmatpush1.bf16.msra.mxu1 %v8562_v1  ;;  %v3549_v13 = vpop.f32.mrf.mxu0  ;;  %3843 = vmatprep.subr.bf16.mxu0 %v8567_v4  ;;  %v8636_v1 = vld [vmem:[#allocation5 + $0xbb4] ss:$8 sps:$4 sm:$0xff]   ;;  %v8631_v4 = vld [vmem:[#allocation5 + $0xab0] ss:$8 sps:$4 sm:$0xff]  }
 0x1ce   :  { %v3590_v14 = vpop.f32.mrf.mxu1  ;;  %3884 = vmatprep.subr.bf16.mxu1 %v8570_v5  ;;  %v9738_v17 = vadd.f32 %v3588_v11, %v3548_v12  ;;  %v3550_v18 = vadd.f32 %v3549_v13, %v9723_v61  ;;  %3873 = vmatprep.mubr.bf16.mxu0 %v803_v8  ;;  %v8580_v61 = vld [vmem:[#allocation5 + $0xb40] ss:$8 sps:$4 sm:$0xff]   ;;  %v8634_v5 = vld [vmem:[#allocation5 + $0xbb0] ss:$8 sps:$4 sm:$0xff]   ;;  %v8645_v10 = vld [vmem:[#allocation5 + $0xa94] ss:$8 sps:$4 sm:$0xff]  }
 0x1cf   :  { %3914 = vmatprep.mubr.bf16.mxu1 %v804_v9  ;;  %v3551_v45 = vpop.f32.mrf.mxu0  ;;  %v8637_v8 = vld [vmem:[#allocation5 + $0xaa0] ss:$8 sps:$4 sm:$0xff]   ;;  %v8648_v11 = vld [vmem:[#allocation5 + $0xb94] ss:$8 sps:$4 sm:$0xff]   ;;  %v8643_v13 = vld [vmem:[#allocation5 + $0xa90] ss:$8 sps:$4 sm:$0xff]  }
 0x1d0   :  { %v3592_v46 = vpop.f32.mrf.mxu1  ;;  %v9741_v21 = vadd.f32 %v3590_v14, %v3550_v18  ;;  %3844 = vmatpush1.bf16.msra.mxu0 %v8565_v6  ;;  %v8639_v6 = vld [vmem:[#allocation5 + $0xaa4] ss:$8 sps:$4 sm:$0xff]   ;;  %v8640_v9 = vld [vmem:[#allocation5 + $0xba0] ss:$8 sps:$4 sm:$0xff]   ;;  %v181_v12 = vld [vmem:[#allocation2 + $0x30] sm:$0xff] }
 0x1d1   :  { %3885 = vmatpush1.bf16.msra.mxu1 %v8568_v7  ;;  %v3552_v55 = vpop.f32.mrf.mxu0  ;;  %3845 = vmatprep.subr.bf16.mxu0 %v8573_v15  ;;  %v8642_v7 = vld [vmem:[#allocation5 + $0xba4] ss:$8 sps:$4 sm:$0xff]   ;;  %v8646_v14 = vld [vmem:[#allocation5 + $0xb90] ss:$8 sps:$4 sm:$0xff]   ;;  %v805_v18 = vcombine.high %v181_v12, %v181_v12  ;;  %v8658_v45 = vld [vmem:[#allocation5 + $0xc74] ss:$8 sps:$4 sm:$0xff]  }
 0x1d2   :  { %v3593_v22 = vpop.f32.mrf.mxu1  ;;  %3886 = vmatprep.subr.bf16.mxu1 %v8576_v16  ;;  %v8651_v15 = vld [vmem:[#allocation5 + $0xa84] ss:$8 sps:$4 sm:$0xff]   ;;  %v8661_v46 = vld [vmem:[#allocation5 + $0xd74] ss:$8 sps:$4 sm:$0xff]   ;;  %v8656_v55 = vld [vmem:[#allocation5 + $0xc70] ss:$8 sps:$4 sm:$0xff]  }
 0x1d3   :  { %v8654_v16 = vld [vmem:[#allocation5 + $0xb84] ss:$8 sps:$4 sm:$0xff]   ;;  %v8659_v22 = vld [vmem:[#allocation5 + $0xd70] ss:$8 sps:$4 sm:$0xff]  }
 0x1d4   :  { %3846 = vmatpush1.bf16.msra.mxu0 %v8571_v19  ;;  %v8649_v19 = vld [vmem:[#allocation5 + $0xa80] ss:$8 sps:$4 sm:$0xff]  }
 0x1d5   :  { %3887 = vmatpush1.bf16.msra.mxu1 %v8574_v20  ;;  %3847 = vmatprep.subr.bf16.mxu0 %v8579_v23  ;;  %v8652_v20 = vld [vmem:[#allocation5 + $0xb80] ss:$8 sps:$4 sm:$0xff]   ;;  %v9744_v23 = vrot.slane %v181_v12, %v9671_v49 }
 0x1d6   :  { %3888 = vmatprep.subr.bf16.mxu1 %v8582_v24  ;;  %v9747_v24 = vrot.slane %v805_v18, %v9671_v49  ;;  %v8710_v12 = vld [vmem:[#allocation5 + $0xce0] ss:$8 sps:$4 sm:$0xff]   ;;  %v8719_v18 = vld [vmem:[#allocation5 + $0xdd0] ss:$8 sps:$4 sm:$0xff]  }
 0x1d8   :  { %3848 = vmatpush1.bf16.msra.mxu0 %v8577_v25  ;;  %v8664_v25 = vld [vmem:[#allocation5 + $0xc64] ss:$8 sps:$4 sm:$0xff]  }
 0x1d9   :  { %3889 = vmatpush1.bf16.msra.mxu1 %v8580_v61  ;;  %3849 = vmatprep.subr.bf16.mxu0 %v8585_v26  ;;  %v8667_v61 = vld [vmem:[#allocation5 + $0xd64] ss:$8 sps:$4 sm:$0xff]   ;;  %v8662_v26 = vld [vmem:[#allocation5 + $0xc60] ss:$8 sps:$4 sm:$0xff]  }
 0x1da   :  { %3890 = vmatprep.subr.bf16.mxu1 %v8588_v28  ;;  %v8665_v28 = vld [vmem:[#allocation5 + $0xd60] ss:$8 sps:$4 sm:$0xff]  }
 0x1dc   :  { %3850 = vmatpush1.bf16.msra.mxu0 %v8583_v29  ;;  %v820_v29 = vcombine.high %v9744_v23, %v9744_v23 }
 0x1dd   :  { %3891 = vmatpush1.bf16.msra.mxu1 %v8586_v30  ;;  %3851 = vmatprep.subr.bf16.mxu0 %v8591_v32  ;;  %v821_v30 = vcombine.high %v9747_v24, %v9747_v24 }
 0x1de   :  { %3892 = vmatprep.subr.bf16.mxu1 %v8594_v33 }
 0x1e0   :  { %3852 = vmatpush1.bf16.msra.mxu0 %v8589_v36  ;;  %v8670_v36 = vld [vmem:[#allocation5 + $0xc54] ss:$8 sps:$4 sm:$0xff]  }
 0x1e1   :  { %3893 = vmatpush1.bf16.msra.mxu1 %v8592_v37  ;;  %3853 = vmatprep.subr.bf16.mxu0 %v8597_v38  ;;  %v8673_v37 = vld [vmem:[#allocation5 + $0xd54] ss:$8 sps:$4 sm:$0xff]  }
 0x1e2   :  { %3894 = vmatprep.subr.bf16.mxu1 %v8600_v39 }
 0x1e4   :  { %3854 = vmatpush1.bf16.msra.mxu0 %v8595_v40 }
 0x1e5   :  { %3895 = vmatpush1.bf16.msra.mxu1 %v8598_v41  ;;  %3855 = vmatprep.subr.bf16.mxu0 %v8603_v42 }
 0x1e6   :  { %3896 = vmatprep.subr.bf16.mxu1 %v8606_v44  ;;  %v8668_v44 = vld [vmem:[#allocation5 + $0xc50] ss:$8 sps:$4 sm:$0xff]  }
 0x1e8   :  { %3856 = vmatpush1.bf16.msra.mxu0 %v8601_v47  ;;  %v8671_v47 = vld [vmem:[#allocation5 + $0xd50] ss:$8 sps:$4 sm:$0xff]  }
 0x1e9   :  { %3897 = vmatpush1.bf16.msra.mxu1 %v8604_v48  ;;  %3857 = vmatprep.subr.bf16.mxu0 %v8609_v50  ;;  %v8676_v48 = vld [vmem:[#allocation5 + $0xc44] ss:$8 sps:$4 sm:$0xff]  }
 0x1ea   :  { %3898 = vmatprep.subr.bf16.mxu1 %v8612_v27  ;;  %v8679_v50 = vld [vmem:[#allocation5 + $0xd44] ss:$8 sps:$4 sm:$0xff]  }
 0x1ec   :  { %3858 = vmatpush2.bf16.msra.mxu0 %v8607_v51 }
 0x1ed   :  { %3899 = vmatpush2.bf16.msra.mxu1 %v8610_v31  ;;  %3859 = vmatprep.subr.bf16.mxu0 %v8615_v52  ;;  %v8674_v31 = vld [vmem:[#allocation5 + $0xc40] ss:$8 sps:$4 sm:$0xff]  }
 0x1ee   :  { %3900 = vmatprep.subr.bf16.mxu1 %v8618_v53  ;;  %v8677_v52 = vld [vmem:[#allocation5 + $0xd40] ss:$8 sps:$4 sm:$0xff]   ;;  %v8682_v53 = vld [vmem:[#allocation5 + $0xc34] ss:$8 sps:$4 sm:$0xff]  }
 0x1f0   :  { %3860 = vmatpush2.bf16.msra.mxu0 %v8613_v54  ;;  %v8680_v54 = vld [vmem:[#allocation5 + $0xc30] ss:$8 sps:$4 sm:$0xff]  }
 0x1f1   :  { %3901 = vmatpush2.bf16.msra.mxu1 %v8616_v56  ;;  %3861 = vmatprep.subr.bf16.mxu0 %v8621_v57  ;;  %v8683_v56 = vld [vmem:[#allocation5 + $0xd30] ss:$8 sps:$4 sm:$0xff]   ;;  %v8688_v57 = vld [vmem:[#allocation5 + $0xc24] ss:$8 sps:$4 sm:$0xff]  }
 0x1f2   :  { %3902 = vmatprep.subr.bf16.mxu1 %v8624_v58  ;;  %v8691_v58 = vld [vmem:[#allocation5 + $0xd24] ss:$8 sps:$4 sm:$0xff]  }
 0x1f4   :  { %3862 = vmatpush2.bf16.msra.mxu0 %v8619_v59  ;;  %v8686_v59 = vld [vmem:[#allocation5 + $0xc20] ss:$8 sps:$4 sm:$0xff]  }
 0x1f5   :  { %3903 = vmatpush2.bf16.msra.mxu1 %v8622_v60  ;;  %3863 = vmatprep.subr.bf16.mxu0 %v8627_v62  ;;  %v8689_v60 = vld [vmem:[#allocation5 + $0xd20] ss:$8 sps:$4 sm:$0xff]   ;;  %v8694_v62 = vld [vmem:[#allocation5 + $0xc14] ss:$8 sps:$4 sm:$0xff]  }
 0x1f6   :  { %3904 = vmatprep.subr.bf16.mxu1 %v8630_v34  ;;  %v8697_v34 = vld [vmem:[#allocation5 + $0xd14] ss:$8 sps:$4 sm:$0xff]  }
 0x1f8   :  { %3864 = vmatpush2.bf16.msra.mxu0 %v8625_v63  ;;  %v8692_v63 = vld [vmem:[#allocation5 + $0xc10] ss:$8 sps:$4 sm:$0xff]  }
 0x1f9   :  { %3905 = vmatpush2.bf16.msra.mxu1 %v8628_v35  ;;  %3865 = vmatprep.subr.bf16.mxu0 %v8633_v0  ;;  %v8695_v35 = vld [vmem:[#allocation5 + $0xd10] ss:$8 sps:$4 sm:$0xff]   ;;  %v8700_v0 = vld [vmem:[#allocation5 + $0xc04] ss:$8 sps:$4 sm:$0xff]  }
 0x1fa   :  { %3906 = vmatprep.subr.bf16.mxu1 %v8636_v1  ;;  %v8703_v1 = vld [vmem:[#allocation5 + $0xd04] ss:$8 sps:$4 sm:$0xff]  }
 0x1fc   :  { %3866 = vmatpush2.bf16.msra.mxu0 %v8631_v4  ;;  %v8698_v4 = vld [vmem:[#allocation5 + $0xc00] ss:$8 sps:$4 sm:$0xff]  }
 0x1fd   :  { %3907 = vmatpush2.bf16.msra.mxu1 %v8634_v5  ;;  %3867 = vmatprep.subr.bf16.mxu0 %v8639_v6  ;;  %v8701_v5 = vld [vmem:[#allocation5 + $0xd00] ss:$8 sps:$4 sm:$0xff]   ;;  %v8706_v6 = vld [vmem:[#allocation5 + $0xcf4] ss:$8 sps:$4 sm:$0xff]  }
 0x1fe   :  { %3908 = vmatprep.subr.bf16.mxu1 %v8642_v7  ;;  %v8709_v7 = vld [vmem:[#allocation5 + $0xdf4] ss:$8 sps:$4 sm:$0xff]  }
 0x200   :  { %3868 = vmatpush2.bf16.msra.mxu0 %v8637_v8  ;;  %v8704_v8 = vld [vmem:[#allocation5 + $0xcf0] ss:$8 sps:$4 sm:$0xff]  }
 0x201   :  { %3909 = vmatpush2.bf16.msra.mxu1 %v8640_v9  ;;  %3869 = vmatprep.subr.bf16.mxu0 %v8645_v10  ;;  %v8707_v9 = vld [vmem:[#allocation5 + $0xdf0] ss:$8 sps:$4 sm:$0xff]   ;;  %v8712_v10 = vld [vmem:[#allocation5 + $0xce4] ss:$8 sps:$4 sm:$0xff]  }
 0x202   :  { %3910 = vmatprep.subr.bf16.mxu1 %v8648_v11  ;;  %v8715_v11 = vld [vmem:[#allocation5 + $0xde4] ss:$8 sps:$4 sm:$0xff]  }
 0x204   :  { %3870 = vmatpush2.bf16.msra.mxu0 %v8643_v13  ;;  %v8713_v13 = vld [vmem:[#allocation5 + $0xde0] ss:$8 sps:$4 sm:$0xff]  }
 0x205   :  { %3911 = vmatpush2.bf16.msra.mxu1 %v8646_v14  ;;  %3871 = vmatprep.subr.bf16.mxu0 %v8651_v15  ;;  %v8718_v14 = vld [vmem:[#allocation5 + $0xcd4] ss:$8 sps:$4 sm:$0xff]  }
 0x206   :  { %3912 = vmatprep.subr.bf16.mxu1 %v8654_v16  ;;  %v8721_v15 = vld [vmem:[#allocation5 + $0xdd4] ss:$8 sps:$4 sm:$0xff]   ;;  %v8716_v16 = vld [vmem:[#allocation5 + $0xcd0] ss:$8 sps:$4 sm:$0xff]  }
 0x208   :  { %3872 = vmatpush2.bf16.msra.mxu0 %v8649_v19  ;;  %v8724_v19 = vld [vmem:[#allocation5 + $0xcc4] ss:$8 sps:$4 sm:$0xff]  }
 0x209   :  { %3913 = vmatpush2.bf16.msra.mxu1 %v8652_v20  ;;  %3923 = vmatprep.subr.bf16.mxu0 %v8658_v45  ;;  %v8727_v20 = vld [vmem:[#allocation5 + $0xdc4] ss:$8 sps:$4 sm:$0xff]   ;;  %v8722_v45 = vld [vmem:[#allocation5 + $0xcc0] ss:$8 sps:$4 sm:$0xff]  }
 0x20a   :  { %3964 = vmatprep.subr.bf16.mxu1 %v8661_v46  ;;  %v8725_v46 = vld [vmem:[#allocation5 + $0xdc0] ss:$8 sps:$4 sm:$0xff]  }
 0x20b   :  { %v3629_v32 = vpop.f32.mrf.mxu0  ;;  %3874 = vmatmul.mubr.bf16.vlgmr.msra.gmra.mxu0 %v9726_v2 }
 0x20c   :  { %v3670_v33 = vpop.f32.mrf.mxu1  ;;  %3915 = vmatmul.mubr.bf16.vlgmr.msra.gmra.mxu1 %v9729_v3  ;;  %v3630_v38 = vadd.f32 %v3629_v32, %v9738_v17  ;;  %3924 = vmatpush1.bf16.msra.mxu0 %v8656_v55  ;;  %v8730_v55 = vld [vmem:[#allocation5 + $0xcb4] ss:$8 sps:$4 sm:$0xff]  }
 0x20d   :  { %3965 = vmatpush1.bf16.msra.mxu1 %v8659_v22  ;;  %v3631_v39 = vpop.f32.mrf.mxu0  ;;  %3925 = vmatprep.subr.bf16.mxu0 %v8664_v25  ;;  %v8733_v22 = vld [vmem:[#allocation5 + $0xdb4] ss:$8 sps:$4 sm:$0xff]   ;;  %v8728_v25 = vld [vmem:[#allocation5 + $0xcb0] ss:$8 sps:$4 sm:$0xff]  }
 0x20e   :  { %v3672_v40 = vpop.f32.mrf.mxu1  ;;  %3966 = vmatprep.subr.bf16.mxu1 %v8667_v61  ;;  %v9756_v41 = vadd.f32 %v3670_v33, %v3630_v38  ;;  %v3632_v42 = vadd.f32 %v3631_v39, %v9741_v21  ;;  %3955 = vmatprep.mubr.bf16.mxu0 %v820_v29  ;;  %v8685_v21 = vld [vmem:[#allocation5 + $0xd34] ss:$8 sps:$4 sm:$0xff]   ;;  %v8731_v61 = vld [vmem:[#allocation5 + $0xdb0] ss:$8 sps:$4 sm:$0xff]   ;;  %v8734_v29 = vld [vmem:[#allocation5 + $0xca0] ss:$8 sps:$4 sm:$0xff]  }
 0x20f   :  { %3996 = vmatprep.mubr.bf16.mxu1 %v821_v30  ;;  %v3633_v2 = vpop.f32.mrf.mxu0  ;;  %v8737_v30 = vld [vmem:[#allocation5 + $0xda0] ss:$8 sps:$4 sm:$0xff]   ;;  %v8742_v32 = vld [vmem:[#allocation5 + $0xc94] ss:$8 sps:$4 sm:$0xff]   ;;  %v8743_v38 = vld [vmem:[#allocation5 + $0xd90] ss:$8 sps:$4 sm:$0xff]  }
 0x210   :  { %v3674_v3 = vpop.f32.mrf.mxu1  ;;  %v9759_v27 = vadd.f32 %v3672_v40, %v3632_v42  ;;  %3926 = vmatpush1.bf16.msra.mxu0 %v8662_v26  ;;  %v8736_v26 = vld [vmem:[#allocation5 + $0xca4] ss:$8 sps:$4 sm:$0xff]   ;;  %v8745_v33 = vld [vmem:[#allocation5 + $0xd94] ss:$8 sps:$4 sm:$0xff]   ;;  %v8746_v42 = vld [vmem:[#allocation5 + $0xc80] ss:$8 sps:$4 sm:$0xff]  }
 0x211   :  { %3967 = vmatpush1.bf16.msra.mxu1 %v8665_v28  ;;  %v3634_v17 = vpop.f32.mrf.mxu0  ;;  %3927 = vmatprep.subr.bf16.mxu0 %v8670_v36  ;;  %v8739_v28 = vld [vmem:[#allocation5 + $0xda4] ss:$8 sps:$4 sm:$0xff]   ;;  %v182_v36 = vld [vmem:[#allocation2 + $0x38] sm:$0xff] }
 0x212   :  { %v3675_v51 = vpop.f32.mrf.mxu1  ;;  %3968 = vmatprep.subr.bf16.mxu1 %v8673_v37  ;;  %v8740_v37 = vld [vmem:[#allocation5 + $0xc90] ss:$8 sps:$4 sm:$0xff]   ;;  %v8748_v39 = vld [vmem:[#allocation5 + $0xc84] ss:$8 sps:$4 sm:$0xff]   ;;  %v8755_v2 = vld [vmem:[#allocation5 + $0xe74] ss:$8 sps:$4 sm:$0xff]   ;;  %v9762_v17 = vrot.slane %v182_v36, %v9671_v49 }
 0x213   :  { %v8751_v40 = vld [vmem:[#allocation5 + $0xd84] ss:$8 sps:$4 sm:$0xff]   ;;  %v8758_v3 = vld [vmem:[#allocation5 + $0xf74] ss:$8 sps:$4 sm:$0xff]  }
 0x214   :  { %3928 = vmatpush1.bf16.msra.mxu0 %v8668_v44  ;;  %v8749_v44 = vld [vmem:[#allocation5 + $0xd80] ss:$8 sps:$4 sm:$0xff]  }
 0x215   :  { %3969 = vmatpush1.bf16.msra.mxu1 %v8671_v47  ;;  %3929 = vmatprep.subr.bf16.mxu0 %v8676_v48  ;;  %v822_v47 = vcombine.high %v182_v36, %v182_v36  ;;  %v8753_v48 = vld [vmem:[#allocation5 + $0xe70] ss:$8 sps:$4 sm:$0xff]   ;;  %v8810_v36 = vld [vmem:[#allocation5 + $0xfe0] ss:$8 sps:$4 sm:$0xff]  }
 0x216   :  { %3970 = vmatprep.subr.bf16.mxu1 %v8679_v50  ;;  %v8756_v50 = vld [vmem:[#allocation5 + $0xf70] ss:$8 sps:$4 sm:$0xff]  }
 0x217   :  { %v9765_v51 = vrot.slane %v822_v47, %v9671_v49  ;;  %v8767_v49 = vld [vmem:[#allocation5 + $0xe54] ss:$8 sps:$4 sm:$0xff]   ;;  %v8819_v47 = vld [vmem:[#allocation5 + $0xec0] ss:$8 sps:$4 sm:$0xff]  }
 0x218   :  { %3930 = vmatpush1.bf16.msra.mxu0 %v8674_v31  ;;  %v8761_v31 = vld [vmem:[#allocation5 + $0xe64] ss:$8 sps:$4 sm:$0xff]  }
 0x219   :  { %3971 = vmatpush1.bf16.msra.mxu1 %v8677_v52  ;;  %3931 = vmatprep.subr.bf16.mxu0 %v8682_v53  ;;  %v8764_v52 = vld [vmem:[#allocation5 + $0xf64] ss:$8 sps:$4 sm:$0xff]   ;;  %v8759_v53 = vld [vmem:[#allocation5 + $0xe60] ss:$8 sps:$4 sm:$0xff]  }
 0x21a   :  { %3972 = vmatprep.subr.bf16.mxu1 %v8685_v21  ;;  %v8762_v21 = vld [vmem:[#allocation5 + $0xf60] ss:$8 sps:$4 sm:$0xff]  }
 0x21c   :  { %3932 = vmatpush1.bf16.msra.mxu0 %v8680_v54  ;;  %v837_v54 = vcombine.high %v9762_v17, %v9762_v17 }
 0x21d   :  { %3973 = vmatpush1.bf16.msra.mxu1 %v8683_v56  ;;  %3933 = vmatprep.subr.bf16.mxu0 %v8688_v57  ;;  %v838_v56 = vcombine.high %v9765_v51, %v9765_v51 }
 0x21e   :  { %3974 = vmatprep.subr.bf16.mxu1 %v8691_v58 }
 0x220   :  { %3934 = vmatpush1.bf16.msra.mxu0 %v8686_v59  ;;  %v8770_v59 = vld [vmem:[#allocation5 + $0xf54] ss:$8 sps:$4 sm:$0xff]  }
 0x221   :  { %3975 = vmatpush1.bf16.msra.mxu1 %v8689_v60  ;;  %3935 = vmatprep.subr.bf16.mxu0 %v8694_v62 }
 0x222   :  { %3976 = vmatprep.subr.bf16.mxu1 %v8697_v34 }
 0x224   :  { %3936 = vmatpush1.bf16.msra.mxu0 %v8692_v63 }
 0x225   :  { %3977 = vmatpush1.bf16.msra.mxu1 %v8695_v35  ;;  %3937 = vmatprep.subr.bf16.mxu0 %v8700_v0  ;;  %v8765_v0 = vld [vmem:[#allocation5 + $0xe50] ss:$8 sps:$4 sm:$0xff]  }
 0x226   :  { %3978 = vmatprep.subr.bf16.mxu1 %v8703_v1  ;;  %v8768_v1 = vld [vmem:[#allocation5 + $0xf50] ss:$8 sps:$4 sm:$0xff]  }
 0x228   :  { %3938 = vmatpush1.bf16.msra.mxu0 %v8698_v4  ;;  %v8773_v4 = vld [vmem:[#allocation5 + $0xe44] ss:$8 sps:$4 sm:$0xff]  }
 0x229   :  { %3979 = vmatpush1.bf16.msra.mxu1 %v8701_v5  ;;  %3939 = vmatprep.subr.bf16.mxu0 %v8706_v6  ;;  %v8776_v5 = vld [vmem:[#allocation5 + $0xf44] ss:$8 sps:$4 sm:$0xff]  }
 0x22a   :  { %3980 = vmatprep.subr.bf16.mxu1 %v8709_v7 }
 0x22c   :  { %3940 = vmatpush2.bf16.msra.mxu0 %v8704_v8  ;;  %v8771_v8 = vld [vmem:[#allocation5 + $0xe40] ss:$8 sps:$4 sm:$0xff]  }
 0x22d   :  { %3981 = vmatpush2.bf16.msra.mxu1 %v8707_v9  ;;  %3941 = vmatprep.subr.bf16.mxu0 %v8712_v10  ;;  %v8774_v9 = vld [vmem:[#allocation5 + $0xf40] ss:$8 sps:$4 sm:$0xff]   ;;  %v8782_v10 = vld [vmem:[#allocation5 + $0xf34] ss:$8 sps:$4 sm:$0xff]  }
 0x22e   :  { %3982 = vmatprep.subr.bf16.mxu1 %v8715_v11  ;;  %v8777_v11 = vld [vmem:[#allocation5 + $0xe30] ss:$8 sps:$4 sm:$0xff]  }
 0x230   :  { %3942 = vmatpush2.bf16.msra.mxu0 %v8710_v12  ;;  %v8780_v12 = vld [vmem:[#allocation5 + $0xf30] ss:$8 sps:$4 sm:$0xff]  }
 0x231   :  { %3983 = vmatpush2.bf16.msra.mxu1 %v8713_v13  ;;  %3943 = vmatprep.subr.bf16.mxu0 %v8718_v14  ;;  %v8785_v13 = vld [vmem:[#allocation5 + $0xe24] ss:$8 sps:$4 sm:$0xff]  }
 0x232   :  { %3984 = vmatprep.subr.bf16.mxu1 %v8721_v15  ;;  %v8788_v14 = vld [vmem:[#allocation5 + $0xf24] ss:$8 sps:$4 sm:$0xff]   ;;  %v8783_v15 = vld [vmem:[#allocation5 + $0xe20] ss:$8 sps:$4 sm:$0xff]  }
 0x234   :  { %3944 = vmatpush2.bf16.msra.mxu0 %v8716_v16  ;;  %v8786_v16 = vld [vmem:[#allocation5 + $0xf20] ss:$8 sps:$4 sm:$0xff]  }
 0x235   :  { %3985 = vmatpush2.bf16.msra.mxu1 %v8719_v18  ;;  %3945 = vmatprep.subr.bf16.mxu0 %v8724_v19  ;;  %v8791_v18 = vld [vmem:[#allocation5 + $0xe14] ss:$8 sps:$4 sm:$0xff]  }
 0x236   :  { %3986 = vmatprep.subr.bf16.mxu1 %v8727_v20  ;;  %v8794_v19 = vld [vmem:[#allocation5 + $0xf14] ss:$8 sps:$4 sm:$0xff]   ;;  %v8789_v20 = vld [vmem:[#allocation5 + $0xe10] ss:$8 sps:$4 sm:$0xff]  }
 0x238   :  { %3946 = vmatpush2.bf16.msra.mxu0 %v8722_v45  ;;  %v8792_v45 = vld [vmem:[#allocation5 + $0xf10] ss:$8 sps:$4 sm:$0xff]  }
 0x239   :  { %3987 = vmatpush2.bf16.msra.mxu1 %v8725_v46  ;;  %3947 = vmatprep.subr.bf16.mxu0 %v8730_v55  ;;  %v8797_v46 = vld [vmem:[#allocation5 + $0xe04] ss:$8 sps:$4 sm:$0xff]  }
 0x23a   :  { %3988 = vmatprep.subr.bf16.mxu1 %v8733_v22  ;;  %v8800_v55 = vld [vmem:[#allocation5 + $0xf04] ss:$8 sps:$4 sm:$0xff]   ;;  %v8795_v22 = vld [vmem:[#allocation5 + $0xe00] ss:$8 sps:$4 sm:$0xff]  }
 0x23c   :  { %3948 = vmatpush2.bf16.msra.mxu0 %v8728_v25  ;;  %v8798_v25 = vld [vmem:[#allocation5 + $0xf00] ss:$8 sps:$4 sm:$0xff]  }
 0x23d   :  { %3989 = vmatpush2.bf16.msra.mxu1 %v8731_v61  ;;  %3949 = vmatprep.subr.bf16.mxu0 %v8736_v26  ;;  %v8803_v61 = vld [vmem:[#allocation5 + $0xef4] ss:$8 sps:$4 sm:$0xff]  }
 0x23e   :  { %3990 = vmatprep.subr.bf16.mxu1 %v8739_v28  ;;  %v8806_v26 = vld [vmem:[#allocation5 + $0xff4] ss:$8 sps:$4 sm:$0xff]   ;;  %v8801_v28 = vld [vmem:[#allocation5 + $0xef0] ss:$8 sps:$4 sm:$0xff]  }
 0x240   :  { %3950 = vmatpush2.bf16.msra.mxu0 %v8734_v29  ;;  %v8804_v29 = vld [vmem:[#allocation5 + $0xff0] ss:$8 sps:$4 sm:$0xff]  }
 0x241   :  { %3991 = vmatpush2.bf16.msra.mxu1 %v8737_v30  ;;  %3951 = vmatprep.subr.bf16.mxu0 %v8742_v32  ;;  %v8809_v30 = vld [vmem:[#allocation5 + $0xee4] ss:$8 sps:$4 sm:$0xff]  }
 0x242   :  { %3992 = vmatprep.subr.bf16.mxu1 %v8745_v33  ;;  %v8812_v32 = vld [vmem:[#allocation5 + $0xfe4] ss:$8 sps:$4 sm:$0xff]   ;;  %v8807_v33 = vld [vmem:[#allocation5 + $0xee0] ss:$8 sps:$4 sm:$0xff]  }
 0x244   :  { %3952 = vmatpush2.bf16.msra.mxu0 %v8740_v37  ;;  %v8815_v37 = vld [vmem:[#allocation5 + $0xed4] ss:$8 sps:$4 sm:$0xff]  }
 0x245   :  { %3993 = vmatpush2.bf16.msra.mxu1 %v8743_v38  ;;  %3953 = vmatprep.subr.bf16.mxu0 %v8748_v39  ;;  %v8818_v38 = vld [vmem:[#allocation5 + $0xfd4] ss:$8 sps:$4 sm:$0xff]   ;;  %v8813_v39 = vld [vmem:[#allocation5 + $0xed0] ss:$8 sps:$4 sm:$0xff]  }
 0x246   :  { %3994 = vmatprep.subr.bf16.mxu1 %v8751_v40  ;;  %v8816_v40 = vld [vmem:[#allocation5 + $0xfd0] ss:$8 sps:$4 sm:$0xff]  }
 0x248   :  { %3954 = vmatpush2.bf16.msra.mxu0 %v8746_v42  ;;  %v8821_v42 = vld [vmem:[#allocation5 + $0xec4] ss:$8 sps:$4 sm:$0xff]  }
 0x249   :  { %3995 = vmatpush2.bf16.msra.mxu1 %v8749_v44  ;;  %4005 = vmatprep.subr.bf16.mxu0 %v8755_v2  ;;  %v8824_v44 = vld [vmem:[#allocation5 + $0xfc4] ss:$8 sps:$4 sm:$0xff]   ;;  %v8822_v2 = vld [vmem:[#allocation5 + $0xfc0] ss:$8 sps:$4 sm:$0xff]  }
 0x24a   :  { %4046 = vmatprep.subr.bf16.mxu1 %v8758_v3  ;;  %v8827_v3 = vld [vmem:[#allocation5 + $0xeb4] ss:$8 sps:$4 sm:$0xff]  }
 0x24b   :  { %v3711_v57 = vpop.f32.mrf.mxu0  ;;  %3956 = vmatmul.mubr.bf16.vlgmr.msra.gmra.mxu0 %v9744_v23 }
 0x24c   :  { %v3752_v58 = vpop.f32.mrf.mxu1  ;;  %3997 = vmatmul.mubr.bf16.vlgmr.msra.gmra.mxu1 %v9747_v24  ;;  %v3712_v60 = vadd.f32 %v3711_v57, %v9756_v41  ;;  %4006 = vmatpush1.bf16.msra.mxu0 %v8753_v48  ;;  %v8830_v48 = vld [vmem:[#allocation5 + $0xfb4] ss:$8 sps:$4 sm:$0xff]  }
 0x24d   :  { %4047 = vmatpush1.bf16.msra.mxu1 %v8756_v50  ;;  %v3713_v62 = vpop.f32.mrf.mxu0  ;;  %4007 = vmatprep.subr.bf16.mxu0 %v8761_v31  ;;  %v8825_v50 = vld [vmem:[#allocation5 + $0xeb0] ss:$8 sps:$4 sm:$0xff]   ;;  %v8842_v57 = vld [vmem:[#allocation5 + $0xf94] ss:$8 sps:$4 sm:$0xff]  }
 0x24e   :  { %v3754_v34 = vpop.f32.mrf.mxu1  ;;  %4048 = vmatprep.subr.bf16.mxu1 %v8764_v52  ;;  %v9774_v63 = vadd.f32 %v3752_v58, %v3712_v60  ;;  %v3714_v35 = vadd.f32 %v3713_v62, %v9759_v27  ;;  %4037 = vmatprep.mubr.bf16.mxu0 %v837_v54  ;;  %v8779_v27 = vld [vmem:[#allocation5 + $0xe34] ss:$8 sps:$4 sm:$0xff]   ;;  %v8828_v31 = vld [vmem:[#allocation5 + $0xfb0] ss:$8 sps:$4 sm:$0xff]   ;;  %v8833_v52 = vld [vmem:[#allocation5 + $0xea4] ss:$8 sps:$4 sm:$0xff]  }
 0x24f   :  { %4078 = vmatprep.mubr.bf16.mxu1 %v838_v56  ;;  %v3715_v23 = vpop.f32.mrf.mxu0  ;;  %v8834_v54 = vld [vmem:[#allocation5 + $0xfa0] ss:$8 sps:$4 sm:$0xff]   ;;  %v8839_v56 = vld [vmem:[#allocation5 + $0xe94] ss:$8 sps:$4 sm:$0xff]   ;;  %v8837_v58 = vld [vmem:[#allocation5 + $0xe90] ss:$8 sps:$4 sm:$0xff]  }
 0x250   :  { %v3756_v24 = vpop.f32.mrf.mxu1  ;;  %v9777_v6 = vadd.f32 %v3754_v34, %v3714_v35  ;;  %4008 = vmatpush1.bf16.msra.mxu0 %v8759_v53  ;;  %v8836_v53 = vld [vmem:[#allocation5 + $0xfa4] ss:$8 sps:$4 sm:$0xff]   ;;  %v8843_v62 = vld [vmem:[#allocation5 + $0xe80] ss:$8 sps:$4 sm:$0xff]  }
 0x251   :  { %4049 = vmatpush1.bf16.msra.mxu1 %v8762_v21  ;;  %v3716_v41 = vpop.f32.mrf.mxu0  ;;  %4009 = vmatprep.subr.bf16.mxu0 %v8767_v49  ;;  %v8831_v21 = vld [vmem:[#allocation5 + $0xea0] ss:$8 sps:$4 sm:$0xff]   ;;  %v8840_v49 = vld [vmem:[#allocation5 + $0xf90] ss:$8 sps:$4 sm:$0xff]   ;;  %v8848_v60 = vld [vmem:[#allocation5 + $0xf84] ss:$8 sps:$4 sm:$0xff]  }
 0x252   :  { %v3757_v7 = vpop.f32.mrf.mxu1  ;;  %4050 = vmatprep.subr.bf16.mxu1 %v8770_v59  ;;  %v8845_v59 = vld [vmem:[#allocation5 + $0xe84] ss:$8 sps:$4 sm:$0xff]   ;;  %v8846_v34 = vld [vmem:[#allocation5 + $0xf80] ss:$8 sps:$4 sm:$0xff]  }
 0x254   :  { %4010 = vmatpush1.bf16.msra.mxu0 %v8765_v0 }
 0x255   :  { %4051 = vmatpush1.bf16.msra.mxu1 %v8768_v1  ;;  %4011 = vmatprep.subr.bf16.mxu0 %v8773_v4 }
 0x256   :  { %4052 = vmatprep.subr.bf16.mxu1 %v8776_v5 }
 0x258   :  { %4012 = vmatpush1.bf16.msra.mxu0 %v8771_v8 }
 0x259   :  { %4053 = vmatpush1.bf16.msra.mxu1 %v8774_v9  ;;  %4013 = vmatprep.subr.bf16.mxu0 %v8779_v27 }
 0x25a   :  { %4054 = vmatprep.subr.bf16.mxu1 %v8782_v10  ;;  %v8850_v10 = vld [vmem:[#allocation7 + $0xe0] ss:$16 sps:$4 sm:$0xff]  }
 0x25c   :  { %4014 = vmatpush1.bf16.msra.mxu0 %v8777_v11  ;;  %v8852_v11 = vld [vmem:[#allocation7 + $0xe4] ss:$16 sps:$4 sm:$0xff]  }
 0x25d   :  { %4055 = vmatpush1.bf16.msra.mxu1 %v8780_v12  ;;  %4015 = vmatprep.subr.bf16.mxu0 %v8785_v13  ;;  %v8853_v12 = vld [vmem:[#allocation7 + $0xe8] ss:$16 sps:$4 sm:$0xff]   ;;  %v8858_v13 = vld [vmem:[#allocation7 + $0xc4] ss:$16 sps:$4 sm:$0xff]  }
 0x25e   :  { %4056 = vmatprep.subr.bf16.mxu1 %v8788_v14  ;;  %v8859_v14 = vld [vmem:[#allocation7 + $0xc8] ss:$16 sps:$4 sm:$0xff]  }
 0x260   :  { %4016 = vmatpush1.bf16.msra.mxu0 %v8783_v15  ;;  %v8867_v15 = vld [vmem:[#allocation7 + $0xac] ss:$16 sps:$4 sm:$0xff]  }
 0x261   :  { %4057 = vmatpush1.bf16.msra.mxu1 %v8786_v16  ;;  %4017 = vmatprep.subr.bf16.mxu0 %v8791_v18  ;;  %v8862_v16 = vld [vmem:[#allocation7 + $0xa0] ss:$16 sps:$4 sm:$0xff]   ;;  %v8865_v18 = vld [vmem:[#allocation7 + $0xa8] ss:$16 sps:$4 sm:$0xff]  }
 0x262   :  { %4058 = vmatprep.subr.bf16.mxu1 %v8794_v19  ;;  %v8870_v19 = vld [vmem:[#allocation7 + $0x84] ss:$16 sps:$4 sm:$0xff]  }
 0x264   :  { %4018 = vmatpush1.bf16.msra.mxu0 %v8789_v20  ;;  %v8873_v20 = vld [vmem:[#allocation7 + $0x8c] ss:$16 sps:$4 sm:$0xff]  }
 0x265   :  { %4059 = vmatpush1.bf16.msra.mxu1 %v8792_v45  ;;  %4019 = vmatprep.subr.bf16.mxu0 %v8797_v46  ;;  %v8868_v45 = vld [vmem:[#allocation7 + $0x80] ss:$16 sps:$4 sm:$0xff]   ;;  %v8871_v46 = vld [vmem:[#allocation7 + $0x88] ss:$16 sps:$4 sm:$0xff]  }
 0x266   :  { %4060 = vmatprep.subr.bf16.mxu1 %v8800_v55  ;;  %v8876_v55 = vld [vmem:[#allocation7 + $0x64] ss:$16 sps:$4 sm:$0xff]  }
 0x268   :  { %4020 = vmatpush1.bf16.msra.mxu0 %v8795_v22  ;;  %v8879_v22 = vld [vmem:[#allocation7 + $0x6c] ss:$16 sps:$4 sm:$0xff]  }
 0x269   :  { %4061 = vmatpush1.bf16.msra.mxu1 %v8798_v25  ;;  %4021 = vmatprep.subr.bf16.mxu0 %v8803_v61  ;;  %v8874_v25 = vld [vmem:[#allocation7 + $0x60] ss:$16 sps:$4 sm:$0xff]   ;;  %v8877_v61 = vld [vmem:[#allocation7 + $0x68] ss:$16 sps:$4 sm:$0xff]  }
 0x26a   :  { %4062 = vmatprep.subr.bf16.mxu1 %v8806_v26  ;;  %v8882_v26 = vld [vmem:[#allocation7 + $0x44] ss:$16 sps:$4 sm:$0xff]  }
 0x26c   :  { %4022 = vmatpush2.bf16.msra.mxu0 %v8801_v28  ;;  %v8885_v28 = vld [vmem:[#allocation7 + $0x4c] ss:$16 sps:$4 sm:$0xff]  }
 0x26d   :  { %4063 = vmatpush2.bf16.msra.mxu1 %v8804_v29  ;;  %4023 = vmatprep.subr.bf16.mxu0 %v8809_v30  ;;  %v8880_v29 = vld [vmem:[#allocation7 + $0x40] ss:$16 sps:$4 sm:$0xff]   ;;  %v8883_v30 = vld [vmem:[#allocation7 + $0x48] ss:$16 sps:$4 sm:$0xff]  }
 0x26e   :  { %4064 = vmatprep.subr.bf16.mxu1 %v8812_v32  ;;  %v8888_v32 = vld [vmem:[#allocation7 + $0x24] ss:$16 sps:$4 sm:$0xff]  }
 0x270   :  { %4024 = vmatpush2.bf16.msra.mxu0 %v8807_v33  ;;  %v8891_v33 = vld [vmem:[#allocation7 + $0x2c] ss:$16 sps:$4 sm:$0xff]  }
 0x271   :  { %4065 = vmatpush2.bf16.msra.mxu1 %v8810_v36  ;;  %4025 = vmatprep.subr.bf16.mxu0 %v8815_v37  ;;  %v8886_v36 = vld [vmem:[#allocation7 + $0x20] ss:$16 sps:$4 sm:$0xff]   ;;  %v8889_v37 = vld [vmem:[#allocation7 + $0x28] ss:$16 sps:$4 sm:$0xff]  }
 0x272   :  { %4066 = vmatprep.subr.bf16.mxu1 %v8818_v38  ;;  %v8894_v38 = vld [vmem:[#allocation7 + $0x4] ss:$16 sps:$4 sm:$0xff]  }
 0x274   :  { %4026 = vmatpush2.bf16.msra.mxu0 %v8813_v39  ;;  %v8897_v39 = vld [vmem:[#allocation7 + $0xc] ss:$16 sps:$4 sm:$0xff]  }
 0x275   :  { %4067 = vmatpush2.bf16.msra.mxu1 %v8816_v40  ;;  %4027 = vmatprep.subr.bf16.mxu0 %v8821_v42  ;;  %v8892_v40 = vld [vmem:[#allocation7] ss:$16 sps:$4 sm:$0xff]   ;;  %v8895_v42 = vld [vmem:[#allocation7 + $0x8] ss:$16 sps:$4 sm:$0xff]  }
 0x276   :  { %4068 = vmatprep.subr.bf16.mxu1 %v8824_v44  ;;  %v8900_v44 = vld [vmem:[#allocation7 + $0x1e4] ss:$16 sps:$4 sm:$0xff]  }
 0x278   :  { %4028 = vmatpush2.bf16.msra.mxu0 %v8819_v47  ;;  %v8903_v47 = vld [vmem:[#allocation7 + $0x1ec] ss:$16 sps:$4 sm:$0xff]  }
 0x279   :  { %4069 = vmatpush2.bf16.msra.mxu1 %v8822_v2  ;;  %4029 = vmatprep.subr.bf16.mxu0 %v8827_v3  ;;  %v8898_v2 = vld [vmem:[#allocation7 + $0x1e0] ss:$16 sps:$4 sm:$0xff]   ;;  %v8901_v3 = vld [vmem:[#allocation7 + $0x1e8] ss:$16 sps:$4 sm:$0xff]  }
 0x27a   :  { %4070 = vmatprep.subr.bf16.mxu1 %v8830_v48  ;;  %v8906_v48 = vld [vmem:[#allocation7 + $0x1c4] ss:$16 sps:$4 sm:$0xff]  }
 0x27c   :  { %4030 = vmatpush2.bf16.msra.mxu0 %v8825_v50  ;;  %v8909_v50 = vld [vmem:[#allocation7 + $0x1cc] ss:$16 sps:$4 sm:$0xff]  }
 0x27d   :  { %4071 = vmatpush2.bf16.msra.mxu1 %v8828_v31  ;;  %4031 = vmatprep.subr.bf16.mxu0 %v8833_v52  ;;  %v8904_v31 = vld [vmem:[#allocation7 + $0x1c0] ss:$16 sps:$4 sm:$0xff]   ;;  %v8907_v52 = vld [vmem:[#allocation7 + $0x1c8] ss:$16 sps:$4 sm:$0xff]  }
 0x27e   :  { %4072 = vmatprep.subr.bf16.mxu1 %v8836_v53 }
 0x280   :  { %4032 = vmatpush2.bf16.msra.mxu0 %v8831_v21 }
 0x281   :  { %4073 = vmatpush2.bf16.msra.mxu1 %v8834_v54  ;;  %4033 = vmatprep.subr.bf16.mxu0 %v8839_v56  ;;  %v8912_v56 = vld [vmem:[#allocation7 + $0x1a4] ss:$16 sps:$4 sm:$0xff]  }
 0x282   :  { %4074 = vmatprep.subr.bf16.mxu1 %v8842_v57  ;;  %v8915_v57 = vld [vmem:[#allocation7 + $0x1ac] ss:$16 sps:$4 sm:$0xff]  }
 0x284   :  { %4034 = vmatpush2.bf16.msra.mxu0 %v8837_v58 }
 0x285   :  { %4075 = vmatpush2.bf16.msra.mxu1 %v8840_v49  ;;  %4035 = vmatprep.subr.bf16.mxu0 %v8845_v59  ;;  %v8910_v59 = vld [vmem:[#allocation7 + $0x1a0] ss:$16 sps:$4 sm:$0xff]  }
 0x286   :  { %4076 = vmatprep.subr.bf16.mxu1 %v8848_v60  ;;  %v8913_v60 = vld [vmem:[#allocation7 + $0x1a8] ss:$16 sps:$4 sm:$0xff]  }
 0x288   :  { %4036 = vmatpush2.bf16.msra.mxu0 %v8843_v62 }
 0x289   :  { %4077 = vmatpush2.bf16.msra.mxu1 %v8846_v34  ;;  %4512 = vmatprep.subr.bf16.mxu0 %v8852_v11  ;;  %v8930_v11 = vld [vmem:[#allocation7 + $0x144] ss:$16 sps:$4 sm:$0xff]  }
 0x28b   :  { %v3793_v35 = vpop.f32.mrf.mxu0  ;;  %4038 = vmatmul.mubr.bf16.vlgmr.msra.gmra.mxu0 %v9762_v17  ;;  %v8855_v17 = vld [vmem:[#allocation7 + $0xec] ss:$16 sps:$4 sm:$0xff]  }
 0x28c   :  { %v3834_v0 = vpop.f32.mrf.mxu1  ;;  %4079 = vmatmul.mubr.bf16.vlgmr.msra.gmra.mxu1 %v9765_v51  ;;  %v3794_v1 = vadd.f32 %v3793_v35, %v9774_v63  ;;  %v8861_v51 = vld [vmem:[#allocation7 + $0xcc] ss:$16 sps:$4 sm:$0xff]   ;;  %4553 = vmatprep.subr.bf16.mxu1 %v8855_v17  ;;  %v8856_v63 = vld [vmem:[#allocation7 + $0xc0] ss:$16 sps:$4 sm:$0xff]  }
 0x28d   :  { %v3795_v23 = vpop.f32.mrf.mxu0  ;;  %4513 = vmatpush1.bf16.msra.mxu0 %v8850_v10  ;;  %4554 = vmatpush1.bf16.msra.mxu1 %v8853_v12  ;;  %v8925_v10 = vld [vmem:[#allocation7 + $0x168] ss:$16 sps:$4 sm:$0xff]   ;;  %v8933_v12 = vld [vmem:[#allocation7 + $0x14c] ss:$16 sps:$4 sm:$0xff]   ;;  %v8928_v17 = vld [vmem:[#allocation7 + $0x140] ss:$16 sps:$4 sm:$0xff]  }
 0x28e   :  { %v3836_v24 = vpop.f32.mrf.mxu1  ;;  %v9782_v4 = vadd.f32 %v3834_v0, %v3794_v1  ;;  %v3796_v5 = vadd.f32 %v3795_v23, %v9777_v6  ;;  %4514 = vmatprep.subr.bf16.mxu0 %v8858_v13  ;;  %v8864_v6 = vld [vmem:[#allocation7 + $0xa4] ss:$16 sps:$4 sm:$0xff]   ;;  %4555 = vmatprep.subr.bf16.mxu1 %v8861_v51  ;;  %v8931_v13 = vld [vmem:[#allocation7 + $0x148] ss:$16 sps:$4 sm:$0xff]  }
 0x28f   :  { %v3797_v41 = vpop.f32.mrf.mxu0  ;;  %v8918_v23 = vld [vmem:[#allocation7 + $0x184] ss:$16 sps:$4 sm:$0xff]  }
 0x290   :  { %v3838_v7 = vpop.f32.mrf.mxu1  ;;  %v9785_v8 = vadd.f32 %v3836_v24, %v3796_v5  ;;  %v8921_v24 = vld [vmem:[#allocation7 + $0x18c] ss:$16 sps:$4 sm:$0xff]   ;;  %v8916_v41 = vld [vmem:[#allocation7 + $0x180] ss:$16 sps:$4 sm:$0xff]   ;;  %v8936_v51 = vld [vmem:[#allocation7 + $0x124] ss:$16 sps:$4 sm:$0xff]  }
 0x291   :  { %v3798_v9 = vpop.f32.mrf.mxu0  ;;  %4515 = vmatpush1.bf16.msra.mxu0 %v8856_v63  ;;  %4556 = vmatpush1.bf16.msra.mxu1 %v8859_v14  ;;  %v8919_v7 = vld [vmem:[#allocation7 + $0x188] ss:$16 sps:$4 sm:$0xff]   ;;  %v8939_v63 = vld [vmem:[#allocation7 + $0x12c] ss:$16 sps:$4 sm:$0xff]   ;;  %v8934_v14 = vld [vmem:[#allocation7 + $0x120] ss:$16 sps:$4 sm:$0xff]  }
 0x292   :  { %v3839_v27 = vpop.f32.mrf.mxu1  ;;  %4516 = vmatprep.subr.bf16.mxu0 %v8864_v6  ;;  %4557 = vmatprep.subr.bf16.mxu1 %v8867_v15  ;;  %v8924_v9 = vld [vmem:[#allocation7 + $0x164] ss:$16 sps:$4 sm:$0xff]   ;;  %v8937_v6 = vld [vmem:[#allocation7 + $0x128] ss:$16 sps:$4 sm:$0xff]  }
 0x293   :  { %v8927_v27 = vld [vmem:[#allocation7 + $0x16c] ss:$16 sps:$4 sm:$0xff]   ;;  %v8942_v15 = vld [vmem:[#allocation7 + $0x104] ss:$16 sps:$4 sm:$0xff]  }
 0x295   :  { %4517 = vmatpush1.bf16.msra.mxu0 %v8862_v16  ;;  %4558 = vmatpush1.bf16.msra.mxu1 %v8865_v18  ;;  %v8940_v16 = vld [vmem:[#allocation7 + $0x100] ss:$16 sps:$4 sm:$0xff]   ;;  %v8943_v18 = vld [vmem:[#allocation7 + $0x108] ss:$16 sps:$4 sm:$0xff]  }
 0x296   :  { %4518 = vmatprep.subr.bf16.mxu0 %v8870_v19  ;;  %4559 = vmatprep.subr.bf16.mxu1 %v8873_v20  ;;  %v8945_v19 = vld [vmem:[#allocation7 + $0x10c] ss:$16 sps:$4 sm:$0xff]  }
 0x299   :  { %4519 = vmatpush1.bf16.msra.mxu0 %v8868_v45  ;;  %4560 = vmatpush1.bf16.msra.mxu1 %v8871_v46 }
 0x29a   :  { %4520 = vmatprep.subr.bf16.mxu0 %v8876_v55  ;;  %4561 = vmatprep.subr.bf16.mxu1 %v8879_v22 }
 0x29d   :  { %4521 = vmatpush1.bf16.msra.mxu0 %v8874_v25  ;;  %4562 = vmatpush1.bf16.msra.mxu1 %v8877_v61 }
 0x29e   :  { %4522 = vmatprep.subr.bf16.mxu0 %v8882_v26  ;;  %4563 = vmatprep.subr.bf16.mxu1 %v8885_v28 }
 0x2a1   :  { %4523 = vmatpush1.bf16.msra.mxu0 %v8880_v29  ;;  %4564 = vmatpush1.bf16.msra.mxu1 %v8883_v30 }
 0x2a2   :  { %4524 = vmatprep.subr.bf16.mxu0 %v8888_v32  ;;  %4565 = vmatprep.subr.bf16.mxu1 %v8891_v33 }
 0x2a5   :  { %4525 = vmatpush1.bf16.msra.mxu0 %v8886_v36  ;;  %4566 = vmatpush1.bf16.msra.mxu1 %v8889_v37 }
 0x2a6   :  { %4526 = vmatprep.subr.bf16.mxu0 %v8894_v38  ;;  %4567 = vmatprep.subr.bf16.mxu1 %v8897_v39 }
 0x2a9   :  { %4527 = vmatpush1.bf16.msra.mxu0 %v8892_v40  ;;  %4568 = vmatpush1.bf16.msra.mxu1 %v8895_v42 }
 0x2aa   :  { %4528 = vmatprep.subr.bf16.mxu0 %v8900_v44  ;;  %4569 = vmatprep.subr.bf16.mxu1 %v8903_v47 }
 0x2ad   :  { %4529 = vmatpush2.bf16.msra.mxu0 %v8898_v2  ;;  %4570 = vmatpush2.bf16.msra.mxu1 %v8901_v3 }
 0x2ae   :  { %4530 = vmatprep.subr.bf16.mxu0 %v8906_v48  ;;  %4571 = vmatprep.subr.bf16.mxu1 %v8909_v50 }
 0x2b1   :  { %4531 = vmatpush2.bf16.msra.mxu0 %v8904_v31  ;;  %4572 = vmatpush2.bf16.msra.mxu1 %v8907_v52  ;;  %v9572_v52 = vmov 0.0  }
 0x2b2   :  { %4532 = vmatprep.subr.bf16.mxu0 %v8912_v56  ;;  %4573 = vmatprep.subr.bf16.mxu1 %v8915_v57 }
 0x2b5   :  { %4533 = vmatpush2.bf16.msra.mxu0 %v8910_v59  ;;  %4574 = vmatpush2.bf16.msra.mxu1 %v8913_v60 }
 0x2b6   :  { %4534 = vmatprep.subr.bf16.mxu0 %v8918_v23  ;;  %4575 = vmatprep.subr.bf16.mxu1 %v8921_v24 }
 0x2b9   :  { %4535 = vmatpush2.bf16.msra.mxu0 %v8916_v41  ;;  %4576 = vmatpush2.bf16.msra.mxu1 %v8919_v7 }
 0x2ba   :  { %4536 = vmatprep.subr.bf16.mxu0 %v8924_v9  ;;  %4577 = vmatprep.subr.bf16.mxu1 %v8927_v27  ;;  %v8948_v9 = vld [vmem:[#allocation11 + $0x154] ss:$24 sps:$4 sm:$0xff]  }
 0x2bb   :  { %v8951_v27 = vld [vmem:[#allocation11 + $0x454] ss:$24 sps:$4 sm:$0xff]  }
 0x2bd   :  { %4578 = vmatpush2.bf16.msra.mxu1 %v8925_v10  ;;  %v8949_v10 = vld [vmem:[#allocation11 + $0x450] ss:$24 sps:$4 sm:$0xff]  }
 0x2be   :  { %4579 = vmatprep.subr.bf16.mxu1 %v8933_v12  ;;  %v8957_v12 = vld [vmem:[#allocation11 + $0x424] ss:$24 sps:$4 sm:$0xff]  }
 0x2c1   :  { %4580 = vmatpush2.bf16.msra.mxu1 %v8931_v13  ;;  %v8955_v13 = vld [vmem:[#allocation11 + $0x420] ss:$24 sps:$4 sm:$0xff]  }
 0x2c2   :  { %4581 = vmatprep.subr.bf16.mxu1 %v8939_v63  ;;  %v8963_v63 = vld [vmem:[#allocation11 + $0x3f4] ss:$24 sps:$4 sm:$0xff]  }
 0x2c5   :  { %4582 = vmatpush2.bf16.msra.mxu1 %v8937_v6  ;;  %v8961_v6 = vld [vmem:[#allocation11 + $0x3f0] ss:$24 sps:$4 sm:$0xff]  }
 0x2c6   :  { %4583 = vmatprep.subr.bf16.mxu1 %v8945_v19  ;;  %v8967_v19 = vld [vmem:[#allocation11 + $0x3c0] ss:$24 sps:$4 sm:$0xff]  }
 0x2c9   :  { %4584 = vmatpush2.bf16.msra.mxu1 %v8943_v18  ;;  %v8964_v18 = vld [vmem:[#allocation11 + $0xc0] ss:$24 sps:$4 sm:$0xff]  }
 0x2ca   :  { %5963 = vmatprep.subr.bf16.mxu1 %v8951_v27  ;;  %v9039_v27 = vld [vmem:[#allocation11 + $0x480] ss:$24 sps:$4 sm:$0xff]  }
 0x2cb   :  { %v3875_v53 = vpop.f32.mrf.mxu0 }
 0x2cc   :  { %v3916_v21 = vpop.f32.mrf.mxu1  ;;  %v3876_v54 = vadd.f32 %v3875_v53, %v9782_v4 }
 0x2cd   :  { %v3877_v58 = vpop.f32.mrf.mxu0 }
 0x2ce   :  { %v3918_v49 = vpop.f32.mrf.mxu1  ;;  %v3917_v62 = vadd.f32 %v3916_v21, %v3876_v54  ;;  %v3878_v34 = vadd.f32 %v3877_v58, %v9785_v8  ;;  %v8922_v8 = vld [vmem:[#allocation7 + $0x160] ss:$16 sps:$4 sm:$0xff]  }
 0x2cf   :  { %v3879_v35 = vpop.f32.mrf.mxu0  ;;  %4537 = vmatpush2.bf16.msra.mxu0 %v8922_v8  ;;  %v8946_v8 = vld [vmem:[#allocation11 + $0x150] ss:$24 sps:$4 sm:$0xff]  }
 0x2d0   :  { %v3920_v0 = vpop.f32.mrf.mxu1  ;;  %v3919_v1 = vadd.f32 %v3918_v49, %v3878_v34  ;;  %4538 = vmatprep.subr.bf16.mxu0 %v8930_v11  ;;  %v8954_v11 = vld [vmem:[#allocation11 + $0x124] ss:$24 sps:$4 sm:$0xff]  }
 0x2d1   :  { %v3880_v5 = vpop.f32.mrf.mxu0 }
 0x2d2   :  { %v3921_v4 = vpop.f32.mrf.mxu1 }
 0x2d3   :  { %4539 = vmatpush2.bf16.msra.mxu0 %v8928_v17  ;;  %v8952_v17 = vld [vmem:[#allocation11 + $0x120] ss:$24 sps:$4 sm:$0xff]  }
 0x2d4   :  { %4540 = vmatprep.subr.bf16.mxu0 %v8936_v51  ;;  %v8960_v51 = vld [vmem:[#allocation11 + $0xf4] ss:$24 sps:$4 sm:$0xff]  }
 0x2d7   :  { %4541 = vmatpush2.bf16.msra.mxu0 %v8934_v14  ;;  %v8958_v14 = vld [vmem:[#allocation11 + $0xf0] ss:$24 sps:$4 sm:$0xff]  }
 0x2d8   :  { %4542 = vmatprep.subr.bf16.mxu0 %v8942_v15  ;;  %v8966_v15 = vld [vmem:[#allocation11 + $0xc4] ss:$24 sps:$4 sm:$0xff]  }
 0x2db   :  { %4543 = vmatpush2.bf16.msra.mxu0 %v8940_v16  ;;  %v8969_v16 = vld [vmem:[#allocation11 + $0x3c4] ss:$24 sps:$4 sm:$0xff]  }
 0x2dc   :  { %5922 = vmatprep.subr.bf16.mxu0 %v8948_v9  ;;  %v9036_v9 = vld [vmem:[#allocation11 + $0x180] ss:$24 sps:$4 sm:$0xff]  }
 0x30b   :  { %v3957_v20 = vpop.f32.mrf.mxu0 }
 0x30c   :  { %v3998_v45 = vpop.f32.mrf.mxu1  ;;  %v3958_v46 = vadd.f32 %v3957_v20, %v3917_v62  ;;  %v8972_v20 = vld [vmem:[#allocation11 + $0x94] ss:$24 sps:$4 sm:$0xff]  }
 0x30d   :  { %v3959_v55 = vpop.f32.mrf.mxu0 }
 0x30e   :  { %v4000_v22 = vpop.f32.mrf.mxu1  ;;  %v3999_v25 = vadd.f32 %v3998_v45, %v3958_v46  ;;  %v3960_v30 = vadd.f32 %v3959_v55, %v3919_v1  ;;  %v8975_v45 = vld [vmem:[#allocation11 + $0x394] ss:$24 sps:$4 sm:$0xff]   ;;  %v8970_v46 = vld [vmem:[#allocation11 + $0x90] ss:$24 sps:$4 sm:$0xff]  }
 0x30f   :  { %v3961_v61 = vpop.f32.mrf.mxu0  ;;  %v8973_v55 = vld [vmem:[#allocation11 + $0x390] ss:$24 sps:$4 sm:$0xff]  }
 0x310   :  { %v4002_v26 = vpop.f32.mrf.mxu1  ;;  %v4001_v36 = vadd.f32 %v4000_v22, %v3960_v30  ;;  %v8978_v22 = vld [vmem:[#allocation11 + $0x64] ss:$24 sps:$4 sm:$0xff]   ;;  %v8976_v61 = vld [vmem:[#allocation11 + $0x60] ss:$24 sps:$4 sm:$0xff]   ;;  %v8982_v30 = vld [vmem:[#allocation11 + $0x30] ss:$24 sps:$4 sm:$0xff]  }
 0x311   :  { %v3962_v28 = vpop.f32.mrf.mxu0  ;;  %v8979_v26 = vld [vmem:[#allocation11 + $0x360] ss:$24 sps:$4 sm:$0xff]  }
 0x312   :  { %v4003_v29 = vpop.f32.mrf.mxu1  ;;  %v8984_v28 = vld [vmem:[#allocation11 + $0x34] ss:$24 sps:$4 sm:$0xff]  }
 0x313   :  { %v8987_v29 = vld [vmem:[#allocation11 + $0x334] ss:$24 sps:$4 sm:$0xff]  }
 0x34b   :  { %v4039_v32 = vpop.f32.mrf.mxu0 }
 0x34c   :  { %v4080_v33 = vpop.f32.mrf.mxu1  ;;  %v4040_v37 = vadd.f32 %v4039_v32, %v3999_v25  ;;  %v8981_v25 = vld [vmem:[#allocation11 + $0x364] ss:$24 sps:$4 sm:$0xff]   ;;  %v8985_v32 = vld [vmem:[#allocation11 + $0x330] ss:$24 sps:$4 sm:$0xff]  }
 0x34d   :  { %v4041_v38 = vpop.f32.mrf.mxu0 }
 0x34e   :  { %v4082_v39 = vpop.f32.mrf.mxu1  ;;  %v4081_v40 = vadd.f32 %v4080_v33, %v4040_v37  ;;  %v4042_v42 = vadd.f32 %v4041_v38, %v4001_v36  ;;  %v8990_v33 = vld [vmem:[#allocation11 + $0x4] ss:$24 sps:$4 sm:$0xff]   ;;  %v8988_v37 = vld [vmem:[#allocation11] ss:$24 sps:$4 sm:$0xff]  }
 0x34f   :  { %v4043_v44 = vpop.f32.mrf.mxu0  ;;  %v8993_v36 = vld [vmem:[#allocation11 + $0x304] ss:$24 sps:$4 sm:$0xff]   ;;  %v8991_v38 = vld [vmem:[#allocation11 + $0x300] ss:$24 sps:$4 sm:$0xff]  }
 0x350   :  { %v4084_v47 = vpop.f32.mrf.mxu1  ;;  %v4087_v2 = vmul.f32 0.04, %v4081_v40  ;;  %v4083_v3 = vadd.f32 %v4082_v39, %v4042_v42  ;;  %v8996_v39 = vld [vmem:[#allocation11 + $0x2d4] ss:$24 sps:$4 sm:$0xff]   ;;  %v8994_v42 = vld [vmem:[#allocation11 + $0x2d0] ss:$24 sps:$4 sm:$0xff]  }
 0x351   :  { %v4044_v48 = vpop.f32.mrf.mxu0  ;;  %v8999_v40 = vld [vmem:[#allocation11 + $0x5d4] ss:$24 sps:$4 sm:$0xff]   ;;  %v8997_v44 = vld [vmem:[#allocation11 + $0x5d0] ss:$24 sps:$4 sm:$0xff]   ;;  %v9002_v47 = vld [vmem:[#allocation11 + $0x2a4] ss:$24 sps:$4 sm:$0xff]  }
 0x352   :  { %v4085_v50 = vpop.f32.mrf.mxu1  ;;  %vm4091_vm0 = vcmp.ge.f32.partialorder %v4087_v2, 0.5  ;;  %v4088_v31 = vmul.f32 0.04, %v4083_v3  ;;  %v4105_v49 = vrot.slane %v4087_v2, 2  ;;  %v9000_v3 = vld [vmem:[#allocation11 + $0x2a0] ss:$24 sps:$4 sm:$0xff]  }
 0x353   :  { %v7657_v53 = vsel %vm4091_vm0, 1.0, %v9572_v52  ;;  %v9003_v48 = vld [vmem:[#allocation11 + $0x5a0] ss:$24 sps:$4 sm:$0xff]   ;;  %v9008_v50 = vld [vmem:[#allocation11 + $0x274] ss:$24 sps:$4 sm:$0xff]  }
 0x354   :  { %v4097_v21 = vsub.f32 1.0, %v7657_v53  ;;  %vm4092_vm1 = vcmp.ge.f32.partialorder %v4088_v31, 0.5  ;;  %v4106_v34 = vrot.slane %v4088_v31, 2 }
 0x355   :  { %v7658_v54 = vsel %vm4092_vm1, 1.0, %v9572_v52 }
 0x356   :  { %v4099_v56 = vmul.f32 %v4097_v21, %v4087_v2  ;;  %v4098_v57 = vsub.f32 1.0, %v7658_v54  ;;  %v9005_v2 = vld [vmem:[#allocation11 + $0x5a4] ss:$24 sps:$4 sm:$0xff]   ;;  %v9009_v21 = vld [vmem:[#allocation11 + $0x570] ss:$24 sps:$4 sm:$0xff]  }
 0x358   :  { %v4101_v58 = vmul.f32 0.2, %v4099_v56  ;;  %v4100_v59 = vmul.f32 %v4098_v57, %v4088_v31  ;;  %v9011_v31 = vld [vmem:[#allocation11 + $0x574] ss:$24 sps:$4 sm:$0xff]   ;;  %v9017_v56 = vld [vmem:[#allocation11 + $0x544] ss:$24 sps:$4 sm:$0xff]  }
 0x359   :  { %v9012_v57 = vld [vmem:[#allocation11 + $0x240] ss:$24 sps:$4 sm:$0xff]  }
 0x35a   :  { %v4109_v60 = vadd.f32 %v4105_v49, %v4101_v58  ;;  %v4102_v62 = vmul.f32 0.2, %v4100_v59  ;;  %v9015_v58 = vld [vmem:[#allocation11 + $0x540] ss:$24 sps:$4 sm:$0xff]   ;;  %v9020_v49 = vld [vmem:[#allocation11 + $0x214] ss:$24 sps:$4 sm:$0xff]  }
 0x35b   :  { %v9023_v59 = vld [vmem:[#allocation11 + $0x514] ss:$24 sps:$4 sm:$0xff]  }
 0x35c   :  { %vm4111_vm2 = vcmp.ge.f32.partialorder %v4109_v60, 0.5  ;;  %v4110_v35 = vadd.f32 %v4106_v34, %v4102_v62  ;;  %v9018_v60 = vld [vmem:[#allocation11 + $0x210] ss:$24 sps:$4 sm:$0xff]   ;;  %v9026_v34 = vld [vmem:[#allocation11 + $0x1e4] ss:$24 sps:$4 sm:$0xff]  }
 0x35d   :  { %v7659_v0 = vsel %vm4111_vm2, 1.0, %v9572_v52  ;;  %v9021_v62 = vld [vmem:[#allocation11 + $0x510] ss:$24 sps:$4 sm:$0xff]  }
 0x35e   :  { %v4119_v1 = vrot.slane %v7659_v0, 6  ;;  %vm4112_vm3 = vcmp.ge.f32.partialorder %v4110_v35, 0.5  ;;  %v9029_v35 = vld [vmem:[#allocation11 + $0x4e4] ss:$24 sps:$4 sm:$0xff]   ;;  %v9024_v0 = vld [vmem:[#allocation11 + $0x1e0] ss:$24 sps:$4 sm:$0xff]  }
 0x35f   :  { %v7660_v23 = vsel %vm4112_vm3, 1.0, %v9572_v52 }
 0x360   :  { %v4120_v24 = vrot.slane %v7660_v23, 6  ;;  %v4124_v5 = vsel %vm4123_vm4, %v7657_v53, %v4119_v1  ;;  %v9006_v53 = vld [vmem:[#allocation11 + $0x270] ss:$24 sps:$4 sm:$0xff]   ;;  %v9027_v1 = vld [vmem:[#allocation11 + $0x4e0] ss:$24 sps:$4 sm:$0xff]  }
 0x361   :  { %v4126_v7 = vpack.c.bf16 %v4124_v5, %v4124_v5  ;;  %v9032_v23 = vld [vmem:[#allocation11 + $0x1b4] ss:$24 sps:$4 sm:$0xff]   ;;  %v9030_v5 = vld [vmem:[#allocation11 + $0x1b0] ss:$24 sps:$4 sm:$0xff]  }
 0x362   :  { %v4125_v4 = vsel %vm4123_vm4, %v7658_v54, %v4120_v24  ;;  %v9014_v54 = vld [vmem:[#allocation11 + $0x244] ss:$24 sps:$4 sm:$0xff]   ;;  %v9035_v24 = vld [vmem:[#allocation11 + $0x4b4] ss:$24 sps:$4 sm:$0xff]  }
 0x363   :  { %v4127_v41 = vpack.c.bf16 %v4125_v4, %v4125_v4  ;;  %v9033_v4 = vld [vmem:[#allocation11 + $0x4b0] ss:$24 sps:$4 sm:$0xff]  }
 0x365   :  { %4544 = vmatprep.mubr.bf16.mxu0 %v4127_v41  ;;  %4585 = vmatprep.mubr.bf16.mxu1 %v4127_v41  ;;  %v9038_v41 = vld [vmem:[#allocation11 + $0x184] ss:$24 sps:$4 sm:$0xff]  }
 0x366   :  { %4545 = vmatmul.mubr.bf16.vlgmr.msra.gmra.mxu0 %v4126_v7  ;;  %4586 = vmatmul.mubr.bf16.vlgmr.msra.gmra.mxu1 %v4126_v7  ;;  %v9041_v7 = vld [vmem:[#allocation11 + $0x484] ss:$24 sps:$4 sm:$0xff]  }
 0x367   :  { %5923 = vmatpush1.bf16.msra.mxu0 %v8946_v8  ;;  %5964 = vmatpush1.bf16.msra.mxu1 %v8949_v10  ;;  %v9044_v8 = vld [vmem:[#allocation11 + $0x15c] ss:$24 sps:$4 sm:$0xff]  }
 0x368   :  { %5924 = vmatprep.subr.bf16.mxu0 %v8954_v11  ;;  %5965 = vmatprep.subr.bf16.mxu1 %v8957_v12  ;;  %v9047_v10 = vld [vmem:[#allocation11 + $0x45c] ss:$24 sps:$4 sm:$0xff]  }
 0x36b   :  { %5925 = vmatpush1.bf16.msra.mxu0 %v8952_v17  ;;  %5966 = vmatpush1.bf16.msra.mxu1 %v8955_v13 }
 0x36c   :  { %5926 = vmatprep.subr.bf16.mxu0 %v8960_v51  ;;  %5967 = vmatprep.subr.bf16.mxu1 %v8963_v63 }
 0x36f   :  { %5927 = vmatpush1.bf16.msra.mxu0 %v8958_v14  ;;  %5968 = vmatpush1.bf16.msra.mxu1 %v8961_v6 }
 0x370   :  { %5928 = vmatprep.subr.bf16.mxu0 %v8966_v15  ;;  %5969 = vmatprep.subr.bf16.mxu1 %v8969_v16 }
 0x373   :  { %5929 = vmatpush1.bf16.msra.mxu0 %v8964_v18  ;;  %5970 = vmatpush1.bf16.msra.mxu1 %v8967_v19 }
 0x374   :  { %5930 = vmatprep.subr.bf16.mxu0 %v8972_v20  ;;  %5971 = vmatprep.subr.bf16.mxu1 %v8975_v45 }
 0x377   :  { %5931 = vmatpush1.bf16.msra.mxu0 %v8970_v46  ;;  %5972 = vmatpush1.bf16.msra.mxu1 %v8973_v55 }
 0x378   :  { %5932 = vmatprep.subr.bf16.mxu0 %v8978_v22  ;;  %5973 = vmatprep.subr.bf16.mxu1 %v8981_v25 }
 0x37b   :  { %5933 = vmatpush1.bf16.msra.mxu0 %v8976_v61  ;;  %5974 = vmatpush1.bf16.msra.mxu1 %v8979_v26 }
 0x37c   :  { %5934 = vmatprep.subr.bf16.mxu0 %v8984_v28  ;;  %5975 = vmatprep.subr.bf16.mxu1 %v8987_v29 }
 0x37f   :  { %5935 = vmatpush1.bf16.msra.mxu0 %v8982_v30  ;;  %5976 = vmatpush1.bf16.msra.mxu1 %v8985_v32 }
 0x380   :  { %5936 = vmatprep.subr.bf16.mxu0 %v8990_v33  ;;  %5977 = vmatprep.subr.bf16.mxu1 %v8993_v36 }
 0x383   :  { %5937 = vmatpush1.bf16.msra.mxu0 %v8988_v37  ;;  %5978 = vmatpush1.bf16.msra.mxu1 %v8991_v38 }
 0x384   :  { %5938 = vmatprep.subr.bf16.mxu0 %v8996_v39  ;;  %5979 = vmatprep.subr.bf16.mxu1 %v8999_v40 }
 0x387   :  { %5939 = vmatpush2.bf16.msra.mxu0 %v8994_v42  ;;  %5980 = vmatpush2.bf16.msra.mxu1 %v8997_v44 }
 0x388   :  { %5940 = vmatprep.subr.bf16.mxu0 %v9002_v47  ;;  %5981 = vmatprep.subr.bf16.mxu1 %v9005_v2 }
 0x38b   :  { %5941 = vmatpush2.bf16.msra.mxu0 %v9000_v3  ;;  %5982 = vmatpush2.bf16.msra.mxu1 %v9003_v48 }
 0x38c   :  { %5942 = vmatprep.subr.bf16.mxu0 %v9008_v50  ;;  %5983 = vmatprep.subr.bf16.mxu1 %v9011_v31 }
 0x38f   :  { %5943 = vmatpush2.bf16.msra.mxu0 %v9006_v53  ;;  %5984 = vmatpush2.bf16.msra.mxu1 %v9009_v21  ;;  %v9812_v21 = vsub.s32 0, %v9668_v43 }
 0x390   :  { %5944 = vmatprep.subr.bf16.mxu0 %v9014_v54  ;;  %5985 = vmatprep.subr.bf16.mxu1 %v9017_v56 }
 0x393   :  { %5945 = vmatpush2.bf16.msra.mxu0 %v9012_v57  ;;  %5986 = vmatpush2.bf16.msra.mxu1 %v9015_v58 }
 0x394   :  { %5946 = vmatprep.subr.bf16.mxu0 %v9020_v49  ;;  %5987 = vmatprep.subr.bf16.mxu1 %v9023_v59 }
 0x397   :  { %5947 = vmatpush2.bf16.msra.mxu0 %v9018_v60  ;;  %5988 = vmatpush2.bf16.msra.mxu1 %v9021_v62 }
 0x398   :  { %5948 = vmatprep.subr.bf16.mxu0 %v9026_v34  ;;  %5989 = vmatprep.subr.bf16.mxu1 %v9029_v35 }
 0x39b   :  { %5949 = vmatpush2.bf16.msra.mxu0 %v9024_v0  ;;  %5990 = vmatpush2.bf16.msra.mxu1 %v9027_v1 }
 0x39c   :  { %5950 = vmatprep.subr.bf16.mxu0 %v9032_v23  ;;  %5991 = vmatprep.subr.bf16.mxu1 %v9035_v24 }
 0x39f   :  { %5951 = vmatpush2.bf16.msra.mxu0 %v9030_v5  ;;  %5992 = vmatpush2.bf16.msra.mxu1 %v9033_v4 }
 0x3a0   :  { %5952 = vmatprep.subr.bf16.mxu0 %v9038_v41  ;;  %5993 = vmatprep.subr.bf16.mxu1 %v9041_v7 }
 0x3a3   :  { %5953 = vmatpush2.bf16.msra.mxu0 %v9036_v9  ;;  %5994 = vmatpush2.bf16.msra.mxu1 %v9039_v27 }
 0x3a4   :  { %6004 = vmatprep.subr.bf16.mxu0 %v9044_v8  ;;  %6045 = vmatprep.subr.bf16.mxu1 %v9047_v10 }
 0x426   :  { %v9795_v11 = vpop.f32.mrf.mxu0  ;;  %v9797_v12 = vpop.f32.mrf.mxu1 }
 0x427   :  { %v4595_v17 = vsel %vm4594_vm5, %v9795_v11, 0.0  ;;  %v4609_v13 = vsel %vm4594_vm5, %v9797_v12, 0.0 }
 0x428   :  { %v4596_v51 = vrot.slane %v4595_v17, 4  ;;  %v4610_v63 = vrot.slane %v4609_v13, 4  ;;  %v9803_v14 = vpop.f32.mrf.mxu0  ;;  %v9805_v6 = vpop.f32.mrf.mxu1 }
 0x429   :  { %v4602_v15 = vsel %vm4594_vm5, %v9803_v14, 0.0  ;;  %v4616_v16 = vsel %vm4594_vm5, %v9805_v6, 0.0 }
 0x42a   :  { %v4597_v18 = vadd.f32 %v4596_v51, %v4595_v17  ;;  %v4611_v19 = vadd.f32 %v4610_v63, %v4609_v13  ;;  %v4603_v20 = vrot.slane %v4602_v15, 4  ;;  %v4617_v45 = vrot.slane %v4616_v16, 4  ;;  %v4550_v46 = vpop.f32.mrf.mxu0  ;;  %v4591_v55 = vpop.f32.mrf.mxu1 }
 0x42c   :  { %v4598_v22 = vrot.slane %v4597_v18, 2  ;;  %v4612_v25 = vrot.slane %v4611_v19, 2  ;;  %v4604_v61 = vadd.f32 %v4603_v20, %v4602_v15  ;;  %v4618_v26 = vadd.f32 %v4617_v45, %v4616_v16  ;;  %v4551_v28 = vpop.f32.mrf.mxu0  ;;  %v4592_v29 = vpop.f32.mrf.mxu1 }
 0x42e   :  { %v4599_v30 = vadd.f32 %v4598_v22, %v4597_v18  ;;  %v4613_v32 = vadd.f32 %v4612_v25, %v4611_v19  ;;  %v4605_v33 = vrot.slane %v4604_v61, 2  ;;  %v4619_v36 = vrot.slane %v4618_v26, 2 }
 0x430   :  { %v4600_v37 = vrot.slane %v4599_v30, 1  ;;  %v4606_v38 = vadd.f32 %v4605_v33, %v4604_v61  ;;  %v4620_v39 = vadd.f32 %v4619_v36, %v4618_v26  ;;  %v4614_v40 = vrot.slane %v4613_v32, 1  ;;  %v4671_v36 = vld [vmem:[#allocation8] sm:$0x1] }
 0x432   :  { %v4607_v42 = vrot.slane %v4606_v38, 1  ;;  %v4601_v44 = vadd.f32 %v4600_v37, %v4599_v30  ;;  %v4621_v2 = vrot.slane %v4620_v39, 1  ;;  %v4615_v3 = vadd.f32 %v4614_v40, %v4613_v32 }
 0x434   :  { %v4608_v47 = vadd.f32 %v4607_v42, %v4606_v38  ;;  %v4622_v50 = vadd.f32 %v4621_v2, %v4620_v39  ;;  %v4675_v39 = vld [vmem:[#allocation10] sm:$0x1] }
 0x436   :  { %v4623_v48 = vadd.f32 %v4608_v47, %v4601_v44 }
 0x438   :  { %v4624_v31 = vadd.f32 %v4623_v48, %v4615_v3 }
 0x43a   :  { %v4625_v53 = vadd.f32 %v4624_v31, %v4622_v50 }
 0x43c   :  { %v4626_v54 = vmul.f32 0.0625, %v4625_v53 }
 0x43e   :  { %v4630_v56 = vrot.slane %v4626_v54, %v9812_v21 }
 0x440   :  { %v4631_v57 = vsub.f32 %v9795_v11, %v4630_v56  ;;  %v4632_v58 = vsub.f32 %v9803_v14, %v4630_v56  ;;  %v4633_v49 = vsub.f32 %v9797_v12, %v4630_v56  ;;  %v4634_v59 = vsub.f32 %v9805_v6, %v4630_v56 }
 0x442   :  { %v4635_v60 = vmul.f32 %v4631_v57, %v4631_v57  ;;  %v4636_v62 = vmul.f32 %v4632_v58, %v4632_v58  ;;  %v4637_v34 = vmul.f32 %v4633_v49, %v4633_v49  ;;  %v4638_v35 = vmul.f32 %v4634_v59, %v4634_v59 }
 0x444   :  { %v4639_v0 = vsel %vm4594_vm5, %v4635_v60, 0.0  ;;  %v4646_v1 = vsel %vm4594_vm5, %v4636_v62, 0.0  ;;  %v4653_v23 = vsel %vm4594_vm5, %v4637_v34, 0.0  ;;  %v4660_v24 = vsel %vm4594_vm5, %v4638_v35, 0.0 }
 0x445   :  { %v4640_v5 = vrot.slane %v4639_v0, 4  ;;  %v4647_v4 = vrot.slane %v4646_v1, 4  ;;  %v4654_v41 = vrot.slane %v4653_v23, 4  ;;  %v4661_v7 = vrot.slane %v4660_v24, 4 }
 0x447   :  { %v4641_v9 = vadd.f32 %v4640_v5, %v4639_v0  ;;  %v4648_v27 = vadd.f32 %v4647_v4, %v4646_v1  ;;  %v4655_v8 = vadd.f32 %v4654_v41, %v4653_v23  ;;  %v4662_v10 = vadd.f32 %v4661_v7, %v4660_v24 }
 0x449   :  { %v4642_v17 = vrot.slane %v4641_v9, 2  ;;  %v4649_v13 = vrot.slane %v4648_v27, 2  ;;  %v4656_v51 = vrot.slane %v4655_v8, 2  ;;  %v4663_v63 = vrot.slane %v4662_v10, 2 }
 0x44b   :  { %v4643_v15 = vadd.f32 %v4642_v17, %v4641_v9  ;;  %v4650_v16 = vadd.f32 %v4649_v13, %v4648_v27  ;;  %v4657_v18 = vadd.f32 %v4656_v51, %v4655_v8  ;;  %v4664_v19 = vadd.f32 %v4663_v63, %v4662_v10 }
 0x44d   :  { %v4644_v20 = vrot.slane %v4643_v15, 1  ;;  %v4651_v45 = vrot.slane %v4650_v16, 1  ;;  %v4658_v46 = vrot.slane %v4657_v18, 1  ;;  %v4665_v25 = vrot.slane %v4664_v19, 1 }
 0x44f   :  { %v4645_v55 = vadd.f32 %v4644_v20, %v4643_v15  ;;  %v4652_v22 = vadd.f32 %v4651_v45, %v4650_v16  ;;  %v4659_v61 = vadd.f32 %v4658_v46, %v4657_v18  ;;  %v4666_v28 = vadd.f32 %v4665_v25, %v4664_v19 }
 0x451   :  { %v4667_v26 = vadd.f32 %v4652_v22, %v4645_v55  ;;  %v9042_v22 = vld [vmem:[#allocation11 + $0x158] ss:$24 sps:$4 sm:$0xff]  }
 0x453   :  { %v4668_v29 = vadd.f32 %v4667_v26, %v4659_v61  ;;  %v9045_v61 = vld [vmem:[#allocation11 + $0x458] ss:$24 sps:$4 sm:$0xff]  }
 0x455   :  { %v4669_v30 = vadd.f32 %v4668_v29, %v4666_v28 }
 0x457   :  { %v4670_v32 = vmul.f32 0.0625, %v4669_v30  ;;  %v9050_v30 = vld [vmem:[#allocation11 + $0x12c] ss:$24 sps:$4 sm:$0xff]  }
 0x459   :  { %v4672_v33 = vadd.f32 1e-05, %v4670_v32  ;;  %v9053_v32 = vld [vmem:[#allocation11 + $0x42c] ss:$24 sps:$4 sm:$0xff]  }
 0x45b   :  { %9282 = vrsqrt.f32 %v4672_v33  ;;  %v9048_v33 = vld [vmem:[#allocation11 + $0x128] ss:$24 sps:$4 sm:$0xff]  }
 0x468   :  { %v9283_v37 = vpop.eup %9282 }
 0x469   :  { %v4674_v38 = vmul.f32 %v9283_v37, %v4671_v36  ;;  %v9051_v36 = vld [vmem:[#allocation11 + $0x428] ss:$24 sps:$4 sm:$0xff]   ;;  %v9056_v37 = vld [vmem:[#allocation11 + $0xfc] ss:$24 sps:$4 sm:$0xff]  }
 0x46b   :  { %v4676_v40 = vmul.f32 %v4674_v38, %v4626_v54  ;;  %v4681_v42 = vrot.slane %v4674_v38, %v9812_v21  ;;  %v9059_v38 = vld [vmem:[#allocation11 + $0x3fc] ss:$24 sps:$4 sm:$0xff]  }
 0x46d   :  { %v4677_v44 = vsub.f32 %v4675_v39, %v4676_v40  ;;  %v4685_v47 = vmul.f32 %v4681_v42, %v9805_v6  ;;  %v4683_v3 = vmul.f32 %v4681_v42, %v9803_v14  ;;  %v4682_v48 = vmul.f32 %v4681_v42, %v9795_v11  ;;  %v9054_v39 = vld [vmem:[#allocation11 + $0xf8] ss:$24 sps:$4 sm:$0xff]  }
 0x46e   :  { %v4684_v50 = vmul.f32 %v4681_v42, %v9797_v12  ;;  %v9057_v40 = vld [vmem:[#allocation11 + $0x3f8] ss:$24 sps:$4 sm:$0xff]   ;;  %v9062_v42 = vld [vmem:[#allocation11 + $0xcc] ss:$24 sps:$4 sm:$0xff]  }
 0x46f   :  { %v4689_v2 = vrot.slane %v4677_v44, %v9812_v21  ;;  %v9065_v44 = vld [vmem:[#allocation11 + $0x3cc] ss:$24 sps:$4 sm:$0xff]  }
 0x471   :  { %v4693_v31 = vadd.f32 %v4689_v2, %v4685_v47  ;;  %v4691_v53 = vadd.f32 %v4689_v2, %v4683_v3  ;;  %v4690_v56 = vadd.f32 %v4689_v2, %v4682_v48  ;;  %v4692_v57 = vadd.f32 %v4689_v2, %v4684_v50  ;;  %v9060_v47 = vld [vmem:[#allocation11 + $0xc8] ss:$24 sps:$4 sm:$0xff]   ;;  %v9068_v3 = vld [vmem:[#allocation11 + $0x9c] ss:$24 sps:$4 sm:$0xff]   ;;  %v9066_v50 = vld [vmem:[#allocation11 + $0x98] ss:$24 sps:$4 sm:$0xff]  }
 0x472   :  { %v9063_v2 = vld [vmem:[#allocation11 + $0x3c8] ss:$24 sps:$4 sm:$0xff]   ;;  %v9071_v48 = vld [vmem:[#allocation11 + $0x39c] ss:$24 sps:$4 sm:$0xff]  }
 0x473   :  { %vm4699_vm6 = vcmp.ge.f32.partialorder %v4691_v53, 0.5  ;;  %vm4701_vm7 = vcmp.ge.f32.partialorder %v4693_v31, 0.5  ;;  %vm4698_vm8 = vcmp.ge.f32.partialorder %v4690_v56, 0.5  ;;  %vm4700_vm9 = vcmp.ge.f32.partialorder %v4692_v57, 0.5 }
 0x474   :  { %v7726_v54 = vsel %vm4699_vm6, 1.0, %v9572_v52  ;;  %v7728_v58 = vsel %vm4701_vm7, 1.0, %v9572_v52  ;;  %v7725_v59 = vsel %vm4698_vm8, 1.0, %v9572_v52  ;;  %v7727_v11 = vsel %vm4700_vm9, 1.0, %v9572_v52 }
 0x475   :  { %v4711_v6 = vsub.f32 1.0, %v7726_v54  ;;  %v4713_v49 = vsub.f32 1.0, %v7728_v58  ;;  %v4710_v14 = vsub.f32 1.0, %v7725_v59  ;;  %v4712_v62 = vsub.f32 1.0, %v7727_v11 }
 0x476   :  { %v4729_v34 = vrot.slane %v4693_v31, 2  ;;  %v4727_v1 = vrot.slane %v4691_v53, 2  ;;  %v4726_v4 = vrot.slane %v4690_v56, 2  ;;  %v4728_v27 = vrot.slane %v4692_v57, 2 }
 0x477   :  { %v4715_v12 = vmul.f32 %v4711_v6, %v4691_v53  ;;  %v4717_v60 = vmul.f32 %v4713_v49, %v4693_v31  ;;  %v4714_v35 = vmul.f32 %v4710_v14, %v4690_v56  ;;  %v4716_v24 = vmul.f32 %v4712_v62, %v4692_v57  ;;  %v9069_v31 = vld [vmem:[#allocation11 + $0x398] ss:$24 sps:$4 sm:$0xff]   ;;  %v9074_v53 = vld [vmem:[#allocation11 + $0x6c] ss:$24 sps:$4 sm:$0xff]   ;;  %v9072_v57 = vld [vmem:[#allocation11 + $0x68] ss:$24 sps:$4 sm:$0xff]  }
 0x478   :  { %v9077_v56 = vld [vmem:[#allocation11 + $0x36c] ss:$24 sps:$4 sm:$0xff]   ;;  %v9083_v6 = vld [vmem:[#allocation11 + $0x33c] ss:$24 sps:$4 sm:$0xff]   ;;  %v9078_v49 = vld [vmem:[#allocation11 + $0x38] ss:$24 sps:$4 sm:$0xff]  }
 0x479   :  { %v4719_v0 = vmul.f32 0.2, %v4715_v12  ;;  %v4721_v23 = vmul.f32 0.2, %v4717_v60  ;;  %v4718_v5 = vmul.f32 0.2, %v4714_v35 }
 0x47a   :  { %v4720_v9 = vmul.f32 0.2, %v4716_v24  ;;  %v9086_v14 = vld [vmem:[#allocation11 + $0xc] ss:$24 sps:$4 sm:$0xff]   ;;  %v9084_v12 = vld [vmem:[#allocation11 + $0x8] ss:$24 sps:$4 sm:$0xff]  }
 0x47b   :  { %v4735_v41 = vadd.f32 %v4727_v1, %v4719_v0  ;;  %v4737_v7 = vadd.f32 %v4729_v34, %v4721_v23  ;;  %v4734_v8 = vadd.f32 %v4726_v4, %v4718_v5  ;;  %v9087_v60 = vld [vmem:[#allocation11 + $0x308] ss:$24 sps:$4 sm:$0xff]   ;;  %v9092_v62 = vld [vmem:[#allocation11 + $0x2dc] ss:$24 sps:$4 sm:$0xff]   ;;  %v9090_v35 = vld [vmem:[#allocation11 + $0x2d8] ss:$24 sps:$4 sm:$0xff]  }
 0x47c   :  { %v4736_v10 = vadd.f32 %v4728_v27, %v4720_v9  ;;  %v9095_v34 = vld [vmem:[#allocation11 + $0x5dc] ss:$24 sps:$4 sm:$0xff]   ;;  %v9093_v0 = vld [vmem:[#allocation11 + $0x5d8] ss:$24 sps:$4 sm:$0xff]   ;;  %v9098_v1 = vld [vmem:[#allocation11 + $0x2ac] ss:$24 sps:$4 sm:$0xff]  }
 0x47d   :  { %vm4739_vm10 = vcmp.ge.f32.partialorder %v4735_v41, 0.5  ;;  %vm4741_vm11 = vcmp.ge.f32.partialorder %v4737_v7, 0.5  ;;  %vm4738_vm12 = vcmp.ge.f32.partialorder %v4734_v8, 0.5  ;;  %v9101_v23 = vld [vmem:[#allocation11 + $0x5ac] ss:$24 sps:$4 sm:$0xff]  }
 0x47e   :  { %v7730_v17 = vsel %vm4739_vm10, 1.0, %v9572_v52  ;;  %v7732_v13 = vsel %vm4741_vm11, 1.0, %v9572_v52  ;;  %v7729_v15 = vsel %vm4738_vm12, 1.0, %v9572_v52  ;;  %vm4740_vm13 = vcmp.ge.f32.partialorder %v4736_v10, 0.5  ;;  %v9096_v24 = vld [vmem:[#allocation11 + $0x2a8] ss:$24 sps:$4 sm:$0xff]  }
 0x47f   :  { %v4755_v51 = vrot.slane %v7730_v17, 6  ;;  %v4757_v63 = vrot.slane %v7732_v13, 6  ;;  %v4754_v16 = vrot.slane %v7729_v15, 6  ;;  %v7731_v18 = vsel %vm4740_vm13, 1.0, %v9572_v52  ;;  %v9099_v5 = vld [vmem:[#allocation11 + $0x5a8] ss:$24 sps:$4 sm:$0xff]  }
 0x480   :  { %v4756_v45 = vrot.slane %v7731_v18, 6  ;;  %v9104_v4 = vld [vmem:[#allocation11 + $0x27c] ss:$24 sps:$4 sm:$0xff]   ;;  %v9102_v7 = vld [vmem:[#allocation11 + $0x278] ss:$24 sps:$4 sm:$0xff]  }
 0x481   :  { %v4763_v19 = vsel %vm4123_vm4, %v7726_v54, %v4755_v51  ;;  %v4765_v20 = vsel %vm4123_vm4, %v7728_v58, %v4757_v63  ;;  %v4762_v25 = vsel %vm4123_vm4, %v7725_v59, %v4754_v16  ;;  %v9075_v54 = vld [vmem:[#allocation11 + $0x368] ss:$24 sps:$4 sm:$0xff]   ;;  %v9080_v58 = vld [vmem:[#allocation11 + $0x3c] ss:$24 sps:$4 sm:$0xff]   ;;  %v9081_v59 = vld [vmem:[#allocation11 + $0x338] ss:$24 sps:$4 sm:$0xff]  }
 0x482   :  { %v9839_v46 = vpack.c.bf16 %v4763_v19, %v4763_v19  ;;  %v9841_v55 = vpack.c.bf16 %v4765_v20, %v4765_v20  ;;  %v9844_v26 = vpack.c.bf16 %v4762_v25, %v4762_v25  ;;  %v4764_v28 = vsel %vm4123_vm4, %v7727_v11, %v4756_v45  ;;  %v9089_v11 = vld [vmem:[#allocation11 + $0x30c] ss:$24 sps:$4 sm:$0xff]   ;;  %v9107_v41 = vld [vmem:[#allocation11 + $0x57c] ss:$24 sps:$4 sm:$0xff]   ;;  %v9105_v9 = vld [vmem:[#allocation11 + $0x578] ss:$24 sps:$4 sm:$0xff]  }
 0x483   :  { %v9849_v29 = vpack.c.bf16 %v4764_v28, %v4764_v28  ;;  %v9110_v27 = vld [vmem:[#allocation11 + $0x24c] ss:$24 sps:$4 sm:$0xff]   ;;  %v9108_v10 = vld [vmem:[#allocation11 + $0x248] ss:$24 sps:$4 sm:$0xff]   ;;  %v9116_v13 = vld [vmem:[#allocation11 + $0x21c] ss:$24 sps:$4 sm:$0xff]  }
 0x484   :  { %5954 = vmatprep.mubr.bf16.mxu0 %v9839_v46  ;;  %5995 = vmatprep.mubr.bf16.mxu1 %v9841_v55  ;;  %v9113_v8 = vld [vmem:[#allocation11 + $0x54c] ss:$24 sps:$4 sm:$0xff]   ;;  %v9111_v17 = vld [vmem:[#allocation11 + $0x548] ss:$24 sps:$4 sm:$0xff]   ;;  %v9119_v51 = vld [vmem:[#allocation11 + $0x51c] ss:$24 sps:$4 sm:$0xff]  }
 0x485   :  { %5955 = vmatmul.mubr.bf16.vlgmr.msra.gmra.mxu0 %v9844_v26  ;;  %5996 = vmatmul.mubr.bf16.vlgmr.msra.gmra.mxu1 %v9849_v29  ;;  %v9114_v63 = vld [vmem:[#allocation11 + $0x218] ss:$24 sps:$4 sm:$0xff]   ;;  %v9122_v16 = vld [vmem:[#allocation11 + $0x1ec] ss:$24 sps:$4 sm:$0xff]   ;;  %v9120_v19 = vld [vmem:[#allocation11 + $0x1e8] ss:$24 sps:$4 sm:$0xff]  }
 0x486   :  { %6005 = vmatpush1.bf16.msra.mxu0 %v9042_v22  ;;  %6046 = vmatpush1.bf16.msra.mxu1 %v9045_v61  ;;  %v9117_v15 = vld [vmem:[#allocation11 + $0x518] ss:$24 sps:$4 sm:$0xff]   ;;  %v9125_v18 = vld [vmem:[#allocation11 + $0x4ec] ss:$24 sps:$4 sm:$0xff]   ;;  %v9123_v20 = vld [vmem:[#allocation11 + $0x4e8] ss:$24 sps:$4 sm:$0xff]  }
 0x487   :  { %6036 = vmatprep.mubr.bf16.mxu0 %v9839_v46  ;;  %6077 = vmatprep.mubr.bf16.mxu1 %v9841_v55  ;;  %v9128_v45 = vld [vmem:[#allocation11 + $0x1bc] ss:$24 sps:$4 sm:$0xff]   ;;  %v9126_v25 = vld [vmem:[#allocation11 + $0x1b8] ss:$24 sps:$4 sm:$0xff]   ;;  %v9134_v28 = vld [vmem:[#allocation11 + $0x18c] ss:$24 sps:$4 sm:$0xff]  }
 0x488   :  { %6006 = vmatprep.subr.bf16.mxu0 %v9050_v30  ;;  %6047 = vmatprep.subr.bf16.mxu1 %v9053_v32  ;;  %v9131_v22 = vld [vmem:[#allocation11 + $0x4bc] ss:$24 sps:$4 sm:$0xff]   ;;  %v9129_v61 = vld [vmem:[#allocation11 + $0x4b8] ss:$24 sps:$4 sm:$0xff]   ;;  %v9137_v30 = vld [vmem:[#allocation11 + $0x48c] ss:$24 sps:$4 sm:$0xff]  }
 0x489   :  { %v9132_v32 = vld [vmem:[#allocation11 + $0x188] ss:$24 sps:$4 sm:$0xff]  }
 0x48a   :  { %6007 = vmatpush1.bf16.msra.mxu0 %v9048_v33  ;;  %6048 = vmatpush1.bf16.msra.mxu1 %v9051_v36  ;;  %v9135_v33 = vld [vmem:[#allocation11 + $0x488] ss:$24 sps:$4 sm:$0xff]   ;;  %v9140_v36 = vld [vmem:[#allocation11 + $0x164] ss:$24 sps:$4 sm:$0xff]  }
 0x48b   :  { %6008 = vmatprep.subr.bf16.mxu0 %v9056_v37  ;;  %6049 = vmatprep.subr.bf16.mxu1 %v9059_v38  ;;  %v9143_v37 = vld [vmem:[#allocation11 + $0x464] ss:$24 sps:$4 sm:$0xff]   ;;  %v9138_v38 = vld [vmem:[#allocation11 + $0x160] ss:$24 sps:$4 sm:$0xff]  }
 0x48e   :  { %6009 = vmatpush1.bf16.msra.mxu0 %v9054_v39  ;;  %6050 = vmatpush1.bf16.msra.mxu1 %v9057_v40  ;;  %v9141_v39 = vld [vmem:[#allocation11 + $0x460] ss:$24 sps:$4 sm:$0xff]   ;;  %v9146_v40 = vld [vmem:[#allocation11 + $0x134] ss:$24 sps:$4 sm:$0xff]  }
 0x48f   :  { %6010 = vmatprep.subr.bf16.mxu0 %v9062_v42  ;;  %6051 = vmatprep.subr.bf16.mxu1 %v9065_v44  ;;  %v9149_v42 = vld [vmem:[#allocation11 + $0x434] ss:$24 sps:$4 sm:$0xff]   ;;  %v9144_v44 = vld [vmem:[#allocation11 + $0x130] ss:$24 sps:$4 sm:$0xff]  }
 0x492   :  { %6011 = vmatpush1.bf16.msra.mxu0 %v9060_v47  ;;  %6052 = vmatpush1.bf16.msra.mxu1 %v9063_v2  ;;  %v9147_v47 = vld [vmem:[#allocation11 + $0x430] ss:$24 sps:$4 sm:$0xff]   ;;  %v9152_v2 = vld [vmem:[#allocation11 + $0x104] ss:$24 sps:$4 sm:$0xff]  }
 0x493   :  { %6012 = vmatprep.subr.bf16.mxu0 %v9068_v3  ;;  %6053 = vmatprep.subr.bf16.mxu1 %v9071_v48  ;;  %v9155_v3 = vld [vmem:[#allocation11 + $0x404] ss:$24 sps:$4 sm:$0xff]   ;;  %v9150_v48 = vld [vmem:[#allocation11 + $0x100] ss:$24 sps:$4 sm:$0xff]  }
 0x496   :  { %6013 = vmatpush1.bf16.msra.mxu0 %v9066_v50  ;;  %6054 = vmatpush1.bf16.msra.mxu1 %v9069_v31  ;;  %v9153_v50 = vld [vmem:[#allocation11 + $0x400] ss:$24 sps:$4 sm:$0xff]   ;;  %v9158_v31 = vld [vmem:[#allocation11 + $0xd4] ss:$24 sps:$4 sm:$0xff]  }
 0x497   :  { %6014 = vmatprep.subr.bf16.mxu0 %v9074_v53  ;;  %6055 = vmatprep.subr.bf16.mxu1 %v9077_v56  ;;  %v9161_v53 = vld [vmem:[#allocation11 + $0x3d4] ss:$24 sps:$4 sm:$0xff]   ;;  %v9156_v56 = vld [vmem:[#allocation11 + $0xd0] ss:$24 sps:$4 sm:$0xff]  }
 0x49a   :  { %6015 = vmatpush1.bf16.msra.mxu0 %v9072_v57  ;;  %6056 = vmatpush1.bf16.msra.mxu1 %v9075_v54  ;;  %v9164_v57 = vld [vmem:[#allocation11 + $0xa4] ss:$24 sps:$4 sm:$0xff]  }
 0x49b   :  { %6016 = vmatprep.subr.bf16.mxu0 %v9080_v58  ;;  %6057 = vmatprep.subr.bf16.mxu1 %v9083_v6  ;;  %v9167_v54 = vld [vmem:[#allocation11 + $0x3a4] ss:$24 sps:$4 sm:$0xff]   ;;  %v9165_v58 = vld [vmem:[#allocation11 + $0x3a0] ss:$24 sps:$4 sm:$0xff]   ;;  %v9170_v6 = vld [vmem:[#allocation11 + $0x74] ss:$24 sps:$4 sm:$0xff]  }
 0x49e   :  { %6017 = vmatpush1.bf16.msra.mxu0 %v9078_v49  ;;  %6058 = vmatpush1.bf16.msra.mxu1 %v9081_v59  ;;  %v9173_v49 = vld [vmem:[#allocation11 + $0x374] ss:$24 sps:$4 sm:$0xff]   ;;  %v9168_v59 = vld [vmem:[#allocation11 + $0x70] ss:$24 sps:$4 sm:$0xff]  }
 0x49f   :  { %6018 = vmatprep.subr.bf16.mxu0 %v9086_v14  ;;  %6059 = vmatprep.subr.bf16.mxu1 %v9089_v11  ;;  %v9171_v14 = vld [vmem:[#allocation11 + $0x370] ss:$24 sps:$4 sm:$0xff]   ;;  %v9176_v11 = vld [vmem:[#allocation11 + $0x44] ss:$24 sps:$4 sm:$0xff]  }
 0x4a2   :  { %6019 = vmatpush1.bf16.msra.mxu0 %v9084_v12  ;;  %6060 = vmatpush1.bf16.msra.mxu1 %v9087_v60  ;;  %v9179_v12 = vld [vmem:[#allocation11 + $0x344] ss:$24 sps:$4 sm:$0xff]   ;;  %v9174_v60 = vld [vmem:[#allocation11 + $0x40] ss:$24 sps:$4 sm:$0xff]  }
 0x4a3   :  { %6020 = vmatprep.subr.bf16.mxu0 %v9092_v62  ;;  %6061 = vmatprep.subr.bf16.mxu1 %v9095_v34  ;;  %v9177_v62 = vld [vmem:[#allocation11 + $0x340] ss:$24 sps:$4 sm:$0xff]   ;;  %v9182_v34 = vld [vmem:[#allocation11 + $0x14] ss:$24 sps:$4 sm:$0xff]  }
 0x4a6   :  { %6021 = vmatpush2.bf16.msra.mxu0 %v9090_v35  ;;  %6062 = vmatpush2.bf16.msra.mxu1 %v9093_v0  ;;  %v9185_v35 = vld [vmem:[#allocation11 + $0x314] ss:$24 sps:$4 sm:$0xff]   ;;  %v9180_v0 = vld [vmem:[#allocation11 + $0x10] ss:$24 sps:$4 sm:$0xff]  }
 0x4a7   :  { %6022 = vmatprep.subr.bf16.mxu0 %v9098_v1  ;;  %6063 = vmatprep.subr.bf16.mxu1 %v9101_v23  ;;  %v9183_v1 = vld [vmem:[#allocation11 + $0x310] ss:$24 sps:$4 sm:$0xff]   ;;  %v9188_v23 = vld [vmem:[#allocation11 + $0x2e4] ss:$24 sps:$4 sm:$0xff]  }
 0x4aa   :  { %6023 = vmatpush2.bf16.msra.mxu0 %v9096_v24  ;;  %6064 = vmatpush2.bf16.msra.mxu1 %v9099_v5  ;;  %v9191_v24 = vld [vmem:[#allocation11 + $0x5e4] ss:$24 sps:$4 sm:$0xff]   ;;  %v9186_v5 = vld [vmem:[#allocation11 + $0x2e0] ss:$24 sps:$4 sm:$0xff]  }
 0x4ab   :  { %6024 = vmatprep.subr.bf16.mxu0 %v9104_v4  ;;  %6065 = vmatprep.subr.bf16.mxu1 %v9107_v41  ;;  %v9189_v4 = vld [vmem:[#allocation11 + $0x5e0] ss:$24 sps:$4 sm:$0xff]   ;;  %v9194_v41 = vld [vmem:[#allocation11 + $0x2b4] ss:$24 sps:$4 sm:$0xff]  }
 0x4ae   :  { %6025 = vmatpush2.bf16.msra.mxu0 %v9102_v7  ;;  %6066 = vmatpush2.bf16.msra.mxu1 %v9105_v9  ;;  %v9197_v7 = vld [vmem:[#allocation11 + $0x5b4] ss:$24 sps:$4 sm:$0xff]   ;;  %v9192_v9 = vld [vmem:[#allocation11 + $0x2b0] ss:$24 sps:$4 sm:$0xff]  }
 0x4af   :  { %6026 = vmatprep.subr.bf16.mxu0 %v9110_v27  ;;  %6067 = vmatprep.subr.bf16.mxu1 %v9113_v8  ;;  %v9195_v27 = vld [vmem:[#allocation11 + $0x5b0] ss:$24 sps:$4 sm:$0xff]   ;;  %v9200_v8 = vld [vmem:[#allocation11 + $0x284] ss:$24 sps:$4 sm:$0xff]  }
 0x4b2   :  { %6027 = vmatpush2.bf16.msra.mxu0 %v9108_v10  ;;  %6068 = vmatpush2.bf16.msra.mxu1 %v9111_v17  ;;  %v9203_v10 = vld [vmem:[#allocation11 + $0x584] ss:$24 sps:$4 sm:$0xff]   ;;  %v9198_v17 = vld [vmem:[#allocation11 + $0x280] ss:$24 sps:$4 sm:$0xff]  }
 0x4b3   :  { %6028 = vmatprep.subr.bf16.mxu0 %v9116_v13  ;;  %6069 = vmatprep.subr.bf16.mxu1 %v9119_v51  ;;  %v9201_v13 = vld [vmem:[#allocation11 + $0x580] ss:$24 sps:$4 sm:$0xff]   ;;  %v9206_v51 = vld [vmem:[#allocation11 + $0x254] ss:$24 sps:$4 sm:$0xff]  }
 0x4b6   :  { %6029 = vmatpush2.bf16.msra.mxu0 %v9114_v63  ;;  %6070 = vmatpush2.bf16.msra.mxu1 %v9117_v15  ;;  %v9209_v63 = vld [vmem:[#allocation11 + $0x554] ss:$24 sps:$4 sm:$0xff]   ;;  %v9204_v15 = vld [vmem:[#allocation11 + $0x250] ss:$24 sps:$4 sm:$0xff]  }
 0x4b7   :  { %6030 = vmatprep.subr.bf16.mxu0 %v9122_v16  ;;  %6071 = vmatprep.subr.bf16.mxu1 %v9125_v18  ;;  %v9207_v16 = vld [vmem:[#allocation11 + $0x550] ss:$24 sps:$4 sm:$0xff]   ;;  %v9212_v18 = vld [vmem:[#allocation11 + $0x224] ss:$24 sps:$4 sm:$0xff]  }
 0x4ba   :  { %6031 = vmatpush2.bf16.msra.mxu0 %v9120_v19  ;;  %6072 = vmatpush2.bf16.msra.mxu1 %v9123_v20  ;;  %v9215_v19 = vld [vmem:[#allocation11 + $0x524] ss:$24 sps:$4 sm:$0xff]   ;;  %v9210_v20 = vld [vmem:[#allocation11 + $0x220] ss:$24 sps:$4 sm:$0xff]  }
 0x4bb   :  { %6032 = vmatprep.subr.bf16.mxu0 %v9128_v45  ;;  %6073 = vmatprep.subr.bf16.mxu1 %v9131_v22  ;;  %v9213_v45 = vld [vmem:[#allocation11 + $0x520] ss:$24 sps:$4 sm:$0xff]   ;;  %v9218_v22 = vld [vmem:[#allocation11 + $0x1f4] ss:$24 sps:$4 sm:$0xff]  }
 0x4be   :  { %6033 = vmatpush2.bf16.msra.mxu0 %v9126_v25  ;;  %6074 = vmatpush2.bf16.msra.mxu1 %v9129_v61  ;;  %v9221_v25 = vld [vmem:[#allocation11 + $0x4f4] ss:$24 sps:$4 sm:$0xff]   ;;  %v9216_v61 = vld [vmem:[#allocation11 + $0x1f0] ss:$24 sps:$4 sm:$0xff]  }
 0x4bf   :  { %6034 = vmatprep.subr.bf16.mxu0 %v9134_v28  ;;  %6075 = vmatprep.subr.bf16.mxu1 %v9137_v30  ;;  %v9219_v28 = vld [vmem:[#allocation11 + $0x4f0] ss:$24 sps:$4 sm:$0xff]   ;;  %v9224_v30 = vld [vmem:[#allocation11 + $0x1c4] ss:$24 sps:$4 sm:$0xff]  }
 0x4c2   :  { %6035 = vmatpush2.bf16.msra.mxu0 %v9132_v32  ;;  %6076 = vmatpush2.bf16.msra.mxu1 %v9135_v33  ;;  %v9227_v32 = vld [vmem:[#allocation11 + $0x4c4] ss:$24 sps:$4 sm:$0xff]   ;;  %v9222_v33 = vld [vmem:[#allocation11 + $0x1c0] ss:$24 sps:$4 sm:$0xff]  }
 0x4c3   :  { %6086 = vmatprep.subr.bf16.mxu0 %v9140_v36  ;;  %6127 = vmatprep.subr.bf16.mxu1 %v9143_v37  ;;  %v9225_v36 = vld [vmem:[#allocation11 + $0x4c0] ss:$24 sps:$4 sm:$0xff]   ;;  %v9230_v37 = vld [vmem:[#allocation11 + $0x194] ss:$24 sps:$4 sm:$0xff]  }
 0x4c5   :  { %6037 = vmatmul.mubr.bf16.vlgmr.msra.gmra.mxu0 %v9844_v26  ;;  %6078 = vmatmul.mubr.bf16.vlgmr.msra.gmra.mxu1 %v9849_v29 }
 0x4c6   :  { %6087 = vmatpush1.bf16.msra.mxu0 %v9138_v38  ;;  %6118 = vmatprep.mubr.bf16.mxu0 %v9839_v46  ;;  %v9159_v46 = vld [vmem:[#allocation11 + $0x3d0] ss:$24 sps:$4 sm:$0xff]   ;;  %v9233_v38 = vld [vmem:[#allocation11 + $0x494] ss:$24 sps:$4 sm:$0xff]  }
 0x4c7   :  { %6128 = vmatpush1.bf16.msra.mxu1 %v9141_v39  ;;  %6159 = vmatprep.mubr.bf16.mxu1 %v9841_v55  ;;  %v9162_v55 = vld [vmem:[#allocation11 + $0xa0] ss:$24 sps:$4 sm:$0xff]   ;;  %v9228_v39 = vld [vmem:[#allocation11 + $0x190] ss:$24 sps:$4 sm:$0xff]  }
 0x4c8   :  { %6088 = vmatprep.subr.bf16.mxu0 %v9146_v40  ;;  %6129 = vmatprep.subr.bf16.mxu1 %v9149_v42  ;;  %v9231_v40 = vld [vmem:[#allocation11 + $0x490] ss:$24 sps:$4 sm:$0xff]  }
 0x4ca   :  { %6089 = vmatpush1.bf16.msra.mxu0 %v9144_v44 }
 0x4cb   :  { %6130 = vmatpush1.bf16.msra.mxu1 %v9147_v47  ;;  %6090 = vmatprep.subr.bf16.mxu0 %v9152_v2 }
 0x4cc   :  { %6131 = vmatprep.subr.bf16.mxu1 %v9155_v3 }
 0x4ce   :  { %6091 = vmatpush1.bf16.msra.mxu0 %v9150_v48 }
 0x4cf   :  { %6132 = vmatpush1.bf16.msra.mxu1 %v9153_v50  ;;  %6092 = vmatprep.subr.bf16.mxu0 %v9158_v31 }
 0x4d0   :  { %6133 = vmatprep.subr.bf16.mxu1 %v9161_v53 }
 0x4d2   :  { %6093 = vmatpush1.bf16.msra.mxu0 %v9156_v56 }
 0x4d3   :  { %6134 = vmatpush1.bf16.msra.mxu1 %v9159_v46  ;;  %6094 = vmatprep.subr.bf16.mxu0 %v9164_v57 }
 0x4d4   :  { %6135 = vmatprep.subr.bf16.mxu1 %v9167_v54 }
 0x4d6   :  { %6095 = vmatpush1.bf16.msra.mxu0 %v9162_v55 }
 0x4d7   :  { %6136 = vmatpush1.bf16.msra.mxu1 %v9165_v58  ;;  %6096 = vmatprep.subr.bf16.mxu0 %v9170_v6 }
 0x4d8   :  { %6137 = vmatprep.subr.bf16.mxu1 %v9173_v49  ;;  %v9234_v49 = vld [vmem:[#allocation16 + $0x78] sm:$0xff]  }
 0x4da   :  { %6097 = vmatpush1.bf16.msra.mxu0 %v9168_v59 }
 0x4db   :  { %6138 = vmatpush1.bf16.msra.mxu1 %v9171_v14  ;;  %6098 = vmatprep.subr.bf16.mxu0 %v9176_v11  ;;  %v9235_v14 = vld [vmem:[#allocation16 + $0x38] sm:$0xff]  }
 0x4dc   :  { %6139 = vmatprep.subr.bf16.mxu1 %v9179_v12  ;;  %v9236_v11 = vld [vmem:[#allocation16 + $0xf8] sm:$0xff]  }
 0x4dd   :  { %v9237_v12 = vld [vmem:[#allocation16 + $0xb8] sm:$0xff]  }
 0x4de   :  { %6099 = vmatpush1.bf16.msra.mxu0 %v9174_v60  ;;  %v9238_v60 = vld [vmem:[#allocation16 + $0x70] sm:$0xff]  }
 0x4df   :  { %6140 = vmatpush1.bf16.msra.mxu1 %v9177_v62  ;;  %6100 = vmatprep.subr.bf16.mxu0 %v9182_v34  ;;  %v9239_v62 = vld [vmem:[#allocation16 + $0x30] sm:$0xff]  }
 0x4e0   :  { %6141 = vmatprep.subr.bf16.mxu1 %v9185_v35  ;;  %v9240_v34 = vld [vmem:[#allocation16 + $0xf0] sm:$0xff]  }
 0x4e1   :  { %v9241_v35 = vld [vmem:[#allocation16 + $0xb0] sm:$0xff]  }
 0x4e2   :  { %6101 = vmatpush1.bf16.msra.mxu0 %v9180_v0  ;;  %v9242_v0 = vld [vmem:[#allocation16 + $0x68] sm:$0xff]  }
 0x4e3   :  { %6142 = vmatpush1.bf16.msra.mxu1 %v9183_v1  ;;  %6102 = vmatprep.subr.bf16.mxu0 %v9188_v23  ;;  %v9243_v1 = vld [vmem:[#allocation16 + $0x28] sm:$0xff]  }
 0x4e4   :  { %6143 = vmatprep.subr.bf16.mxu1 %v9191_v24  ;;  %v9244_v23 = vld [vmem:[#allocation16 + $0xe8] sm:$0xff]  }
 0x4e5   :  { %v9245_v24 = vld [vmem:[#allocation16 + $0xa8] sm:$0xff]  }
 0x4e6   :  { %6103 = vmatpush2.bf16.msra.mxu0 %v9186_v5 }
 0x4e7   :  { %6144 = vmatpush2.bf16.msra.mxu1 %v9189_v4  ;;  %6104 = vmatprep.subr.bf16.mxu0 %v9194_v41  ;;  %v9246_v4 = vld [vmem:[#allocation16 + $0x60] sm:$0xff]  }
 0x4e8   :  { %6145 = vmatprep.subr.bf16.mxu1 %v9197_v7  ;;  %v9247_v41 = vld [vmem:[#allocation16 + $0x20] sm:$0xff]  }
 0x4e9   :  { %v9248_v7 = vld [vmem:[#allocation16 + $0xe0] sm:$0xff]  }
 0x4ea   :  { %6105 = vmatpush2.bf16.msra.mxu0 %v9192_v9  ;;  %v9249_v9 = vld [vmem:[#allocation16 + $0xa0] sm:$0xff]  }
 0x4eb   :  { %6146 = vmatpush2.bf16.msra.mxu1 %v9195_v27  ;;  %6106 = vmatprep.subr.bf16.mxu0 %v9200_v8  ;;  %v9250_v8 = vld [vmem:[#allocation16 + $0x58] sm:$0xff]  }
 0x4ec   :  { %6147 = vmatprep.subr.bf16.mxu1 %v9203_v10  ;;  %v9251_v10 = vld [vmem:[#allocation16 + $0x18] sm:$0xff]  }
 0x4ee   :  { %6107 = vmatpush2.bf16.msra.mxu0 %v9198_v17  ;;  %v9252_v17 = vld [vmem:[#allocation16 + $0xd8] sm:$0xff]  }
 0x4ef   :  { %6148 = vmatpush2.bf16.msra.mxu1 %v9201_v13  ;;  %6108 = vmatprep.subr.bf16.mxu0 %v9206_v51  ;;  %v9253_v51 = vld [vmem:[#allocation16 + $0x98] sm:$0xff]  }
 0x4f0   :  { %6149 = vmatprep.subr.bf16.mxu1 %v9209_v63  ;;  %v9254_v63 = vld [vmem:[#allocation16 + $0x50] sm:$0xff]  }
 0x4f2   :  { %6109 = vmatpush2.bf16.msra.mxu0 %v9204_v15 }
 0x4f3   :  { %6150 = vmatpush2.bf16.msra.mxu1 %v9207_v16  ;;  %6110 = vmatprep.subr.bf16.mxu0 %v9212_v18  ;;  %v9256_v16 = vld [vmem:[#allocation16 + $0xd0] sm:$0xff]  }
 0x4f4   :  { %6151 = vmatprep.subr.bf16.mxu1 %v9215_v19  ;;  %v9255_v19 = vld [vmem:[#allocation16 + $0x10] sm:$0xff]  }
 0x4f6   :  { %6111 = vmatpush2.bf16.msra.mxu0 %v9210_v20 }
 0x4f7   :  { %6152 = vmatpush2.bf16.msra.mxu1 %v9213_v45  ;;  %6112 = vmatprep.subr.bf16.mxu0 %v9218_v22  ;;  %v9257_v22 = vld [vmem:[#allocation16 + $0x90] sm:$0xff]  }
 0x4f8   :  { %6153 = vmatprep.subr.bf16.mxu1 %v9221_v25  ;;  %v9258_v25 = vld [vmem:[#allocation16 + $0x48] sm:$0xff]  }
 0x4fa   :  { %6113 = vmatpush2.bf16.msra.mxu0 %v9216_v61 }
 0x4fb   :  { %6154 = vmatpush2.bf16.msra.mxu1 %v9219_v28  ;;  %6114 = vmatprep.subr.bf16.mxu0 %v9224_v30  ;;  %v9260_v28 = vld [vmem:[#allocation16 + $0xc8] sm:$0xff]  }
 0x4fc   :  { %6155 = vmatprep.subr.bf16.mxu1 %v9227_v32 }
 0x4fe   :  { %6115 = vmatpush2.bf16.msra.mxu0 %v9222_v33  ;;  %v9259_v33 = vld [vmem:[#allocation16 + $0x8] sm:$0xff]  }
 0x4ff   :  { %6156 = vmatpush2.bf16.msra.mxu1 %v9225_v36  ;;  %6116 = vmatprep.subr.bf16.mxu0 %v9230_v37  ;;  %v9261_v37 = vld [vmem:[#allocation16 + $0x88] sm:$0xff]  }
 0x500   :  { %6157 = vmatprep.subr.bf16.mxu1 %v9233_v38  ;;  %v9262_v38 = vld [vmem:[#allocation16 + $0x40] sm:$0xff]  }
 0x502   :  { %6117 = vmatpush2.bf16.msra.mxu0 %v9228_v39 }
 0x503   :  { %6158 = vmatpush2.bf16.msra.mxu1 %v9231_v40  ;;  %7985 = vmatprep.subr.bf16.mxu0 %v9234_v49  ;;  %v9264_v40 = vld [vmem:[#allocation16 + $0xc0] sm:$0xff]  }
 0x504   :  { %8007 = vmatprep.subr.bf16.mxu1 %v9236_v11 }
 0x505   :  { %6119 = vmatmul.mubr.bf16.vlgmr.msra.gmra.mxu0 %v9844_v26 }
 0x506   :  { %6160 = vmatmul.mubr.bf16.vlgmr.msra.gmra.mxu1 %v9849_v29  ;;  %7986 = vmatpush3.bf16.msra.mxu0 %v9235_v14 }
 0x507   :  { %8008 = vmatpush3.bf16.msra.mxu1 %v9237_v12  ;;  %7987 = vmatprep.subr.bf16.mxu0 %v9238_v60 }
 0x508   :  { %8009 = vmatprep.subr.bf16.mxu1 %v9240_v34 }
 0x50a   :  { %7988 = vmatpush3.bf16.msra.mxu0 %v9239_v62 }
 0x50b   :  { %8010 = vmatpush3.bf16.msra.mxu1 %v9241_v35  ;;  %7989 = vmatprep.subr.bf16.mxu0 %v9242_v0 }
 0x50c   :  { %8011 = vmatprep.subr.bf16.mxu1 %v9244_v23 }
 0x50e   :  { %7990 = vmatpush3.bf16.msra.mxu0 %v9243_v1 }
 0x50f   :  { %8012 = vmatpush3.bf16.msra.mxu1 %v9245_v24  ;;  %7991 = vmatprep.subr.bf16.mxu0 %v9246_v4 }
 0x510   :  { %8013 = vmatprep.subr.bf16.mxu1 %v9248_v7 }
 0x512   :  { %7992 = vmatpush3.bf16.msra.mxu0 %v9247_v41 }
 0x513   :  { %8014 = vmatpush3.bf16.msra.mxu1 %v9249_v9  ;;  %7993 = vmatprep.subr.bf16.mxu0 %v9250_v8 }
 0x514   :  { %8015 = vmatprep.subr.bf16.mxu1 %v9252_v17 }
 0x516   :  { %7994 = vmatpush3.bf16.msra.mxu0 %v9251_v10 }
 0x517   :  { %8016 = vmatpush3.bf16.msra.mxu1 %v9253_v51  ;;  %7995 = vmatprep.subr.bf16.mxu0 %v9254_v63 }
 0x518   :  { %8017 = vmatprep.subr.bf16.mxu1 %v9256_v16 }
 0x51a   :  { %7996 = vmatpush3.bf16.msra.mxu0 %v9255_v19 }
 0x51b   :  { %8018 = vmatpush3.bf16.msra.mxu1 %v9257_v22  ;;  %7997 = vmatprep.subr.bf16.mxu0 %v9258_v25 }
 0x51c   :  { %8019 = vmatprep.subr.bf16.mxu1 %v9260_v28 }
 0x51e   :  { %7998 = vmatpush3.bf16.msra.mxu0 %v9259_v33 }
 0x51f   :  { %8020 = vmatpush3.bf16.msra.mxu1 %v9261_v37  ;;  %7999 = vmatprep.subr.bf16.mxu0 %v9262_v38 }
 0x520   :  { %8021 = vmatprep.subr.bf16.mxu1 %v9264_v40 }
 0x545   :  { %v5956_v42 = vpop.f32.mrf.mxu0  ;;  %v5997_v44 = vpop.f32.mrf.mxu1 }
 0x546   :  { %v9861_v47 = vadd.f32 %v5997_v44, %v5956_v42 }
 0x547   :  { %v5958_v2 = vpop.f32.mrf.mxu0  ;;  %v5999_v3 = vpop.f32.mrf.mxu1 }
 0x548   :  { %v9863_v48 = vadd.f32 %v5999_v3, %v5958_v2  ;;  %v6168_v20 = vsel %vm4594_vm5, %v9861_v47, 0.0  ;;  %v9263_v2 = vld [vmem:[#allocation16] sm:$0xff]  }
 0x549   :  { %v5960_v50 = vpop.f32.mrf.mxu0  ;;  %v6001_v31 = vpop.f32.mrf.mxu1  ;;  %v6169_v30 = vrot.slane %v6168_v20, 4  ;;  %8000 = vmatpush3.bf16.msra.mxu0 %v9263_v2 }
 0x54a   :  { %v6175_v13 = vsel %vm4594_vm5, %v9863_v48, 0.0  ;;  %v9265_v50 = vld [vmem:[#allocation16 + $0x80] sm:$0xff]  }
 0x54b   :  { %v5961_v53 = vpop.f32.mrf.mxu0  ;;  %v6002_v56 = vpop.f32.mrf.mxu1  ;;  %v6176_v45 = vrot.slane %v6175_v13, 4  ;;  %v6170_v42 = vadd.f32 %v6169_v30, %v6168_v20  ;;  %8022 = vmatpush3.bf16.msra.mxu1 %v9265_v50 }
 0x54d   :  { %v6177_v36 = vadd.f32 %v6176_v45, %v6175_v13  ;;  %v6171_v53 = vrot.slane %v6170_v42, 2 }
 0x54f   :  { %v6178_v3 = vrot.slane %v6177_v36, 2 }
 0x585   :  { %v6038_v46 = vpop.f32.mrf.mxu0  ;;  %v6079_v57 = vpop.f32.mrf.mxu1 }
 0x586   :  { %v9865_v54 = vadd.f32 %v6079_v57, %v6038_v46  ;;  %v6179_v46 = vadd.f32 %v6178_v3, %v6177_v36 }
 0x587   :  { %v6040_v55 = vpop.f32.mrf.mxu0  ;;  %v6081_v26 = vpop.f32.mrf.mxu1 }
 0x588   :  { %v9867_v5 = vadd.f32 %v6081_v26, %v6040_v55  ;;  %v6182_v15 = vsel %vm4594_vm5, %v9865_v54, 0.0  ;;  %v9266_v55 = vld [vmem:[#allocation16 + $0x178] sm:$0xff]   ;;  %v6172_v26 = vadd.f32 %v6171_v53, %v6170_v42 }
 0x589   :  { %v6042_v58 = vpop.f32.mrf.mxu0  ;;  %v6083_v29 = vpop.f32.mrf.mxu1  ;;  %v6183_v61 = vrot.slane %v6182_v15, 4  ;;  %8029 = vmatprep.subr.bf16.mxu0 %v9266_v55 }
 0x58a   :  { %v6189_v27 = vsel %vm4594_vm5, %v9867_v5, 0.0  ;;  %v6180_v29 = vrot.slane %v6179_v46, 1  ;;  %v6173_v49 = vrot.slane %v6172_v26, 1 }
 0x58b   :  { %v6043_v6 = vpop.f32.mrf.mxu0  ;;  %v6084_v59 = vpop.f32.mrf.mxu1  ;;  %v6190_v18 = vrot.slane %v6189_v27, 4  ;;  %v6184_v39 = vadd.f32 %v6183_v61, %v6182_v15 }
 0x58c   :  { %v6181_v14 = vadd.f32 %v6180_v29, %v6179_v46  ;;  %v6174_v12 = vadd.f32 %v6173_v49, %v6172_v26 }
 0x58d   :  { %v6191_v32 = vadd.f32 %v6190_v18, %v6189_v27  ;;  %v6185_v31 = vrot.slane %v6184_v39, 2 }
 0x58e   :  { %v9879_v62 = vmul.f32 0.25, %v6181_v14  ;;  %v9883_v35 = vmul.f32 0.25, %v6174_v12 }
 0x58f   :  { %v6192_v44 = vrot.slane %v6191_v32, 2  ;;  %v6186_v57 = vadd.f32 %v6185_v31, %v6184_v39 }
 0x590   :  { %v6218_v1 = vsub.f32 %v9863_v48, %v9879_v62  ;;  %v6217_v24 = vsub.f32 %v9861_v47, %v9883_v35 }
 0x591   :  { %v6193_v56 = vadd.f32 %v6192_v44, %v6191_v32  ;;  %v6187_v6 = vrot.slane %v6186_v57, 1 }
 0x592   :  { %v6224_v41 = vmul.f32 %v6218_v1, %v6218_v1  ;;  %v6223_v9 = vmul.f32 %v6217_v24, %v6217_v24 }
 0x593   :  { %v6194_v58 = vrot.slane %v6193_v56, 1  ;;  %v6188_v11 = vadd.f32 %v6187_v6, %v6186_v57 }
 0x594   :  { %v6236_v8 = vsel %vm4594_vm5, %v6224_v41, 0.0  ;;  %v6229_v51 = vsel %vm4594_vm5, %v6223_v9, 0.0 }
 0x595   :  { %v6195_v59 = vadd.f32 %v6194_v58, %v6193_v56  ;;  %v9881_v34 = vmul.f32 0.25, %v6188_v11  ;;  %v6237_v63 = vrot.slane %v6236_v8, 4  ;;  %v6230_v45 = vrot.slane %v6229_v51, 4 }
 0x597   :  { %v9877_v60 = vmul.f32 0.25, %v6195_v59  ;;  %v6219_v23 = vsub.f32 %v9865_v54, %v9881_v34  ;;  %v6238_v30 = vadd.f32 %v6237_v63, %v6236_v8  ;;  %v6231_v44 = vadd.f32 %v6230_v45, %v6229_v51 }
 0x599   :  { %v6220_v0 = vsub.f32 %v9867_v5, %v9877_v60  ;;  %v6225_v7 = vmul.f32 %v6219_v23, %v6219_v23  ;;  %v6239_v3 = vrot.slane %v6238_v30, 2  ;;  %v6232_v57 = vrot.slane %v6231_v44, 2 }
 0x59b   :  { %v6226_v4 = vmul.f32 %v6220_v0, %v6220_v0  ;;  %v6243_v10 = vsel %vm4594_vm5, %v6225_v7, 0.0  ;;  %v6240_v26 = vadd.f32 %v6239_v3, %v6238_v30  ;;  %v6233_v14 = vadd.f32 %v6232_v57, %v6231_v44 }
 0x59c   :  { %v6244_v16 = vrot.slane %v6243_v10, 4 }
 0x59d   :  { %v6250_v27 = vsel %vm4594_vm5, %v6226_v4, 0.0  ;;  %v6241_v12 = vrot.slane %v6240_v26, 1  ;;  %v6234_v41 = vrot.slane %v6233_v14, 1 }
 0x59e   :  { %v6251_v17 = vrot.slane %v6250_v27, 4  ;;  %v6245_v36 = vadd.f32 %v6244_v16, %v6243_v10 }
 0x59f   :  { %v6242_v9 = vadd.f32 %v6241_v12, %v6240_v26  ;;  %v6235_v51 = vadd.f32 %v6234_v41, %v6233_v14 }
 0x5a0   :  { %v6252_v22 = vadd.f32 %v6251_v17, %v6250_v27  ;;  %v6246_v53 = vrot.slane %v6245_v36, 2 }
 0x5a1   :  { %v6272_v16 = vmul.f32 0.25, %v6242_v9 }
 0x5a2   :  { %v6253_v2 = vrot.slane %v6252_v22, 2  ;;  %v6247_v6 = vadd.f32 %v6246_v53, %v6245_v36 }
 0x5a4   :  { %v6254_v55 = vadd.f32 %v6253_v2, %v6252_v22  ;;  %v6248_v23 = vrot.slane %v6247_v6, 1 }
 0x5a6   :  { %v6255_v11 = vrot.slane %v6254_v55, 1  ;;  %v6249_v10 = vadd.f32 %v6248_v23, %v6247_v6 }
 0x5a8   :  { %v6256_v7 = vadd.f32 %v6255_v11, %v6254_v55 }
 0x5aa   :  { %v6274_v63 = vmul.f32 0.25, %v6256_v7 }
 0x5c5   :  { %v6120_v13 = vpop.f32.mrf.mxu0 }
 0x5c6   :  { %v6161_v15 = vpop.f32.mrf.mxu1 }
 0x5c7   :  { %v9897_v18 = vadd.f32 %v6161_v15, %v6120_v13  ;;  %v6122_v19 = vpop.f32.mrf.mxu0 }
 0x5c8   :  { %v6163_v20 = vpop.f32.mrf.mxu1 }
 0x5c9   :  { %v6196_v25 = vsel %vm4594_vm5, %v9897_v18, 0.0  ;;  %v9901_v61 = vadd.f32 %v6163_v20, %v6122_v19  ;;  %v6124_v28 = vpop.f32.mrf.mxu0  ;;  %v6273_v20 = vmul.f32 0.25, %v6249_v10 }
 0x5ca   :  { %v6197_v32 = vrot.slane %v6196_v25, 4  ;;  %v6165_v33 = vpop.f32.mrf.mxu1  ;;  %v6281_v28 = vadd.f32 1e-05, %v6274_v63  ;;  %v6358_v63 = vsub.s32 4, %v9668_v43 }
 0x5cb   :  { %v6203_v37 = vsel %vm4594_vm5, %v9901_v61, 0.0  ;;  %v6125_v38 = vpop.f32.mrf.mxu0  ;;  %v6279_v33 = vadd.f32 1e-05, %v6272_v16  ;;  %v6280_v36 = vadd.f32 1e-05, %v6273_v20 }
 0x5cc   :  { %v6198_v39 = vadd.f32 %v6197_v32, %v6196_v25  ;;  %v6204_v40 = vrot.slane %v6203_v37, 4  ;;  %v6166_v42 = vpop.f32.mrf.mxu1  ;;  %v6271_v25 = vmul.f32 0.25, %v6235_v51  ;;  %9284 = vrsqrt.f32 %v6281_v28 }
 0x5cd   :  { %9286 = vrsqrt.f32 %v6279_v33  ;;  %v6354_v51 = vsub.s32 3, %v9668_v43 }
 0x5ce   :  { %v6199_v50 = vrot.slane %v6198_v39, 2  ;;  %v6205_v31 = vadd.f32 %v6204_v40, %v6203_v37  ;;  %9288 = vrsqrt.f32 %v6280_v36 }
 0x5d0   :  { %v6200_v56 = vadd.f32 %v6199_v50, %v6198_v39  ;;  %v6206_v46 = vrot.slane %v6205_v31, 2  ;;  %v6278_v39 = vadd.f32 1e-05, %v6271_v25 }
 0x5d2   :  { %v6201_v58 = vrot.slane %v6200_v56, 1  ;;  %v6207_v29 = vadd.f32 %v6206_v46, %v6205_v31  ;;  %9290 = vrsqrt.f32 %v6278_v39  ;;  %v9573_v46 = vmov 1966171168  }
 0x5d3   :  { %v6300_v57 = vunpack.c.l.s4 %v9573_v46 }
 0x5d4   :  { %v6202_v49 = vadd.f32 %v6201_v58, %v6200_v56  ;;  %v6208_v59 = vrot.slane %v6207_v29, 1 }
 0x5d5   :  { %v6301_v58 = vunpack.c.0.s8 %v6300_v57 }
 0x5d6   :  { %v9905_v0 = vmul.f32 0.25, %v6202_v49  ;;  %v6209_v1 = vadd.f32 %v6208_v59, %v6207_v29 }
 0x5d7   :  { %v6304_v14 = vsub.s32 %v6301_v58, %v9668_v43 }
 0x5d8   :  { %v6221_v24 = vsub.f32 %v9897_v18, %v9905_v0  ;;  %v9909_v4 = vmul.f32 0.25, %v6209_v1 }
 0x5d9   :  { %v9285_v55 = vpop.eup %9284 }
 0x5da   :  { %v6227_v27 = vmul.f32 %v6221_v24, %v6221_v24  ;;  %v6222_v8 = vsub.f32 %v9901_v61, %v9909_v4  ;;  %v9287_v26 = vpop.eup %9286 }
 0x5db   :  { %v9289_v29 = vpop.eup %9288 }
 0x5dc   :  { %v6257_v17 = vsel %vm4594_vm5, %v6227_v27, 0.0  ;;  %v6228_v13 = vmul.f32 %v6222_v8, %v6222_v8  ;;  %v6297_v6 = vcombine.low %v9289_v29, %v9285_v55  ;;  %v6277_v8 = vld [vmem:[#allocation13] sm:$0x3f] }
 0x5dd   :  { %v6258_v15 = vrot.slane %v6257_v17, 4 }
 0x5de   :  { %v6264_v19 = vsel %vm4594_vm5, %v6228_v13, 0.0  ;;  %v6312_v11 = vrot.slane %v6297_v6, %v6304_v14  ;;  %v6350_v13 = vsub.s32 2, %v9668_v43 }
 0x5df   :  { %v6259_v45 = vadd.f32 %v6258_v15, %v6257_v17  ;;  %v6265_v22 = vrot.slane %v6264_v19, 4  ;;  %v9291_v49 = vpop.eup %9290  ;;  %v6346_v17 = vsub.s32 1, %v9668_v43  ;;  %v6362_v15 = vsub.s32 5, %v9668_v43 }
 0x5e0   :  { %v6296_v59 = vcombine.low %v9291_v49, %v9287_v26 }
 0x5e1   :  { %v6260_v30 = vrot.slane %v6259_v45, 2  ;;  %v6266_v32 = vadd.f32 %v6265_v22, %v6264_v19 }
 0x5e2   :  { %v6305_v1 = vrot.slane %v6296_v59, %v6304_v14 }
 0x5e3   :  { %v6261_v37 = vadd.f32 %v6260_v30, %v6259_v45  ;;  %v6267_v38 = vrot.slane %v6266_v32, 2 }
 0x5e4   :  { %v6320_v41 = vcombine.low %v6305_v1, %v6312_v11 }
 0x5e5   :  { %v6262_v40 = vrot.slane %v6261_v37, 1  ;;  %v6268_v42 = vadd.f32 %v6267_v38, %v6266_v32 }
 0x5e6   :  { %v6327_v9 = vrot.slane %v6320_v41, %v6304_v14 }
 0x5e7   :  { %v6263_v44 = vadd.f32 %v6262_v40, %v6261_v37  ;;  %v6269_v2 = vrot.slane %v6268_v42, 1 }
 0x5e9   :  { %v6275_v3 = vmul.f32 0.25, %v6263_v44  ;;  %v6270_v50 = vadd.f32 %v6269_v2, %v6268_v42 }
 0x5eb   :  { %v6282_v31 = vadd.f32 1e-05, %v6275_v3  ;;  %v6276_v53 = vmul.f32 0.25, %v6270_v50 }
 0x5ed   :  { %v6283_v56 = vadd.f32 1e-05, %v6276_v53  ;;  %9292 = vrsqrt.f32 %v6282_v31 }
 0x5ef   :  { %9294 = vrsqrt.f32 %v6283_v56 }
 0x5fa   :  { %v9293_v12 = vpop.eup %9292 }
 0x5fc   :  { %v9295_v23 = vpop.eup %9294 }
 0x5fd   :  { %v6298_v24 = vcombine.low %v9293_v12, %v9295_v23 }
 0x5ff   :  { %v6319_v7 = vrot.slane %v6298_v24, %v6304_v14 }
 0x601   :  { %v6334_v27 = vrot.slane %v6319_v7, %v6304_v14 }
 0x603   :  { %v6335_v10 = vcombine.low %v6327_v9, %v6334_v27 }
 0x605   :  { %v6337_v16 = vmul.f32 %v6335_v10, %v6277_v8 }
 0x607   :  { %v6343_v19 = vrot.slane %v6337_v16, %v9812_v21  ;;  %v6347_v20 = vrot.slane %v6337_v16, %v6346_v17  ;;  %v6351_v45 = vrot.slane %v6337_v16, %v6350_v13  ;;  %v6355_v22 = vrot.slane %v6337_v16, %v6354_v51 }
 0x608   :  { %v6359_v25 = vrot.slane %v6337_v16, %v6358_v63  ;;  %v6363_v28 = vrot.slane %v6337_v16, %v6362_v15 }
 0x609   :  { %v6370_v30 = vmul.f32 %v6343_v19, %v9883_v35  ;;  %v6371_v32 = vmul.f32 %v6347_v20, %v9879_v62  ;;  %v6372_v33 = vmul.f32 %v6351_v45, %v9881_v34  ;;  %v6373_v36 = vmul.f32 %v6355_v22, %v9877_v60  ;;  %v6338_v35 = vld [vmem:[#allocation14] sm:$0x3f] }
 0x60a   :  { %v6374_v37 = vmul.f32 %v6359_v25, %v9905_v0  ;;  %v6375_v43 = vmul.f32 %v6363_v28, %v9909_v4  ;;  %v6425_v34 = vmul.f32 %v6347_v20, %v9863_v48  ;;  %v6427_v60 = vmul.f32 %v6355_v22, %v9867_v5 }
 0x60b   :  { %v6382_v38 = vcombine.low %v6370_v30, %v6371_v32  ;;  %v6383_v39 = vcombine.low %v6372_v33, %v6373_v36  ;;  %v6424_v0 = vmul.f32 %v6343_v19, %v9861_v47  ;;  %v6429_v55 = vmul.f32 %v6363_v28, %v9901_v61 }
 0x60c   :  { %v6384_v40 = vcombine.low %v6374_v37, %v6375_v43  ;;  %v6426_v26 = vmul.f32 %v6351_v45, %v9865_v54  ;;  %v6428_v7 = vmul.f32 %v6359_v25, %v9897_v18 }
 0x60d   :  { %v6391_v42 = vrot.slane %v6382_v38, %v6304_v14  ;;  %v6398_v44 = vrot.slane %v6383_v39, %v6304_v14 }
 0x60e   :  { %v6405_v2 = vrot.slane %v6384_v40, %v6304_v14 }
 0x60f   :  { %v6406_v3 = vcombine.low %v6391_v42, %v6398_v44 }
 0x610   :  { %v6420_v31 = vrot.slane %v6405_v2, %v6304_v14 }
 0x611   :  { %v6413_v50 = vrot.slane %v6406_v3, %v6304_v14 }
 0x613   :  { %v6421_v53 = vcombine.low %v6413_v50, %v6420_v31 }
 0x615   :  { %v6423_v62 = vsub.f32 %v6338_v35, %v6421_v53 }
 0x617   :  { %v6454_v56 = vrot.slane %v6423_v62, %v6362_v15  ;;  %v6438_v4 = vrot.slane %v6423_v62, %v6346_v17  ;;  %v6446_v46 = vrot.slane %v6423_v62, %v6354_v51  ;;  %v6434_v57 = vrot.slane %v6423_v62, %v9812_v21 }
 0x618   :  { %v6442_v58 = vrot.slane %v6423_v62, %v6350_v13  ;;  %v6450_v54 = vrot.slane %v6423_v62, %v6358_v63  ;;  %v9267_v62 = vld [vmem:[#allocation16 + $0x138] sm:$0xff]  }
 0x619   :  { %v6462_v29 = vadd.f32 %v6438_v4, %v6425_v34  ;;  %v6464_v6 = vadd.f32 %v6446_v46, %v6427_v60  ;;  %v6461_v49 = vadd.f32 %v6434_v57, %v6424_v0  ;;  %v6466_v59 = vadd.f32 %v6454_v56, %v6429_v55  ;;  %v9268_v0 = vld [vmem:[#allocation16 + $0x170] sm:$0xff]  }
 0x61a   :  { %v6463_v14 = vadd.f32 %v6442_v58, %v6426_v26  ;;  %v6465_v22 = vadd.f32 %v6450_v54, %v6428_v7  ;;  %v9269_v26 = vld [vmem:[#allocation16 + $0x130] sm:$0xff]   ;;  %v9280_v7 = vld [vmem:[#allocation16 + $0x140] sm:$0xff]  }
 0x61b   :  { %vm6474_vm14 = vcmp.ge.f32.partialorder %v6462_v29, 0.5  ;;  %vm6476_vm15 = vcmp.ge.f32.partialorder %v6464_v6, 0.5  ;;  %vm6473_vm0 = vcmp.ge.f32.partialorder %v6461_v49, 0.5  ;;  %vm6478_vm2 = vcmp.ge.f32.partialorder %v6466_v59, 0.5  ;;  %v9276_v54 = vld [vmem:[#allocation16 + $0x150] sm:$0xff]  }
 0x61c   :  { %v7926_v48 = vsel %vm6474_vm14, 1.0, %v9572_v52  ;;  %v7928_v47 = vsel %vm6476_vm15, 1.0, %v9572_v52  ;;  %v7925_v12 = vsel %vm6473_vm0, 1.0, %v9572_v52  ;;  %vm6475_vm1 = vcmp.ge.f32.partialorder %v6463_v14, 0.5 }
 0x61d   :  { %v6492_v5 = vsub.f32 1.0, %v7926_v48  ;;  %v6494_v11 = vsub.f32 1.0, %v7928_v47  ;;  %v6491_v61 = vsub.f32 1.0, %v7925_v12  ;;  %v7927_v24 = vsel %vm6475_vm1, 1.0, %v9572_v52 }
 0x61e   :  { %v7930_v41 = vsel %vm6478_vm2, 1.0, %v9572_v52  ;;  %v6493_v27 = vsub.f32 1.0, %v7927_v24  ;;  %v6516_v17 = vrot.slane %v6462_v29, 2  ;;  %v6518_v51 = vrot.slane %v6464_v6, 2 }
 0x61f   :  { %v6498_v1 = vmul.f32 %v6492_v5, %v6462_v29  ;;  %v6500_v23 = vmul.f32 %v6494_v11, %v6464_v6  ;;  %v6497_v9 = vmul.f32 %v6491_v61, %v6461_v49  ;;  %v6496_v8 = vsub.f32 1.0, %v7930_v41  ;;  %v9270_v6 = vld [vmem:[#allocation16 + $0x168] sm:$0xff]   ;;  %v9274_v5 = vld [vmem:[#allocation16 + $0x158] sm:$0xff]  }
 0x620   :  { %v6515_v16 = vrot.slane %v6461_v49, 2  ;;  %v6499_v19 = vmul.f32 %v6493_v27, %v6463_v14  ;;  %v6517_v32 = vrot.slane %v6463_v14, 2  ;;  %v6520_v36 = vrot.slane %v6466_v59, 2  ;;  %v9271_v49 = vld [vmem:[#allocation16 + $0x128] sm:$0xff]   ;;  %v9272_v14 = vld [vmem:[#allocation16 + $0x160] sm:$0xff]  }
 0x621   :  { %v6504_v10 = vmul.f32 0.2, %v6498_v1  ;;  %v6506_v13 = vmul.f32 0.2, %v6500_v23  ;;  %v6503_v15 = vmul.f32 0.2, %v6497_v9  ;;  %v6502_v20 = vmul.f32 %v6496_v8, %v6466_v59 }
 0x622   :  { %v6505_v30 = vmul.f32 0.2, %v6499_v19  ;;  %vm6477_vm9 = vcmp.ge.f32.partialorder %v6465_v22, 0.5  ;;  %v6519_v11 = vrot.slane %v6465_v22, 2  ;;  %v9277_v1 = vld [vmem:[#allocation16 + $0x110] sm:$0xff]   ;;  %v9278_v23 = vld [vmem:[#allocation16 + $0x148] sm:$0xff]  }
 0x623   :  { %v6528_v63 = vadd.f32 %v6516_v17, %v6504_v10  ;;  %v6530_v45 = vadd.f32 %v6518_v51, %v6506_v13  ;;  %v6527_v28 = vadd.f32 %v6515_v16, %v6503_v15  ;;  %v6508_v33 = vmul.f32 0.2, %v6502_v20  ;;  %v9281_v27 = vld [vmem:[#allocation16 + $0x100] sm:$0xff]  }
 0x624   :  { %v6529_v37 = vadd.f32 %v6517_v32, %v6505_v30  ;;  %v7929_v56 = vsel %vm6477_vm9, 1.0, %v9572_v52 }
 0x625   :  { %vm6534_vm3 = vcmp.ge.f32.partialorder %v6528_v63, 0.5  ;;  %vm6536_vm6 = vcmp.ge.f32.partialorder %v6530_v45, 0.5  ;;  %vm6533_vm7 = vcmp.ge.f32.partialorder %v6527_v28, 0.5  ;;  %v6532_v40 = vadd.f32 %v6520_v36, %v6508_v33 }
 0x626   :  { %v7932_v18 = vsel %vm6534_vm3, 1.0, %v9572_v52  ;;  %v7934_v25 = vsel %vm6536_vm6, 1.0, %v9572_v52  ;;  %v7931_v39 = vsel %vm6533_vm7, 1.0, %v9572_v52  ;;  %vm6535_vm8 = vcmp.ge.f32.partialorder %v6529_v37, 0.5 }
 0x627   :  { %v6558_v43 = vrot.slane %v7932_v18, 6  ;;  %v6560_v38 = vrot.slane %v7934_v25, 6  ;;  %v6557_v42 = vrot.slane %v7931_v39, 6  ;;  %v7933_v3 = vsel %vm6535_vm8, 1.0, %v9572_v52 }
 0x628   :  { %vm6538_vm10 = vcmp.ge.f32.partialorder %v6532_v40, 0.5  ;;  %v6559_v53 = vrot.slane %v7933_v3, 6  ;;  %v6495_v58 = vsub.f32 1.0, %v7929_v56 }
 0x629   :  { %v6570_v44 = vsel %vm4123_vm4, %v7926_v48, %v6558_v43  ;;  %v6572_v2 = vsel %vm4123_vm4, %v7928_v47, %v6560_v38  ;;  %v6569_v35 = vsel %vm4123_vm4, %v7925_v12, %v6557_v42  ;;  %v7936_v60 = vsel %vm6538_vm10, 1.0, %v9572_v52  ;;  %v9273_v48 = vld [vmem:[#allocation16 + $0x120] sm:$0xff]   ;;  %v9275_v12 = vld [vmem:[#allocation16 + $0x118] sm:$0xff]  }
 0x62a   :  { %v6576_v50 = vpack.c.bf16 %v6570_v44, %v6570_v44  ;;  %v6578_v31 = vpack.c.bf16 %v6572_v2, %v6572_v2  ;;  %v6575_v34 = vpack.c.bf16 %v6569_v35, %v6569_v35  ;;  %v6571_v4 = vsel %vm4123_vm4, %v7927_v24, %v6559_v53 }
 0x62b   :  { %v6562_v46 = vrot.slane %v7936_v60, 6  ;;  %v6577_v57 = vpack.c.bf16 %v6571_v4, %v6571_v4  ;;  %v6501_v59 = vmul.f32 %v6495_v58, %v6465_v22  ;;  %v7103_v4 = vld [vmem:[#allocation17] sm:$0x1] }
 0x62c   :  { %6997 = vmatprep.mubr.bf16.mxu0 %v6576_v50  ;;  %7037 = vmatprep.mubr.bf16.mxu1 %v6578_v31 }
 0x62d   :  { %6998 = vmatmul.mubr.bf16.vlgmr.msra.gmra.mxu0 %v6575_v34  ;;  %v6574_v55 = vsel %vm4123_vm4, %v7930_v41, %v6562_v46  ;;  %7038 = vmatmul.mubr.bf16.vlgmr.msra.gmra.mxu1 %v6577_v57  ;;  %v6507_v47 = vmul.f32 0.2, %v6501_v59  ;;  %v9279_v41 = vld [vmem:[#allocation16 + $0x108] sm:$0xff]  }
 0x62e   :  { %8030 = vmatpush3.bf16.msra.mxu0 %v9267_v62  ;;  %v6580_v29 = vpack.c.bf16 %v6574_v55, %v6574_v55  ;;  %v7107_v55 = vld [vmem:[#allocation19] sm:$0x1] }
 0x62f   :  { %8031 = vmatprep.subr.bf16.mxu0 %v9268_v0  ;;  %v6531_v61 = vadd.f32 %v6519_v11, %v6507_v47 }
 0x630   :  { %7077 = vmatprep.mubr.bf16.mxu0 %v6580_v29 }
 0x631   :  { %vm6537_vm11 = vcmp.ge.f32.partialorder %v6531_v61, 0.5 }
 0x632   :  { %8032 = vmatpush3.bf16.msra.mxu0 %v9269_v26  ;;  %v7935_v24 = vsel %vm6537_vm11, 1.0, %v9572_v52 }
 0x633   :  { %8033 = vmatprep.subr.bf16.mxu0 %v9270_v6  ;;  %v6561_v9 = vrot.slane %v7935_v24, 6 }
 0x635   :  { %v6573_v8 = vsel %vm4123_vm4, %v7929_v56, %v6561_v9 }
 0x636   :  { %8034 = vmatpush3.bf16.msra.mxu0 %v9271_v49  ;;  %v6579_v10 = vpack.c.bf16 %v6573_v8, %v6573_v8 }
 0x637   :  { %8035 = vmatprep.subr.bf16.mxu0 %v9272_v14 }
 0x63a   :  { %8036 = vmatpush3.bf16.msra.mxu0 %v9273_v48 }
 0x63b   :  { %8037 = vmatprep.subr.bf16.mxu0 %v9274_v5 }
 0x63e   :  { %8038 = vmatpush3.bf16.msra.mxu0 %v9275_v12 }
 0x63f   :  { %8039 = vmatprep.subr.bf16.mxu0 %v9276_v54 }
 0x642   :  { %8040 = vmatpush3.bf16.msra.mxu0 %v9277_v1 }
 0x643   :  { %8041 = vmatprep.subr.bf16.mxu0 %v9278_v23 }
 0x646   :  { %8042 = vmatpush3.bf16.msra.mxu0 %v9279_v41 }
 0x647   :  { %8043 = vmatprep.subr.bf16.mxu0 %v9280_v7 }
 0x64a   :  { %8044 = vmatpush3.bf16.msra.mxu0 %v9281_v27 }
 0x64d   :  { %7078 = vmatmul.mubr.bf16.vlgmr.msra.gmra.mxu0 %v6579_v10 }
 0x6ed   :  { %v8001_v17 = vpop.f32.mrf.mxu0  ;;  %v8023_v13 = vpop.f32.mrf.mxu1 }
 0x6ef   :  { %v8002_v51 = vpop.f32.mrf.mxu0  ;;  %v8024_v15 = vpop.f32.mrf.mxu1 }
 0x6f0   :  { %v8003_v63 = vadd.f32 %v8002_v51, %v8001_v17  ;;  %v8025_v45 = vadd.f32 %v8024_v15, %v8023_v13 }
 0x6f1   :  { %v8004_v16 = vpop.f32.mrf.mxu0  ;;  %v8026_v19 = vpop.f32.mrf.mxu1 }
 0x6f2   :  { %v7040_v30 = vadd.f32 %v8025_v45, %v8003_v63 }
 0x6f3   :  { %v8005_v52 = vpop.f32.mrf.mxu0  ;;  %v8027_v20 = vpop.f32.mrf.mxu1 }
 0x70d   :  { %v8045_v22 = vpop.f32.mrf.mxu0 }
 0x70f   :  { %v8046_v28 = vpop.f32.mrf.mxu0 }
 0x710   :  { %v8047_v32 = vadd.f32 %v8046_v28, %v8045_v22 }
 0x711   :  { %v8048_v33 = vpop.f32.mrf.mxu0 }
 0x712   :  { %v7080_v36 = vadd.f32 %v8047_v32, %v7040_v30 }
 0x713   :  { %v8049_v18 = vpop.f32.mrf.mxu0 }
 0x714   :  { %v7085_v25 = vsel %vm4594_vm5, %v7080_v36, 0.0 }
 0x715   :  { %v7086_v37 = vrot.slane %v7085_v25, 4 }
 0x717   :  { %v7087_v43 = vadd.f32 %v7086_v37, %v7085_v25 }
 0x719   :  { %v7088_v38 = vrot.slane %v7087_v43, 2 }
 0x71b   :  { %v7089_v39 = vadd.f32 %v7088_v38, %v7087_v43 }
 0x71d   :  { %v7090_v40 = vrot.slane %v7089_v39, 1 }
 0x71f   :  { %v7091_v42 = vadd.f32 %v7090_v40, %v7089_v39 }
 0x721   :  { %v7092_v44 = vmul.f32 0.25, %v7091_v42 }
 0x723   :  { %v7093_v2 = vsub.f32 %v7080_v36, %v7092_v44 }
 0x725   :  { %v7094_v3 = vmul.f32 %v7093_v2, %v7093_v2 }
 0x727   :  { %v7095_v50 = vsel %vm4594_vm5, %v7094_v3, 0.0 }
 0x728   :  { %v7096_v31 = vrot.slane %v7095_v50, 4 }
 0x72a   :  { %v7097_v35 = vadd.f32 %v7096_v31, %v7095_v50 }
 0x72c   :  { %v7098_v53 = vrot.slane %v7097_v35, 2 }
 0x72e   :  { %v7099_v62 = vadd.f32 %v7098_v53, %v7097_v35 }
 0x730   :  { %v7100_v34 = vrot.slane %v7099_v62, 1 }
 0x732   :  { %v7101_v60 = vadd.f32 %v7100_v34, %v7099_v62 }
 0x734   :  { %v7102_v0 = vmul.f32 0.25, %v7101_v60 }
 0x736   :  { %v7104_v56 = vadd.f32 1e-05, %v7102_v0 }
 0x738   :  { %9296 = vrsqrt.f32 %v7104_v56 }
 0x745   :  { %v9297_v46 = vpop.eup %9296 }
 0x746   :  { %v7106_v57 = vmul.f32 %v9297_v46, %v7103_v4 }
 0x748   :  { %v7108_v26 = vmul.f32 %v7106_v57, %v7092_v44  ;;  %v7114_v58 = vrot.slane %v7106_v57, %v9812_v21 }
 0x74a   :  { %v7109_v29 = vsub.f32 %v7107_v55, %v7108_v26  ;;  %v7116_v6 = vmul.f32 %v7114_v58, %v7080_v36 }
 0x74c   :  { %v7121_v49 = vrot.slane %v7109_v29, %v9812_v21 }
 0x74e   :  { %v7123_v59 = vadd.f32 %v7121_v49, %v7116_v6 }
 0x750   :  { %7124 = vst [vmem:[#allocation20] sm:$0xf] %v7123_v59 }
 0x751   :  { %9529 = shalt.err (!%p9526_p3)
}
 0x752   :  { %7134 = dma.vmem_to_hbm [thread:$0]  %s7132_s10, 64, %s9971_s11, [#allocation4]  }
 0x753   :  { %9550 = dma.done.wait [#allocation4], 64  }
 0x754   :  { %9551 = vsyncadd [#allocation4], 4294967232 }
 0x755   :  { %7138 = vsyncpa [#allocation3], 1 }
 0x756   :  { %7139 = vsyncpa [#allocation6], 1 }
 0x757   :  { %7140 = vsyncpa [#allocation9], 1 }
 0x758   :  { %7141 = vsyncpa [#allocation12], 1 }
 0x759   :  { %7142 = vsyncpa [#allocation15], 1 }
 0x75a   :  { %7143 = vsyncpa [#allocation18], 1 }
 0x75b   :  { %7144 = vsyncpa [#allocation4], 1 }

</bundles_post_ra>
